<compile_context>
chip_gen: v7x
topology: tpu7x:2x2x1
jax: 0.10.0
libtpu: 0.0.40
codegen_flags: <defaults>
</compile_context>

<pallas_src>
import numpy as np
import jax
import jax.numpy as jnp
from jax import lax
from jax.experimental import pallas as pl
from jax.experimental.pallas import tpu as pltpu

START = -2
STOP = -1
NEG = -100000.0


# ----------------------------------------------------------------------------
# Parameter construction (mirrors Partial_CRF_Setinf.__init__, deterministic)
# ----------------------------------------------------------------------------
def build_transitions(labels):
    label_size = len(labels)
    L = label_size + 2
    t = np.zeros((L, L), dtype=np.float32)
    t[:, START] = NEG
    t[STOP, :] = NEG
    t[:, 0] = NEG
    t[0, :] = NEG
    type_set = set()
    for i in range(label_size):
        parts = labels[i].split('-')
        if len(parts) == 2:
            type_set.add(parts[1])
    possible = set()
    for bt in type_set:
        possible.add(('S-' + bt, 'O'))
        possible.add(('E-' + bt, 'O'))
        for et in type_set:
            if bt == et:
                possible.add(('B-' + bt, 'I-' + et))
                possible.add(('B-' + bt, 'E-' + et))
                possible.add(('I-' + bt, 'E-' + et))
                possible.add(('I-' + bt, 'I-' + et))
            possible.add(('E-' + bt, 'B-' + et))
            possible.add(('E-' + bt, 'S-' + et))
            possible.add(('S-' + bt, 'B-' + et))
            possible.add(('S-' + bt, 'S-' + et))
            possible.add(('O', 'S-' + et))
            possible.add(('O', 'B-' + et))
    possible.add(('O', 'O'))
    for bi in range(1, label_size):
        for ei in range(1, label_size):
            if (labels[bi], labels[ei]) not in possible:
                t[bi, ei] = NEG
    for ty in type_set:
        t[labels.index('B-' + ty), STOP] = NEG
        t[labels.index('I-' + ty), STOP] = NEG
        t[START, labels.index('I-' + ty)] = NEG
        t[START, labels.index('E-' + ty)] = NEG
    return t


# ----------------------------------------------------------------------------
# Pallas kernel: full Viterbi DP + backtracking (batch on lanes)
# ----------------------------------------------------------------------------
def make_viterbi_kernel(S, L, Bt):
    def viterbi_kernel(len_ref, feats_ref, trans_ref, transT_ref, out_ref, bp_ref):
        lengths = len_ref[...]                       # (1, Bt) int32
        last_pos = lengths - 1                       # (1, Bt)

        trans = trans_ref[...]                       # (L, L)  trans[prev, cur]
        transT = transT_ref[...]                     # (L, L)  transT[cur, prev]

        # Hoisted loop-invariant slabs (computed once, reused every timestep).
        # trans_cols[p][c, 0] == trans[p, c]
        trans_cols = [transT[:, p:p + 1] for p in range(L)]      # each (L, 1)
        start_col = transT[:, L - 2:L - 1]           # trans[START, :] as (L, 1)
        stop_col = trans[:, L - 1:L]                 # trans[:, STOP]  as (L, 1)

        feat0 = feats_ref[0]                         # (L, Bt)
        # same association order as the reference: (trans + feat)
        init_var0 = start_col + feat0                # (L, Bt)

        # ---- forward step: fused running max/argmax over previous label p ----
        def fwd_step(ind, prev, last_scores):
            feat = feats_ref[ind]                    # (L, Bt)
            # (prev + trans) + feat, same association order as the reference
            best_val = (prev[0:1, :] + trans_cols[0]) + feat
            best_id = jnp.zeros((L, Bt), jnp.int32)
            for p in range(1, L):
                cand = (prev[p:p + 1, :] + trans_cols[p]) + feat
                upd = cand > best_val                # strict > => first-index tie-break
                best_id = jnp.where(upd, jnp.int32(p), best_id)
                best_val = jnp.where(upd, cand, best_val)
            live = ind < lengths                     # (1, Bt): masked_fill_(pad) -> 0
            # NOTE: for very large S*L*B, shrink this scratch to int16/int8.
            bp_ref[ind - 1] = jnp.where(live, best_id, 0)
            new_last = jnp.where(last_pos == ind, best_val, last_scores)
            return best_val, new_last

        if S <= 64:
            # Fully unrolled at trace time: static indices, best scheduler visibility.
            prev = init_var0
            last_scores = init_var0
            for ind in range(1, S):
                prev, last_scores = fwd_step(ind, prev, last_scores)
        else:
            prev, last_scores = lax.fori_loop(
                1, S, lambda i, c: fwd_step(i, *c), (init_var0, init_var0), unroll=4)

        # ---- transition to STOP: fused max/argmax over previous label ----
        scores_stop = last_scores + stop_col         # (L, Bt)
        best = scores_stop[0:1, :]
        ptr_final = jnp.zeros((1, Bt), jnp.int32)
        for p in range(1, L):
            cand = scores_stop[p:p + 1, :]
            upd = cand > best
            ptr_final = jnp.where(upd, jnp.int32(p), ptr_final)
            best = jnp.where(upd, cand, best)

        out_ref[S - 1] = ptr_final                   # lane-dense (1, Bt) store

        # ---- backtracking ----
        def bwd_step(idx, cur):
            bp_t = bp_ref[idx]                       # (L, Bt)
            # emulate the scatter_ of `pointer` at position lengths-1
            bp_t = jnp.where(last_pos == idx, ptr_final, bp_t)
            # gather along sublanes: new[b] = bp_t[cur[b], b] (unrolled selects, VPU)
            new = bp_t[0:1, :]
            for p in range(1, L):
                new = jnp.where(cur == jnp.int32(p), bp_t[p:p + 1, :], new)
            out_ref[idx] = new
            return new

        if S <= 64:
            cur = ptr_final
            for idx in range(S - 2, -1, -1):
                cur = bwd_step(idx, cur)
        else:
            lax.fori_loop(0, S - 1, lambda t, cur: bwd_step(S - 2 - t, cur),
                          ptr_final, unroll=4)

    return viterbi_kernel


def viterbi_decode(feats, mask, transitions, *, batch_tile=None):
    """feats: (B, S, L) f32, mask: (B, S) int, transitions: (L, L) f32 -> (B, S) int32.

    Assumes the standard contiguous (left-aligned) CRF mask, so it is fully
    described by the per-sequence lengths.
    """
    B, S, L = feats.shape
    f = jnp.transpose(feats, (1, 2, 0)).astype(jnp.float32)          # (S, L, B)
    lengths = jnp.sum(mask.astype(jnp.int32), axis=1)[None, :]       # (1, B)
    trans = transitions.astype(jnp.float32)
    transT = trans.T

    if batch_tile is None:
        batch_tile = B if B <= 128 else 128      # lane-width tiles over batch
    Bt = batch_tile
    nb = pl.cdiv(B, Bt)

    kernel = make_viterbi_kernel(S, L, Bt)
    out = pl.pallas_call(
        kernel,
        out_shape=jax.ShapeDtypeStruct((S, 1, B), jnp.int32),
        grid=(nb,),
        in_specs=[
            pl.BlockSpec((1, Bt), lambda i: (0, i)),           # lengths
            pl.BlockSpec((S, L, Bt), lambda i: (0, 0, i)),     # feats (batch-tiled)
            pl.BlockSpec((L, L), lambda i: (0, 0)),            # trans
            pl.BlockSpec((L, L), lambda i: (0, 0)),            # trans.T
        ],
        out_specs=pl.BlockSpec((S, 1, Bt), lambda i: (0, 0, i)),
        scratch_shapes=[pltpu.VMEM((S, L, Bt), jnp.int32)],    # back-pointers
        compiler_params=pltpu.CompilerParams(
            dimension_semantics=("parallel",),                 # batch tiles independent
            vmem_limit_bytes=32 * 1024 * 1024,
        ),
    )(lengths, f, trans, transT)
    return jnp.transpose(out[:, 0, :], (1, 0))                 # (B, S)


# ----------------------------------------------------------------------------
# Pure-numpy reference (literal translation of _viterbi_decode)
# ----------------------------------------------------------------------------
def viterbi_ref(feats, mask, trans):
    B, S, L = feats.shape
    lengths = mask.sum(axis=1).astype(np.int64)
    m = mask.T
    f = np.transpose(feats, (1, 0, 2)).astype(np.float32)
    init_var = trans[START, :][None, :] + f[0]
    best_scores = [init_var.copy()]
    best_ids = []
    for ind in range(1, S):
        scores = init_var[:, :, None] + trans[None] + f[ind][:, None, :]
        best_id = np.argmax(scores, axis=1)
        init_var = np.max(scores, axis=1)
        best_id = np.where(m[ind][:, None] != 0, best_id, 0)
        best_scores.append(init_var.copy())
        best_ids.append(best_id)
    part_hist = np.stack(best_scores, axis=0).transpose(1, 0, 2)
    last_pos = lengths - 1
    last_scores = part_hist[np.arange(B), last_pos]
    final = last_scores[:, :, None] + trans[None]
    last_best = np.argmax(final, axis=1)
    pointer = last_best[:, -1]
    best_ids.append(np.zeros((B, L), dtype=np.int64))
    back = np.stack(best_ids, axis=0).transpose(1, 0, 2).copy()
    back[np.arange(B), last_pos, :] = pointer[:, None]
    back = back.transpose(1, 0, 2)
    decode = np.zeros((S, B), dtype=np.int64)
    decode[-1] = pointer
    for idx in range(S - 2, -1, -1):
        pointer = back[idx][np.arange(B), pointer]
        decode[idx] = pointer
    return decode.T


if __name__ == "__main__":
    # Small synthetic label vocab (index 0 is the disallowed/pad label, as in __init__).
    labels = ["<unk>", "O",
              "B-PER", "I-PER", "E-PER", "S-PER",
              "B-LOC", "I-LOC", "E-LOC", "S-LOC"]
    trans_np = build_transitions(labels)              # (12, 12)

    B, S = 2, 8
    L = len(labels) + 2

    key = jax.random.PRNGKey(0)
    feats = jax.random.normal(key, (B, S, L), dtype=jnp.float32)
    lengths = np.array([S, 5])
    mask_np = (np.arange(S)[None, :] < lengths[:, None]).astype(np.int32)

    decode = viterbi_decode(feats, jnp.asarray(mask_np), jnp.asarray(trans_np))
    decode = jax.block_until_ready(decode)

    ref = viterbi_ref(np.asarray(feats), mask_np, trans_np)
    assert np.array_equal(np.asarray(decode), ref.astype(np.int32)), (decode, ref)

    print("KERNEL_OK")
</pallas_src>

<mosaic_0001>
module attributes {stable_mosaic.version = 11 : i64} {
  func.func @viterbi_kernel(%arg0: i32, %arg1: memref<1x2xi32, #tpu.memory_space<vmem>>, %arg2: memref<8x12x2xf32, #tpu.memory_space<vmem>>, %arg3: memref<12x12xf32, #tpu.memory_space<vmem>>, %arg4: memref<12x12xf32, #tpu.memory_space<vmem>>, %arg5: memref<8x1x2xi32, #tpu.memory_space<vmem>>, %arg6: memref<8x12x2xi32, #tpu.memory_space<vmem>>) attributes {dimension_semantics = [#tpu.dimension_semantics<parallel>], iteration_bounds = array<i64: 1>, scalar_prefetch = 0 : i64, scratch_operands = 1 : i64, tpu.core_type = #tpu.core_type<tc>, window_params = [{transform_indices = @transform_0, window_bounds = array<i64: 1, 2>}, {transform_indices = @transform_1, window_bounds = array<i64: 8, 12, 2>}, {pipeline_mode = #tpu.pipeline_mode<synchronous>, transform_indices = @transform_2, window_bounds = array<i64: 12, 12>}, {pipeline_mode = #tpu.pipeline_mode<synchronous>, transform_indices = @transform_3, window_bounds = array<i64: 12, 12>}, {transform_indices = @transform_4, window_bounds = array<i64: 8, 1, 2>}]} {
    %c0 = arith.constant 0 : index
    %c0_0 = arith.constant 0 : index
    %0 = vector.load %arg1[%c0, %c0_0] : memref<1x2xi32, #tpu.memory_space<vmem>>, vector<1x2xi32>
    %c1_i32 = arith.constant 1 : i32
    %1 = vector.broadcast %c1_i32 : i32 to vector<1x2xi32>
    %2 = arith.subi %0, %1 : vector<1x2xi32>
    %c0_1 = arith.constant 0 : index
    %c0_2 = arith.constant 0 : index
    %3 = vector.load %arg3[%c0_1, %c0_2] : memref<12x12xf32, #tpu.memory_space<vmem>>, vector<12x12xf32>
    %c0_3 = arith.constant 0 : index
    %c0_4 = arith.constant 0 : index
    %4 = vector.load %arg4[%c0_3, %c0_4] : memref<12x12xf32, #tpu.memory_space<vmem>>, vector<12x12xf32>
    %5 = vector.extract_strided_slice %4 {offsets = [0, 0], sizes = [12, 1], strides = [1, 1]} : vector<12x12xf32> to vector<12x1xf32>
    %6 = vector.extract_strided_slice %4 {offsets = [0, 1], sizes = [12, 1], strides = [1, 1]} : vector<12x12xf32> to vector<12x1xf32>
    %7 = vector.extract_strided_slice %4 {offsets = [0, 2], sizes = [12, 1], strides = [1, 1]} : vector<12x12xf32> to vector<12x1xf32>
    %8 = vector.extract_strided_slice %4 {offsets = [0, 3], sizes = [12, 1], strides = [1, 1]} : vector<12x12xf32> to vector<12x1xf32>
    %9 = vector.extract_strided_slice %4 {offsets = [0, 4], sizes = [12, 1], strides = [1, 1]} : vector<12x12xf32> to vector<12x1xf32>
    %10 = vector.extract_strided_slice %4 {offsets = [0, 5], sizes = [12, 1], strides = [1, 1]} : vector<12x12xf32> to vector<12x1xf32>
    %11 = vector.extract_strided_slice %4 {offsets = [0, 6], sizes = [12, 1], strides = [1, 1]} : vector<12x12xf32> to vector<12x1xf32>
    %12 = vector.extract_strided_slice %4 {offsets = [0, 7], sizes = [12, 1], strides = [1, 1]} : vector<12x12xf32> to vector<12x1xf32>
    %13 = vector.extract_strided_slice %4 {offsets = [0, 8], sizes = [12, 1], strides = [1, 1]} : vector<12x12xf32> to vector<12x1xf32>
    %14 = vector.extract_strided_slice %4 {offsets = [0, 9], sizes = [12, 1], strides = [1, 1]} : vector<12x12xf32> to vector<12x1xf32>
    %15 = vector.extract_strided_slice %4 {offsets = [0, 10], sizes = [12, 1], strides = [1, 1]} : vector<12x12xf32> to vector<12x1xf32>
    %16 = vector.extract_strided_slice %4 {offsets = [0, 11], sizes = [12, 1], strides = [1, 1]} : vector<12x12xf32> to vector<12x1xf32>
    %17 = vector.extract_strided_slice %4 {offsets = [0, 10], sizes = [12, 1], strides = [1, 1]} : vector<12x12xf32> to vector<12x1xf32>
    %18 = vector.extract_strided_slice %3 {offsets = [0, 11], sizes = [12, 1], strides = [1, 1]} : vector<12x12xf32> to vector<12x1xf32>
    %c0_5 = arith.constant 0 : index
    %c0_6 = arith.constant 0 : index
    %c0_7 = arith.constant 0 : index
    %19 = vector.load %arg2[%c0_5, %c0_6, %c0_7] : memref<8x12x2xf32, #tpu.memory_space<vmem>>, vector<1x12x2xf32>
    %20 = vector.shape_cast %19 : vector<1x12x2xf32> to vector<12x2xf32>
    %21 = vector.broadcast %17 : vector<12x1xf32> to vector<12x2xf32>
    %22 = arith.addf %21, %20 : vector<12x2xf32>
    %c1 = arith.constant 1 : index
    %c0_8 = arith.constant 0 : index
    %c0_9 = arith.constant 0 : index
    %23 = vector.load %arg2[%c1, %c0_8, %c0_9] : memref<8x12x2xf32, #tpu.memory_space<vmem>>, vector<1x12x2xf32>
    %24 = vector.shape_cast %23 : vector<1x12x2xf32> to vector<12x2xf32>
    %25 = vector.extract_strided_slice %22 {offsets = [0, 0], sizes = [1, 2], strides = [1, 1]} : vector<12x2xf32> to vector<1x2xf32>
    %26 = vector.broadcast %25 : vector<1x2xf32> to vector<12x2xf32>
    %27 = vector.broadcast %5 : vector<12x1xf32> to vector<12x2xf32>
    %28 = arith.addf %26, %27 : vector<12x2xf32>
    %29 = arith.addf %28, %24 : vector<12x2xf32>
    %c0_i32 = arith.constant 0 : i32
    %30 = vector.broadcast %c0_i32 : i32 to vector<12x2xi32>
    %31 = vector.extract_strided_slice %22 {offsets = [1, 0], sizes = [1, 2], strides = [1, 1]} : vector<12x2xf32> to vector<1x2xf32>
    %32 = vector.broadcast %31 : vector<1x2xf32> to vector<12x2xf32>
    %33 = vector.broadcast %6 : vector<12x1xf32> to vector<12x2xf32>
    %34 = arith.addf %32, %33 : vector<12x2xf32>
    %35 = arith.addf %34, %24 : vector<12x2xf32>
    %36 = arith.cmpf ogt, %35, %29 : vector<12x2xf32>
    %c1_i32_10 = arith.constant 1 : i32
    %37 = vector.broadcast %c1_i32_10 : i32 to vector<12x2xi32>
    %38 = arith.select %36, %37, %30 : vector<12x2xi1>, vector<12x2xi32>
    %39 = arith.select %36, %35, %29 : vector<12x2xi1>, vector<12x2xf32>
    %40 = vector.extract_strided_slice %22 {offsets = [2, 0], sizes = [1, 2], strides = [1, 1]} : vector<12x2xf32> to vector<1x2xf32>
    %41 = vector.broadcast %40 : vector<1x2xf32> to vector<12x2xf32>
    %42 = vector.broadcast %7 : vector<12x1xf32> to vector<12x2xf32>
    %43 = arith.addf %41, %42 : vector<12x2xf32>
    %44 = arith.addf %43, %24 : vector<12x2xf32>
    %45 = arith.cmpf ogt, %44, %39 : vector<12x2xf32>
    %c2_i32 = arith.constant 2 : i32
    %46 = vector.broadcast %c2_i32 : i32 to vector<12x2xi32>
    %47 = arith.select %45, %46, %38 : vector<12x2xi1>, vector<12x2xi32>
    %48 = arith.select %45, %44, %39 : vector<12x2xi1>, vector<12x2xf32>
    %49 = vector.extract_strided_slice %22 {offsets = [3, 0], sizes = [1, 2], strides = [1, 1]} : vector<12x2xf32> to vector<1x2xf32>
    %50 = vector.broadcast %49 : vector<1x2xf32> to vector<12x2xf32>
    %51 = vector.broadcast %8 : vector<12x1xf32> to vector<12x2xf32>
    %52 = arith.addf %50, %51 : vector<12x2xf32>
    %53 = arith.addf %52, %24 : vector<12x2xf32>
    %54 = arith.cmpf ogt, %53, %48 : vector<12x2xf32>
    %c3_i32 = arith.constant 3 : i32
    %55 = vector.broadcast %c3_i32 : i32 to vector<12x2xi32>
    %56 = arith.select %54, %55, %47 : vector<12x2xi1>, vector<12x2xi32>
    %57 = arith.select %54, %53, %48 : vector<12x2xi1>, vector<12x2xf32>
    %58 = vector.extract_strided_slice %22 {offsets = [4, 0], sizes = [1, 2], strides = [1, 1]} : vector<12x2xf32> to vector<1x2xf32>
    %59 = vector.broadcast %58 : vector<1x2xf32> to vector<12x2xf32>
    %60 = vector.broadcast %9 : vector<12x1xf32> to vector<12x2xf32>
    %61 = arith.addf %59, %60 : vector<12x2xf32>
    %62 = arith.addf %61, %24 : vector<12x2xf32>
    %63 = arith.cmpf ogt, %62, %57 : vector<12x2xf32>
    %c4_i32 = arith.constant 4 : i32
    %64 = vector.broadcast %c4_i32 : i32 to vector<12x2xi32>
    %65 = arith.select %63, %64, %56 : vector<12x2xi1>, vector<12x2xi32>
    %66 = arith.select %63, %62, %57 : vector<12x2xi1>, vector<12x2xf32>
    %67 = vector.extract_strided_slice %22 {offsets = [5, 0], sizes = [1, 2], strides = [1, 1]} : vector<12x2xf32> to vector<1x2xf32>
    %68 = vector.broadcast %67 : vector<1x2xf32> to vector<12x2xf32>
    %69 = vector.broadcast %10 : vector<12x1xf32> to vector<12x2xf32>
    %70 = arith.addf %68, %69 : vector<12x2xf32>
    %71 = arith.addf %70, %24 : vector<12x2xf32>
    %72 = arith.cmpf ogt, %71, %66 : vector<12x2xf32>
    %c5_i32 = arith.constant 5 : i32
    %73 = vector.broadcast %c5_i32 : i32 to vector<12x2xi32>
    %74 = arith.select %72, %73, %65 : vector<12x2xi1>, vector<12x2xi32>
    %75 = arith.select %72, %71, %66 : vector<12x2xi1>, vector<12x2xf32>
    %76 = vector.extract_strided_slice %22 {offsets = [6, 0], sizes = [1, 2], strides = [1, 1]} : vector<12x2xf32> to vector<1x2xf32>
    %77 = vector.broadcast %76 : vector<1x2xf32> to vector<12x2xf32>
    %78 = vector.broadcast %11 : vector<12x1xf32> to vector<12x2xf32>
    %79 = arith.addf %77, %78 : vector<12x2xf32>
    %80 = arith.addf %79, %24 : vector<12x2xf32>
    %81 = arith.cmpf ogt, %80, %75 : vector<12x2xf32>
    %c6_i32 = arith.constant 6 : i32
    %82 = vector.broadcast %c6_i32 : i32 to vector<12x2xi32>
    %83 = arith.select %81, %82, %74 : vector<12x2xi1>, vector<12x2xi32>
    %84 = arith.select %81, %80, %75 : vector<12x2xi1>, vector<12x2xf32>
    %85 = vector.extract_strided_slice %22 {offsets = [7, 0], sizes = [1, 2], strides = [1, 1]} : vector<12x2xf32> to vector<1x2xf32>
    %86 = vector.broadcast %85 : vector<1x2xf32> to vector<12x2xf32>
    %87 = vector.broadcast %12 : vector<12x1xf32> to vector<12x2xf32>
    %88 = arith.addf %86, %87 : vector<12x2xf32>
    %89 = arith.addf %88, %24 : vector<12x2xf32>
    %90 = arith.cmpf ogt, %89, %84 : vector<12x2xf32>
    %c7_i32 = arith.constant 7 : i32
    %91 = vector.broadcast %c7_i32 : i32 to vector<12x2xi32>
    %92 = arith.select %90, %91, %83 : vector<12x2xi1>, vector<12x2xi32>
    %93 = arith.select %90, %89, %84 : vector<12x2xi1>, vector<12x2xf32>
    %94 = vector.extract_strided_slice %22 {offsets = [8, 0], sizes = [1, 2], strides = [1, 1]} : vector<12x2xf32> to vector<1x2xf32>
    %95 = vector.broadcast %94 : vector<1x2xf32> to vector<12x2xf32>
    %96 = vector.broadcast %13 : vector<12x1xf32> to vector<12x2xf32>
    %97 = arith.addf %95, %96 : vector<12x2xf32>
    %98 = arith.addf %97, %24 : vector<12x2xf32>
    %99 = arith.cmpf ogt, %98, %93 : vector<12x2xf32>
    %c8_i32 = arith.constant 8 : i32
    %100 = vector.broadcast %c8_i32 : i32 to vector<12x2xi32>
    %101 = arith.select %99, %100, %92 : vector<12x2xi1>, vector<12x2xi32>
    %102 = arith.select %99, %98, %93 : vector<12x2xi1>, vector<12x2xf32>
    %103 = vector.extract_strided_slice %22 {offsets = [9, 0], sizes = [1, 2], strides = [1, 1]} : vector<12x2xf32> to vector<1x2xf32>
    %104 = vector.broadcast %103 : vector<1x2xf32> to vector<12x2xf32>
    %105 = vector.broadcast %14 : vector<12x1xf32> to vector<12x2xf32>
    %106 = arith.addf %104, %105 : vector<12x2xf32>
    %107 = arith.addf %106, %24 : vector<12x2xf32>
    %108 = arith.cmpf ogt, %107, %102 : vector<12x2xf32>
    %c9_i32 = arith.constant 9 : i32
    %109 = vector.broadcast %c9_i32 : i32 to vector<12x2xi32>
    %110 = arith.select %108, %109, %101 : vector<12x2xi1>, vector<12x2xi32>
    %111 = arith.select %108, %107, %102 : vector<12x2xi1>, vector<12x2xf32>
    %112 = vector.extract_strided_slice %22 {offsets = [10, 0], sizes = [1, 2], strides = [1, 1]} : vector<12x2xf32> to vector<1x2xf32>
    %113 = vector.broadcast %112 : vector<1x2xf32> to vector<12x2xf32>
    %114 = vector.broadcast %15 : vector<12x1xf32> to vector<12x2xf32>
    %115 = arith.addf %113, %114 : vector<12x2xf32>
    %116 = arith.addf %115, %24 : vector<12x2xf32>
    %117 = arith.cmpf ogt, %116, %111 : vector<12x2xf32>
    %c10_i32 = arith.constant 10 : i32
    %118 = vector.broadcast %c10_i32 : i32 to vector<12x2xi32>
    %119 = arith.select %117, %118, %110 : vector<12x2xi1>, vector<12x2xi32>
    %120 = arith.select %117, %116, %111 : vector<12x2xi1>, vector<12x2xf32>
    %121 = vector.extract_strided_slice %22 {offsets = [11, 0], sizes = [1, 2], strides = [1, 1]} : vector<12x2xf32> to vector<1x2xf32>
    %122 = vector.broadcast %121 : vector<1x2xf32> to vector<12x2xf32>
    %123 = vector.broadcast %16 : vector<12x1xf32> to vector<12x2xf32>
    %124 = arith.addf %122, %123 : vector<12x2xf32>
    %125 = arith.addf %124, %24 : vector<12x2xf32>
    %126 = arith.cmpf ogt, %125, %120 : vector<12x2xf32>
    %c11_i32 = arith.constant 11 : i32
    %127 = vector.broadcast %c11_i32 : i32 to vector<12x2xi32>
    %128 = arith.select %126, %127, %119 : vector<12x2xi1>, vector<12x2xi32>
    %129 = arith.select %126, %125, %120 : vector<12x2xi1>, vector<12x2xf32>
    %c1_i32_11 = arith.constant 1 : i32
    %130 = vector.broadcast %c1_i32_11 : i32 to vector<1x2xi32>
    %131 = arith.cmpi sgt, %0, %130 : vector<1x2xi32>
    %c0_i32_12 = arith.constant 0 : i32
    %132 = vector.shape_cast %131 : vector<1x2xi1> to vector<1x2xi1>
    %133 = vector.broadcast %132 : vector<1x2xi1> to vector<12x2xi1>
    %134 = vector.broadcast %c0_i32_12 : i32 to vector<12x2xi32>
    %135 = arith.select %133, %128, %134 : vector<12x2xi1>, vector<12x2xi32>
    %c0_13 = arith.constant 0 : index
    %c0_14 = arith.constant 0 : index
    %c0_15 = arith.constant 0 : index
    %136 = vector.load %arg6[%c0_13, %c0_14, %c0_15] : memref<8x12x2xi32, #tpu.memory_space<vmem>>, vector<1x12x2xi32>
    %137 = vector.shape_cast %136 : vector<1x12x2xi32> to vector<12x2xi32>
    %138 = vector.shape_cast %135 : vector<12x2xi32> to vector<1x12x2xi32>
    tpu.vector_store %arg6[%c0_13, %c0_14, %c0_15], %138 {strides = array<i32>} : memref<8x12x2xi32, #tpu.memory_space<vmem>>, vector<1x12x2xi32>,
    %c1_i32_16 = arith.constant 1 : i32
    %139 = vector.broadcast %c1_i32_16 : i32 to vector<1x2xi32>
    %140 = arith.cmpi eq, %2, %139 : vector<1x2xi32>
    %141 = vector.shape_cast %140 : vector<1x2xi1> to vector<1x2xi1>
    %142 = vector.broadcast %141 : vector<1x2xi1> to vector<12x2xi1>
    %143 = arith.select %142, %129, %22 : vector<12x2xi1>, vector<12x2xf32>
    %c2 = arith.constant 2 : index
    %c0_17 = arith.constant 0 : index
    %c0_18 = arith.constant 0 : index
    %144 = vector.load %arg2[%c2, %c0_17, %c0_18] : memref<8x12x2xf32, #tpu.memory_space<vmem>>, vector<1x12x2xf32>
    %145 = vector.shape_cast %144 : vector<1x12x2xf32> to vector<12x2xf32>
    %146 = vector.extract_strided_slice %129 {offsets = [0, 0], sizes = [1, 2], strides = [1, 1]} : vector<12x2xf32> to vector<1x2xf32>
    %147 = vector.broadcast %146 : vector<1x2xf32> to vector<12x2xf32>
    %148 = vector.broadcast %5 : vector<12x1xf32> to vector<12x2xf32>
    %149 = arith.addf %147, %148 : vector<12x2xf32>
    %150 = arith.addf %149, %145 : vector<12x2xf32>
    %c0_i32_19 = arith.constant 0 : i32
    %151 = vector.broadcast %c0_i32_19 : i32 to vector<12x2xi32>
    %152 = vector.extract_strided_slice %129 {offsets = [1, 0], sizes = [1, 2], strides = [1, 1]} : vector<12x2xf32> to vector<1x2xf32>
    %153 = vector.broadcast %152 : vector<1x2xf32> to vector<12x2xf32>
    %154 = vector.broadcast %6 : vector<12x1xf32> to vector<12x2xf32>
    %155 = arith.addf %153, %154 : vector<12x2xf32>
    %156 = arith.addf %155, %145 : vector<12x2xf32>
    %157 = arith.cmpf ogt, %156, %150 : vector<12x2xf32>
    %c1_i32_20 = arith.constant 1 : i32
    %158 = vector.broadcast %c1_i32_20 : i32 to vector<12x2xi32>
    %159 = arith.select %157, %158, %151 : vector<12x2xi1>, vector<12x2xi32>
    %160 = arith.select %157, %156, %150 : vector<12x2xi1>, vector<12x2xf32>
    %161 = vector.extract_strided_slice %129 {offsets = [2, 0], sizes = [1, 2], strides = [1, 1]} : vector<12x2xf32> to vector<1x2xf32>
    %162 = vector.broadcast %161 : vector<1x2xf32> to vector<12x2xf32>
    %163 = vector.broadcast %7 : vector<12x1xf32> to vector<12x2xf32>
    %164 = arith.addf %162, %163 : vector<12x2xf32>
    %165 = arith.addf %164, %145 : vector<12x2xf32>
    %166 = arith.cmpf ogt, %165, %160 : vector<12x2xf32>
    %c2_i32_21 = arith.constant 2 : i32
    %167 = vector.broadcast %c2_i32_21 : i32 to vector<12x2xi32>
    %168 = arith.select %166, %167, %159 : vector<12x2xi1>, vector<12x2xi32>
    %169 = arith.select %166, %165, %160 : vector<12x2xi1>, vector<12x2xf32>
    %170 = vector.extract_strided_slice %129 {offsets = [3, 0], sizes = [1, 2], strides = [1, 1]} : vector<12x2xf32> to vector<1x2xf32>
    %171 = vector.broadcast %170 : vector<1x2xf32> to vector<12x2xf32>
    %172 = vector.broadcast %8 : vector<12x1xf32> to vector<12x2xf32>
    %173 = arith.addf %171, %172 : vector<12x2xf32>
    %174 = arith.addf %173, %145 : vector<12x2xf32>
    %175 = arith.cmpf ogt, %174, %169 : vector<12x2xf32>
    %c3_i32_22 = arith.constant 3 : i32
    %176 = vector.broadcast %c3_i32_22 : i32 to vector<12x2xi32>
    %177 = arith.select %175, %176, %168 : vector<12x2xi1>, vector<12x2xi32>
    %178 = arith.select %175, %174, %169 : vector<12x2xi1>, vector<12x2xf32>
    %179 = vector.extract_strided_slice %129 {offsets = [4, 0], sizes = [1, 2], strides = [1, 1]} : vector<12x2xf32> to vector<1x2xf32>
    %180 = vector.broadcast %179 : vector<1x2xf32> to vector<12x2xf32>
    %181 = vector.broadcast %9 : vector<12x1xf32> to vector<12x2xf32>
    %182 = arith.addf %180, %181 : vector<12x2xf32>
    %183 = arith.addf %182, %145 : vector<12x2xf32>
    %184 = arith.cmpf ogt, %183, %178 : vector<12x2xf32>
    %c4_i32_23 = arith.constant 4 : i32
    %185 = vector.broadcast %c4_i32_23 : i32 to vector<12x2xi32>
    %186 = arith.select %184, %185, %177 : vector<12x2xi1>, vector<12x2xi32>
    %187 = arith.select %184, %183, %178 : vector<12x2xi1>, vector<12x2xf32>
    %188 = vector.extract_strided_slice %129 {offsets = [5, 0], sizes = [1, 2], strides = [1, 1]} : vector<12x2xf32> to vector<1x2xf32>
    %189 = vector.broadcast %188 : vector<1x2xf32> to vector<12x2xf32>
    %190 = vector.broadcast %10 : vector<12x1xf32> to vector<12x2xf32>
    %191 = arith.addf %189, %190 : vector<12x2xf32>
    %192 = arith.addf %191, %145 : vector<12x2xf32>
    %193 = arith.cmpf ogt, %192, %187 : vector<12x2xf32>
    %c5_i32_24 = arith.constant 5 : i32
    %194 = vector.broadcast %c5_i32_24 : i32 to vector<12x2xi32>
    %195 = arith.select %193, %194, %186 : vector<12x2xi1>, vector<12x2xi32>
    %196 = arith.select %193, %192, %187 : vector<12x2xi1>, vector<12x2xf32>
    %197 = vector.extract_strided_slice %129 {offsets = [6, 0], sizes = [1, 2], strides = [1, 1]} : vector<12x2xf32> to vector<1x2xf32>
    %198 = vector.broadcast %197 : vector<1x2xf32> to vector<12x2xf32>
    %199 = vector.broadcast %11 : vector<12x1xf32> to vector<12x2xf32>
    %200 = arith.addf %198, %199 : vector<12x2xf32>
    %201 = arith.addf %200, %145 : vector<12x2xf32>
    %202 = arith.cmpf ogt, %201, %196 : vector<12x2xf32>
    %c6_i32_25 = arith.constant 6 : i32
    %203 = vector.broadcast %c6_i32_25 : i32 to vector<12x2xi32>
    %204 = arith.select %202, %203, %195 : vector<12x2xi1>, vector<12x2xi32>
    %205 = arith.select %202, %201, %196 : vector<12x2xi1>, vector<12x2xf32>
    %206 = vector.extract_strided_slice %129 {offsets = [7, 0], sizes = [1, 2], strides = [1, 1]} : vector<12x2xf32> to vector<1x2xf32>
    %207 = vector.broadcast %206 : vector<1x2xf32> to vector<12x2xf32>
    %208 = vector.broadcast %12 : vector<12x1xf32> to vector<12x2xf32>
    %209 = arith.addf %207, %208 : vector<12x2xf32>
    %210 = arith.addf %209, %145 : vector<12x2xf32>
    %211 = arith.cmpf ogt, %210, %205 : vector<12x2xf32>
    %c7_i32_26 = arith.constant 7 : i32
    %212 = vector.broadcast %c7_i32_26 : i32 to vector<12x2xi32>
    %213 = arith.select %211, %212, %204 : vector<12x2xi1>, vector<12x2xi32>
    %214 = arith.select %211, %210, %205 : vector<12x2xi1>, vector<12x2xf32>
    %215 = vector.extract_strided_slice %129 {offsets = [8, 0], sizes = [1, 2], strides = [1, 1]} : vector<12x2xf32> to vector<1x2xf32>
    %216 = vector.broadcast %215 : vector<1x2xf32> to vector<12x2xf32>
    %217 = vector.broadcast %13 : vector<12x1xf32> to vector<12x2xf32>
    %218 = arith.addf %216, %217 : vector<12x2xf32>
    %219 = arith.addf %218, %145 : vector<12x2xf32>
    %220 = arith.cmpf ogt, %219, %214 : vector<12x2xf32>
    %c8_i32_27 = arith.constant 8 : i32
    %221 = vector.broadcast %c8_i32_27 : i32 to vector<12x2xi32>
    %222 = arith.select %220, %221, %213 : vector<12x2xi1>, vector<12x2xi32>
    %223 = arith.select %220, %219, %214 : vector<12x2xi1>, vector<12x2xf32>
    %224 = vector.extract_strided_slice %129 {offsets = [9, 0], sizes = [1, 2], strides = [1, 1]} : vector<12x2xf32> to vector<1x2xf32>
    %225 = vector.broadcast %224 : vector<1x2xf32> to vector<12x2xf32>
    %226 = vector.broadcast %14 : vector<12x1xf32> to vector<12x2xf32>
    %227 = arith.addf %225, %226 : vector<12x2xf32>
    %228 = arith.addf %227, %145 : vector<12x2xf32>
    %229 = arith.cmpf ogt, %228, %223 : vector<12x2xf32>
    %c9_i32_28 = arith.constant 9 : i32
    %230 = vector.broadcast %c9_i32_28 : i32 to vector<12x2xi32>
    %231 = arith.select %229, %230, %222 : vector<12x2xi1>, vector<12x2xi32>
    %232 = arith.select %229, %228, %223 : vector<12x2xi1>, vector<12x2xf32>
    %233 = vector.extract_strided_slice %129 {offsets = [10, 0], sizes = [1, 2], strides = [1, 1]} : vector<12x2xf32> to vector<1x2xf32>
    %234 = vector.broadcast %233 : vector<1x2xf32> to vector<12x2xf32>
    %235 = vector.broadcast %15 : vector<12x1xf32> to vector<12x2xf32>
    %236 = arith.addf %234, %235 : vector<12x2xf32>
    %237 = arith.addf %236, %145 : vector<12x2xf32>
    %238 = arith.cmpf ogt, %237, %232 : vector<12x2xf32>
    %c10_i32_29 = arith.constant 10 : i32
    %239 = vector.broadcast %c10_i32_29 : i32 to vector<12x2xi32>
    %240 = arith.select %238, %239, %231 : vector<12x2xi1>, vector<12x2xi32>
    %241 = arith.select %238, %237, %232 : vector<12x2xi1>, vector<12x2xf32>
    %242 = vector.extract_strided_slice %129 {offsets = [11, 0], sizes = [1, 2], strides = [1, 1]} : vector<12x2xf32> to vector<1x2xf32>
    %243 = vector.broadcast %242 : vector<1x2xf32> to vector<12x2xf32>
    %244 = vector.broadcast %16 : vector<12x1xf32> to vector<12x2xf32>
    %245 = arith.addf %243, %244 : vector<12x2xf32>
    %246 = arith.addf %245, %145 : vector<12x2xf32>
    %247 = arith.cmpf ogt, %246, %241 : vector<12x2xf32>
    %c11_i32_30 = arith.constant 11 : i32
    %248 = vector.broadcast %c11_i32_30 : i32 to vector<12x2xi32>
    %249 = arith.select %247, %248, %240 : vector<12x2xi1>, vector<12x2xi32>
    %250 = arith.select %247, %246, %241 : vector<12x2xi1>, vector<12x2xf32>
    %c2_i32_31 = arith.constant 2 : i32
    %251 = vector.broadcast %c2_i32_31 : i32 to vector<1x2xi32>
    %252 = arith.cmpi sgt, %0, %251 : vector<1x2xi32>
    %c0_i32_32 = arith.constant 0 : i32
    %253 = vector.shape_cast %252 : vector<1x2xi1> to vector<1x2xi1>
    %254 = vector.broadcast %253 : vector<1x2xi1> to vector<12x2xi1>
    %255 = vector.broadcast %c0_i32_32 : i32 to vector<12x2xi32>
    %256 = arith.select %254, %249, %255 : vector<12x2xi1>, vector<12x2xi32>
    %c1_33 = arith.constant 1 : index
    %c0_34 = arith.constant 0 : index
    %c0_35 = arith.constant 0 : index
    %257 = vector.load %arg6[%c1_33, %c0_34, %c0_35] : memref<8x12x2xi32, #tpu.memory_space<vmem>>, vector<1x12x2xi32>
    %258 = vector.shape_cast %257 : vector<1x12x2xi32> to vector<12x2xi32>
    %259 = vector.shape_cast %256 : vector<12x2xi32> to vector<1x12x2xi32>
    tpu.vector_store %arg6[%c1_33, %c0_34, %c0_35], %259 {strides = array<i32>} : memref<8x12x2xi32, #tpu.memory_space<vmem>>, vector<1x12x2xi32>,
    %c2_i32_36 = arith.constant 2 : i32
    %260 = vector.broadcast %c2_i32_36 : i32 to vector<1x2xi32>
    %261 = arith.cmpi eq, %2, %260 : vector<1x2xi32>
    %262 = vector.shape_cast %261 : vector<1x2xi1> to vector<1x2xi1>
    %263 = vector.broadcast %262 : vector<1x2xi1> to vector<12x2xi1>
    %264 = arith.select %263, %250, %143 : vector<12x2xi1>, vector<12x2xf32>
    %c3 = arith.constant 3 : index
    %c0_37 = arith.constant 0 : index
    %c0_38 = arith.constant 0 : index
    %265 = vector.load %arg2[%c3, %c0_37, %c0_38] : memref<8x12x2xf32, #tpu.memory_space<vmem>>, vector<1x12x2xf32>
    %266 = vector.shape_cast %265 : vector<1x12x2xf32> to vector<12x2xf32>
    %267 = vector.extract_strided_slice %250 {offsets = [0, 0], sizes = [1, 2], strides = [1, 1]} : vector<12x2xf32> to vector<1x2xf32>
    %268 = vector.broadcast %267 : vector<1x2xf32> to vector<12x2xf32>
    %269 = vector.broadcast %5 : vector<12x1xf32> to vector<12x2xf32>
    %270 = arith.addf %268, %269 : vector<12x2xf32>
    %271 = arith.addf %270, %266 : vector<12x2xf32>
    %c0_i32_39 = arith.constant 0 : i32
    %272 = vector.broadcast %c0_i32_39 : i32 to vector<12x2xi32>
    %273 = vector.extract_strided_slice %250 {offsets = [1, 0], sizes = [1, 2], strides = [1, 1]} : vector<12x2xf32> to vector<1x2xf32>
    %274 = vector.broadcast %273 : vector<1x2xf32> to vector<12x2xf32>
    %275 = vector.broadcast %6 : vector<12x1xf32> to vector<12x2xf32>
    %276 = arith.addf %274, %275 : vector<12x2xf32>
    %277 = arith.addf %276, %266 : vector<12x2xf32>
    %278 = arith.cmpf ogt, %277, %271 : vector<12x2xf32>
    %c1_i32_40 = arith.constant 1 : i32
    %279 = vector.broadcast %c1_i32_40 : i32 to vector<12x2xi32>
    %280 = arith.select %278, %279, %272 : vector<12x2xi1>, vector<12x2xi32>
    %281 = arith.select %278, %277, %271 : vector<12x2xi1>, vector<12x2xf32>
    %282 = vector.extract_strided_slice %250 {offsets = [2, 0], sizes = [1, 2], strides = [1, 1]} : vector<12x2xf32> to vector<1x2xf32>
    %283 = vector.broadcast %282 : vector<1x2xf32> to vector<12x2xf32>
    %284 = vector.broadcast %7 : vector<12x1xf32> to vector<12x2xf32>
    %285 = arith.addf %283, %284 : vector<12x2xf32>
    %286 = arith.addf %285, %266 : vector<12x2xf32>
    %287 = arith.cmpf ogt, %286, %281 : vector<12x2xf32>
    %c2_i32_41 = arith.constant 2 : i32
    %288 = vector.broadcast %c2_i32_41 : i32 to vector<12x2xi32>
    %289 = arith.select %287, %288, %280 : vector<12x2xi1>, vector<12x2xi32>
    %290 = arith.select %287, %286, %281 : vector<12x2xi1>, vector<12x2xf32>
    %291 = vector.extract_strided_slice %250 {offsets = [3, 0], sizes = [1, 2], strides = [1, 1]} : vector<12x2xf32> to vector<1x2xf32>
    %292 = vector.broadcast %291 : vector<1x2xf32> to vector<12x2xf32>
    %293 = vector.broadcast %8 : vector<12x1xf32> to vector<12x2xf32>
    %294 = arith.addf %292, %293 : vector<12x2xf32>
    %295 = arith.addf %294, %266 : vector<12x2xf32>
    %296 = arith.cmpf ogt, %295, %290 : vector<12x2xf32>
    %c3_i32_42 = arith.constant 3 : i32
    %297 = vector.broadcast %c3_i32_42 : i32 to vector<12x2xi32>
    %298 = arith.select %296, %297, %289 : vector<12x2xi1>, vector<12x2xi32>
    %299 = arith.select %296, %295, %290 : vector<12x2xi1>, vector<12x2xf32>
    %300 = vector.extract_strided_slice %250 {offsets = [4, 0], sizes = [1, 2], strides = [1, 1]} : vector<12x2xf32> to vector<1x2xf32>
    %301 = vector.broadcast %300 : vector<1x2xf32> to vector<12x2xf32>
    %302 = vector.broadcast %9 : vector<12x1xf32> to vector<12x2xf32>
    %303 = arith.addf %301, %302 : vector<12x2xf32>
    %304 = arith.addf %303, %266 : vector<12x2xf32>
    %305 = arith.cmpf ogt, %304, %299 : vector<12x2xf32>
    %c4_i32_43 = arith.constant 4 : i32
    %306 = vector.broadcast %c4_i32_43 : i32 to vector<12x2xi32>
    %307 = arith.select %305, %306, %298 : vector<12x2xi1>, vector<12x2xi32>
    %308 = arith.select %305, %304, %299 : vector<12x2xi1>, vector<12x2xf32>
    %309 = vector.extract_strided_slice %250 {offsets = [5, 0], sizes = [1, 2], strides = [1, 1]} : vector<12x2xf32> to vector<1x2xf32>
    %310 = vector.broadcast %309 : vector<1x2xf32> to vector<12x2xf32>
    %311 = vector.broadcast %10 : vector<12x1xf32> to vector<12x2xf32>
    %312 = arith.addf %310, %311 : vector<12x2xf32>
    %313 = arith.addf %312, %266 : vector<12x2xf32>
    %314 = arith.cmpf ogt, %313, %308 : vector<12x2xf32>
    %c5_i32_44 = arith.constant 5 : i32
    %315 = vector.broadcast %c5_i32_44 : i32 to vector<12x2xi32>
    %316 = arith.select %314, %315, %307 : vector<12x2xi1>, vector<12x2xi32>
    %317 = arith.select %314, %313, %308 : vector<12x2xi1>, vector<12x2xf32>
    %318 = vector.extract_strided_slice %250 {offsets = [6, 0], sizes = [1, 2], strides = [1, 1]} : vector<12x2xf32> to vector<1x2xf32>
    %319 = vector.broadcast %318 : vector<1x2xf32> to vector<12x2xf32>
    %320 = vector.broadcast %11 : vector<12x1xf32> to vector<12x2xf32>
    %321 = arith.addf %319, %320 : vector<12x2xf32>
    %322 = arith.addf %321, %266 : vector<12x2xf32>
    %323 = arith.cmpf ogt, %322, %317 : vector<12x2xf32>
    %c6_i32_45 = arith.constant 6 : i32
    %324 = vector.broadcast %c6_i32_45 : i32 to vector<12x2xi32>
    %325 = arith.select %323, %324, %316 : vector<12x2xi1>, vector<12x2xi32>
    %326 = arith.select %323, %322, %317 : vector<12x2xi1>, vector<12x2xf32>
    %327 = vector.extract_strided_slice %250 {offsets = [7, 0], sizes = [1, 2], strides = [1, 1]} : vector<12x2xf32> to vector<1x2xf32>
    %328 = vector.broadcast %327 : vector<1x2xf32> to vector<12x2xf32>
    %329 = vector.broadcast %12 : vector<12x1xf32> to vector<12x2xf32>
    %330 = arith.addf %328, %329 : vector<12x2xf32>
    %331 = arith.addf %330, %266 : vector<12x2xf32>
    %332 = arith.cmpf ogt, %331, %326 : vector<12x2xf32>
    %c7_i32_46 = arith.constant 7 : i32
    %333 = vector.broadcast %c7_i32_46 : i32 to vector<12x2xi32>
    %334 = arith.select %332, %333, %325 : vector<12x2xi1>, vector<12x2xi32>
    %335 = arith.select %332, %331, %326 : vector<12x2xi1>, vector<12x2xf32>
    %336 = vector.extract_strided_slice %250 {offsets = [8, 0], sizes = [1, 2], strides = [1, 1]} : vector<12x2xf32> to vector<1x2xf32>
    %337 = vector.broadcast %336 : vector<1x2xf32> to vector<12x2xf32>
    %338 = vector.broadcast %13 : vector<12x1xf32> to vector<12x2xf32>
    %339 = arith.addf %337, %338 : vector<12x2xf32>
    %340 = arith.addf %339, %266 : vector<12x2xf32>
    %341 = arith.cmpf ogt, %340, %335 : vector<12x2xf32>
    %c8_i32_47 = arith.constant 8 : i32
    %342 = vector.broadcast %c8_i32_47 : i32 to vector<12x2xi32>
    %343 = arith.select %341, %342, %334 : vector<12x2xi1>, vector<12x2xi32>
    %344 = arith.select %341, %340, %335 : vector<12x2xi1>, vector<12x2xf32>
    %345 = vector.extract_strided_slice %250 {offsets = [9, 0], sizes = [1, 2], strides = [1, 1]} : vector<12x2xf32> to vector<1x2xf32>
    %346 = vector.broadcast %345 : vector<1x2xf32> to vector<12x2xf32>
    %347 = vector.broadcast %14 : vector<12x1xf32> to vector<12x2xf32>
    %348 = arith.addf %346, %347 : vector<12x2xf32>
    %349 = arith.addf %348, %266 : vector<12x2xf32>
    %350 = arith.cmpf ogt, %349, %344 : vector<12x2xf32>
    %c9_i32_48 = arith.constant 9 : i32
    %351 = vector.broadcast %c9_i32_48 : i32 to vector<12x2xi32>
    %352 = arith.select %350, %351, %343 : vector<12x2xi1>, vector<12x2xi32>
    %353 = arith.select %350, %349, %344 : vector<12x2xi1>, vector<12x2xf32>
    %354 = vector.extract_strided_slice %250 {offsets = [10, 0], sizes = [1, 2], strides = [1, 1]} : vector<12x2xf32> to vector<1x2xf32>
    %355 = vector.broadcast %354 : vector<1x2xf32> to vector<12x2xf32>
    %356 = vector.broadcast %15 : vector<12x1xf32> to vector<12x2xf32>
    %357 = arith.addf %355, %356 : vector<12x2xf32>
    %358 = arith.addf %357, %266 : vector<12x2xf32>
    %359 = arith.cmpf ogt, %358, %353 : vector<12x2xf32>
    %c10_i32_49 = arith.constant 10 : i32
    %360 = vector.broadcast %c10_i32_49 : i32 to vector<12x2xi32>
    %361 = arith.select %359, %360, %352 : vector<12x2xi1>, vector<12x2xi32>
    %362 = arith.select %359, %358, %353 : vector<12x2xi1>, vector<12x2xf32>
    %363 = vector.extract_strided_slice %250 {offsets = [11, 0], sizes = [1, 2], strides = [1, 1]} : vector<12x2xf32> to vector<1x2xf32>
    %364 = vector.broadcast %363 : vector<1x2xf32> to vector<12x2xf32>
    %365 = vector.broadcast %16 : vector<12x1xf32> to vector<12x2xf32>
    %366 = arith.addf %364, %365 : vector<12x2xf32>
    %367 = arith.addf %366, %266 : vector<12x2xf32>
    %368 = arith.cmpf ogt, %367, %362 : vector<12x2xf32>
    %c11_i32_50 = arith.constant 11 : i32
    %369 = vector.broadcast %c11_i32_50 : i32 to vector<12x2xi32>
    %370 = arith.select %368, %369, %361 : vector<12x2xi1>, vector<12x2xi32>
    %371 = arith.select %368, %367, %362 : vector<12x2xi1>, vector<12x2xf32>
    %c3_i32_51 = arith.constant 3 : i32
    %372 = vector.broadcast %c3_i32_51 : i32 to vector<1x2xi32>
    %373 = arith.cmpi sgt, %0, %372 : vector<1x2xi32>
    %c0_i32_52 = arith.constant 0 : i32
    %374 = vector.shape_cast %373 : vector<1x2xi1> to vector<1x2xi1>
    %375 = vector.broadcast %374 : vector<1x2xi1> to vector<12x2xi1>
    %376 = vector.broadcast %c0_i32_52 : i32 to vector<12x2xi32>
    %377 = arith.select %375, %370, %376 : vector<12x2xi1>, vector<12x2xi32>
    %c2_53 = arith.constant 2 : index
    %c0_54 = arith.constant 0 : index
    %c0_55 = arith.constant 0 : index
    %378 = vector.load %arg6[%c2_53, %c0_54, %c0_55] : memref<8x12x2xi32, #tpu.memory_space<vmem>>, vector<1x12x2xi32>
    %379 = vector.shape_cast %378 : vector<1x12x2xi32> to vector<12x2xi32>
    %380 = vector.shape_cast %377 : vector<12x2xi32> to vector<1x12x2xi32>
    tpu.vector_store %arg6[%c2_53, %c0_54, %c0_55], %380 {strides = array<i32>} : memref<8x12x2xi32, #tpu.memory_space<vmem>>, vector<1x12x2xi32>,
    %c3_i32_56 = arith.constant 3 : i32
    %381 = vector.broadcast %c3_i32_56 : i32 to vector<1x2xi32>
    %382 = arith.cmpi eq, %2, %381 : vector<1x2xi32>
    %383 = vector.shape_cast %382 : vector<1x2xi1> to vector<1x2xi1>
    %384 = vector.broadcast %383 : vector<1x2xi1> to vector<12x2xi1>
    %385 = arith.select %384, %371, %264 : vector<12x2xi1>, vector<12x2xf32>
    %c4 = arith.constant 4 : index
    %c0_57 = arith.constant 0 : index
    %c0_58 = arith.constant 0 : index
    %386 = vector.load %arg2[%c4, %c0_57, %c0_58] : memref<8x12x2xf32, #tpu.memory_space<vmem>>, vector<1x12x2xf32>
    %387 = vector.shape_cast %386 : vector<1x12x2xf32> to vector<12x2xf32>
    %388 = vector.extract_strided_slice %371 {offsets = [0, 0], sizes = [1, 2], strides = [1, 1]} : vector<12x2xf32> to vector<1x2xf32>
    %389 = vector.broadcast %388 : vector<1x2xf32> to vector<12x2xf32>
    %390 = vector.broadcast %5 : vector<12x1xf32> to vector<12x2xf32>
    %391 = arith.addf %389, %390 : vector<12x2xf32>
    %392 = arith.addf %391, %387 : vector<12x2xf32>
    %c0_i32_59 = arith.constant 0 : i32
    %393 = vector.broadcast %c0_i32_59 : i32 to vector<12x2xi32>
    %394 = vector.extract_strided_slice %371 {offsets = [1, 0], sizes = [1, 2], strides = [1, 1]} : vector<12x2xf32> to vector<1x2xf32>
    %395 = vector.broadcast %394 : vector<1x2xf32> to vector<12x2xf32>
    %396 = vector.broadcast %6 : vector<12x1xf32> to vector<12x2xf32>
    %397 = arith.addf %395, %396 : vector<12x2xf32>
    %398 = arith.addf %397, %387 : vector<12x2xf32>
    %399 = arith.cmpf ogt, %398, %392 : vector<12x2xf32>
    %c1_i32_60 = arith.constant 1 : i32
    %400 = vector.broadcast %c1_i32_60 : i32 to vector<12x2xi32>
    %401 = arith.select %399, %400, %393 : vector<12x2xi1>, vector<12x2xi32>
    %402 = arith.select %399, %398, %392 : vector<12x2xi1>, vector<12x2xf32>
    %403 = vector.extract_strided_slice %371 {offsets = [2, 0], sizes = [1, 2], strides = [1, 1]} : vector<12x2xf32> to vector<1x2xf32>
    %404 = vector.broadcast %403 : vector<1x2xf32> to vector<12x2xf32>
    %405 = vector.broadcast %7 : vector<12x1xf32> to vector<12x2xf32>
    %406 = arith.addf %404, %405 : vector<12x2xf32>
    %407 = arith.addf %406, %387 : vector<12x2xf32>
    %408 = arith.cmpf ogt, %407, %402 : vector<12x2xf32>
    %c2_i32_61 = arith.constant 2 : i32
    %409 = vector.broadcast %c2_i32_61 : i32 to vector<12x2xi32>
    %410 = arith.select %408, %409, %401 : vector<12x2xi1>, vector<12x2xi32>
    %411 = arith.select %408, %407, %402 : vector<12x2xi1>, vector<12x2xf32>
    %412 = vector.extract_strided_slice %371 {offsets = [3, 0], sizes = [1, 2], strides = [1, 1]} : vector<12x2xf32> to vector<1x2xf32>
    %413 = vector.broadcast %412 : vector<1x2xf32> to vector<12x2xf32>
    %414 = vector.broadcast %8 : vector<12x1xf32> to vector<12x2xf32>
    %415 = arith.addf %413, %414 : vector<12x2xf32>
    %416 = arith.addf %415, %387 : vector<12x2xf32>
    %417 = arith.cmpf ogt, %416, %411 : vector<12x2xf32>
    %c3_i32_62 = arith.constant 3 : i32
    %418 = vector.broadcast %c3_i32_62 : i32 to vector<12x2xi32>
    %419 = arith.select %417, %418, %410 : vector<12x2xi1>, vector<12x2xi32>
    %420 = arith.select %417, %416, %411 : vector<12x2xi1>, vector<12x2xf32>
    %421 = vector.extract_strided_slice %371 {offsets = [4, 0], sizes = [1, 2], strides = [1, 1]} : vector<12x2xf32> to vector<1x2xf32>
    %422 = vector.broadcast %421 : vector<1x2xf32> to vector<12x2xf32>
    %423 = vector.broadcast %9 : vector<12x1xf32> to vector<12x2xf32>
    %424 = arith.addf %422, %423 : vector<12x2xf32>
    %425 = arith.addf %424, %387 : vector<12x2xf32>
    %426 = arith.cmpf ogt, %425, %420 : vector<12x2xf32>
    %c4_i32_63 = arith.constant 4 : i32
    %427 = vector.broadcast %c4_i32_63 : i32 to vector<12x2xi32>
    %428 = arith.select %426, %427, %419 : vector<12x2xi1>, vector<12x2xi32>
    %429 = arith.select %426, %425, %420 : vector<12x2xi1>, vector<12x2xf32>
    %430 = vector.extract_strided_slice %371 {offsets = [5, 0], sizes = [1, 2], strides = [1, 1]} : vector<12x2xf32> to vector<1x2xf32>
    %431 = vector.broadcast %430 : vector<1x2xf32> to vector<12x2xf32>
    %432 = vector.broadcast %10 : vector<12x1xf32> to vector<12x2xf32>
    %433 = arith.addf %431, %432 : vector<12x2xf32>
    %434 = arith.addf %433, %387 : vector<12x2xf32>
    %435 = arith.cmpf ogt, %434, %429 : vector<12x2xf32>
    %c5_i32_64 = arith.constant 5 : i32
    %436 = vector.broadcast %c5_i32_64 : i32 to vector<12x2xi32>
    %437 = arith.select %435, %436, %428 : vector<12x2xi1>, vector<12x2xi32>
    %438 = arith.select %435, %434, %429 : vector<12x2xi1>, vector<12x2xf32>
    %439 = vector.extract_strided_slice %371 {offsets = [6, 0], sizes = [1, 2], strides = [1, 1]} : vector<12x2xf32> to vector<1x2xf32>
    %440 = vector.broadcast %439 : vector<1x2xf32> to vector<12x2xf32>
    %441 = vector.broadcast %11 : vector<12x1xf32> to vector<12x2xf32>
    %442 = arith.addf %440, %441 : vector<12x2xf32>
    %443 = arith.addf %442, %387 : vector<12x2xf32>
    %444 = arith.cmpf ogt, %443, %438 : vector<12x2xf32>
    %c6_i32_65 = arith.constant 6 : i32
    %445 = vector.broadcast %c6_i32_65 : i32 to vector<12x2xi32>
    %446 = arith.select %444, %445, %437 : vector<12x2xi1>, vector<12x2xi32>
    %447 = arith.select %444, %443, %438 : vector<12x2xi1>, vector<12x2xf32>
    %448 = vector.extract_strided_slice %371 {offsets = [7, 0], sizes = [1, 2], strides = [1, 1]} : vector<12x2xf32> to vector<1x2xf32>
    %449 = vector.broadcast %448 : vector<1x2xf32> to vector<12x2xf32>
    %450 = vector.broadcast %12 : vector<12x1xf32> to vector<12x2xf32>
    %451 = arith.addf %449, %450 : vector<12x2xf32>
    %452 = arith.addf %451, %387 : vector<12x2xf32>
    %453 = arith.cmpf ogt, %452, %447 : vector<12x2xf32>
    %c7_i32_66 = arith.constant 7 : i32
    %454 = vector.broadcast %c7_i32_66 : i32 to vector<12x2xi32>
    %455 = arith.select %453, %454, %446 : vector<12x2xi1>, vector<12x2xi32>
    %456 = arith.select %453, %452, %447 : vector<12x2xi1>, vector<12x2xf32>
    %457 = vector.extract_strided_slice %371 {offsets = [8, 0], sizes = [1, 2], strides = [1, 1]} : vector<12x2xf32> to vector<1x2xf32>
    %458 = vector.broadcast %457 : vector<1x2xf32> to vector<12x2xf32>
    %459 = vector.broadcast %13 : vector<12x1xf32> to vector<12x2xf32>
    %460 = arith.addf %458, %459 : vector<12x2xf32>
    %461 = arith.addf %460, %387 : vector<12x2xf32>
    %462 = arith.cmpf ogt, %461, %456 : vector<12x2xf32>
    %c8_i32_67 = arith.constant 8 : i32
    %463 = vector.broadcast %c8_i32_67 : i32 to vector<12x2xi32>
    %464 = arith.select %462, %463, %455 : vector<12x2xi1>, vector<12x2xi32>
    %465 = arith.select %462, %461, %456 : vector<12x2xi1>, vector<12x2xf32>
    %466 = vector.extract_strided_slice %371 {offsets = [9, 0], sizes = [1, 2], strides = [1, 1]} : vector<12x2xf32> to vector<1x2xf32>
    %467 = vector.broadcast %466 : vector<1x2xf32> to vector<12x2xf32>
    %468 = vector.broadcast %14 : vector<12x1xf32> to vector<12x2xf32>
    %469 = arith.addf %467, %468 : vector<12x2xf32>
    %470 = arith.addf %469, %387 : vector<12x2xf32>
    %471 = arith.cmpf ogt, %470, %465 : vector<12x2xf32>
    %c9_i32_68 = arith.constant 9 : i32
    %472 = vector.broadcast %c9_i32_68 : i32 to vector<12x2xi32>
    %473 = arith.select %471, %472, %464 : vector<12x2xi1>, vector<12x2xi32>
    %474 = arith.select %471, %470, %465 : vector<12x2xi1>, vector<12x2xf32>
    %475 = vector.extract_strided_slice %371 {offsets = [10, 0], sizes = [1, 2], strides = [1, 1]} : vector<12x2xf32> to vector<1x2xf32>
    %476 = vector.broadcast %475 : vector<1x2xf32> to vector<12x2xf32>
    %477 = vector.broadcast %15 : vector<12x1xf32> to vector<12x2xf32>
    %478 = arith.addf %476, %477 : vector<12x2xf32>
    %479 = arith.addf %478, %387 : vector<12x2xf32>
    %480 = arith.cmpf ogt, %479, %474 : vector<12x2xf32>
    %c10_i32_69 = arith.constant 10 : i32
    %481 = vector.broadcast %c10_i32_69 : i32 to vector<12x2xi32>
    %482 = arith.select %480, %481, %473 : vector<12x2xi1>, vector<12x2xi32>
    %483 = arith.select %480, %479, %474 : vector<12x2xi1>, vector<12x2xf32>
    %484 = vector.extract_strided_slice %371 {offsets = [11, 0], sizes = [1, 2], strides = [1, 1]} : vector<12x2xf32> to vector<1x2xf32>
    %485 = vector.broadcast %484 : vector<1x2xf32> to vector<12x2xf32>
    %486 = vector.broadcast %16 : vector<12x1xf32> to vector<12x2xf32>
    %487 = arith.addf %485, %486 : vector<12x2xf32>
    %488 = arith.addf %487, %387 : vector<12x2xf32>
    %489 = arith.cmpf ogt, %488, %483 : vector<12x2xf32>
    %c11_i32_70 = arith.constant 11 : i32
    %490 = vector.broadcast %c11_i32_70 : i32 to vector<12x2xi32>
    %491 = arith.select %489, %490, %482 : vector<12x2xi1>, vector<12x2xi32>
    %492 = arith.select %489, %488, %483 : vector<12x2xi1>, vector<12x2xf32>
    %c4_i32_71 = arith.constant 4 : i32
    %493 = vector.broadcast %c4_i32_71 : i32 to vector<1x2xi32>
    %494 = arith.cmpi sgt, %0, %493 : vector<1x2xi32>
    %c0_i32_72 = arith.constant 0 : i32
    %495 = vector.shape_cast %494 : vector<1x2xi1> to vector<1x2xi1>
    %496 = vector.broadcast %495 : vector<1x2xi1> to vector<12x2xi1>
    %497 = vector.broadcast %c0_i32_72 : i32 to vector<12x2xi32>
    %498 = arith.select %496, %491, %497 : vector<12x2xi1>, vector<12x2xi32>
    %c3_73 = arith.constant 3 : index
    %c0_74 = arith.constant 0 : index
    %c0_75 = arith.constant 0 : index
    %499 = vector.load %arg6[%c3_73, %c0_74, %c0_75] : memref<8x12x2xi32, #tpu.memory_space<vmem>>, vector<1x12x2xi32>
    %500 = vector.shape_cast %499 : vector<1x12x2xi32> to vector<12x2xi32>
    %501 = vector.shape_cast %498 : vector<12x2xi32> to vector<1x12x2xi32>
    tpu.vector_store %arg6[%c3_73, %c0_74, %c0_75], %501 {strides = array<i32>} : memref<8x12x2xi32, #tpu.memory_space<vmem>>, vector<1x12x2xi32>,
    %c4_i32_76 = arith.constant 4 : i32
    %502 = vector.broadcast %c4_i32_76 : i32 to vector<1x2xi32>
    %503 = arith.cmpi eq, %2, %502 : vector<1x2xi32>
    %504 = vector.shape_cast %503 : vector<1x2xi1> to vector<1x2xi1>
    %505 = vector.broadcast %504 : vector<1x2xi1> to vector<12x2xi1>
    %506 = arith.select %505, %492, %385 : vector<12x2xi1>, vector<12x2xf32>
    %c5 = arith.constant 5 : index
    %c0_77 = arith.constant 0 : index
    %c0_78 = arith.constant 0 : index
    %507 = vector.load %arg2[%c5, %c0_77, %c0_78] : memref<8x12x2xf32, #tpu.memory_space<vmem>>, vector<1x12x2xf32>
    %508 = vector.shape_cast %507 : vector<1x12x2xf32> to vector<12x2xf32>
    %509 = vector.extract_strided_slice %492 {offsets = [0, 0], sizes = [1, 2], strides = [1, 1]} : vector<12x2xf32> to vector<1x2xf32>
    %510 = vector.broadcast %509 : vector<1x2xf32> to vector<12x2xf32>
    %511 = vector.broadcast %5 : vector<12x1xf32> to vector<12x2xf32>
    %512 = arith.addf %510, %511 : vector<12x2xf32>
    %513 = arith.addf %512, %508 : vector<12x2xf32>
    %c0_i32_79 = arith.constant 0 : i32
    %514 = vector.broadcast %c0_i32_79 : i32 to vector<12x2xi32>
    %515 = vector.extract_strided_slice %492 {offsets = [1, 0], sizes = [1, 2], strides = [1, 1]} : vector<12x2xf32> to vector<1x2xf32>
    %516 = vector.broadcast %515 : vector<1x2xf32> to vector<12x2xf32>
    %517 = vector.broadcast %6 : vector<12x1xf32> to vector<12x2xf32>
    %518 = arith.addf %516, %517 : vector<12x2xf32>
    %519 = arith.addf %518, %508 : vector<12x2xf32>
    %520 = arith.cmpf ogt, %519, %513 : vector<12x2xf32>
    %c1_i32_80 = arith.constant 1 : i32
    %521 = vector.broadcast %c1_i32_80 : i32 to vector<12x2xi32>
    %522 = arith.select %520, %521, %514 : vector<12x2xi1>, vector<12x2xi32>
    %523 = arith.select %520, %519, %513 : vector<12x2xi1>, vector<12x2xf32>
    %524 = vector.extract_strided_slice %492 {offsets = [2, 0], sizes = [1, 2], strides = [1, 1]} : vector<12x2xf32> to vector<1x2xf32>
    %525 = vector.broadcast %524 : vector<1x2xf32> to vector<12x2xf32>
    %526 = vector.broadcast %7 : vector<12x1xf32> to vector<12x2xf32>
    %527 = arith.addf %525, %526 : vector<12x2xf32>
    %528 = arith.addf %527, %508 : vector<12x2xf32>
    %529 = arith.cmpf ogt, %528, %523 : vector<12x2xf32>
    %c2_i32_81 = arith.constant 2 : i32
    %530 = vector.broadcast %c2_i32_81 : i32 to vector<12x2xi32>
    %531 = arith.select %529, %530, %522 : vector<12x2xi1>, vector<12x2xi32>
    %532 = arith.select %529, %528, %523 : vector<12x2xi1>, vector<12x2xf32>
    %533 = vector.extract_strided_slice %492 {offsets = [3, 0], sizes = [1, 2], strides = [1, 1]} : vector<12x2xf32> to vector<1x2xf32>
    %534 = vector.broadcast %533 : vector<1x2xf32> to vector<12x2xf32>
    %535 = vector.broadcast %8 : vector<12x1xf32> to vector<12x2xf32>
    %536 = arith.addf %534, %535 : vector<12x2xf32>
    %537 = arith.addf %536, %508 : vector<12x2xf32>
    %538 = arith.cmpf ogt, %537, %532 : vector<12x2xf32>
    %c3_i32_82 = arith.constant 3 : i32
    %539 = vector.broadcast %c3_i32_82 : i32 to vector<12x2xi32>
    %540 = arith.select %538, %539, %531 : vector<12x2xi1>, vector<12x2xi32>
    %541 = arith.select %538, %537, %532 : vector<12x2xi1>, vector<12x2xf32>
    %542 = vector.extract_strided_slice %492 {offsets = [4, 0], sizes = [1, 2], strides = [1, 1]} : vector<12x2xf32> to vector<1x2xf32>
    %543 = vector.broadcast %542 : vector<1x2xf32> to vector<12x2xf32>
    %544 = vector.broadcast %9 : vector<12x1xf32> to vector<12x2xf32>
    %545 = arith.addf %543, %544 : vector<12x2xf32>
    %546 = arith.addf %545, %508 : vector<12x2xf32>
    %547 = arith.cmpf ogt, %546, %541 : vector<12x2xf32>
    %c4_i32_83 = arith.constant 4 : i32
    %548 = vector.broadcast %c4_i32_83 : i32 to vector<12x2xi32>
    %549 = arith.select %547, %548, %540 : vector<12x2xi1>, vector<12x2xi32>
    %550 = arith.select %547, %546, %541 : vector<12x2xi1>, vector<12x2xf32>
    %551 = vector.extract_strided_slice %492 {offsets = [5, 0], sizes = [1, 2], strides = [1, 1]} : vector<12x2xf32> to vector<1x2xf32>
    %552 = vector.broadcast %551 : vector<1x2xf32> to vector<12x2xf32>
    %553 = vector.broadcast %10 : vector<12x1xf32> to vector<12x2xf32>
    %554 = arith.addf %552, %553 : vector<12x2xf32>
    %555 = arith.addf %554, %508 : vector<12x2xf32>
    %556 = arith.cmpf ogt, %555, %550 : vector<12x2xf32>
    %c5_i32_84 = arith.constant 5 : i32
    %557 = vector.broadcast %c5_i32_84 : i32 to vector<12x2xi32>
    %558 = arith.select %556, %557, %549 : vector<12x2xi1>, vector<12x2xi32>
    %559 = arith.select %556, %555, %550 : vector<12x2xi1>, vector<12x2xf32>
    %560 = vector.extract_strided_slice %492 {offsets = [6, 0], sizes = [1, 2], strides = [1, 1]} : vector<12x2xf32> to vector<1x2xf32>
    %561 = vector.broadcast %560 : vector<1x2xf32> to vector<12x2xf32>
    %562 = vector.broadcast %11 : vector<12x1xf32> to vector<12x2xf32>
    %563 = arith.addf %561, %562 : vector<12x2xf32>
    %564 = arith.addf %563, %508 : vector<12x2xf32>
    %565 = arith.cmpf ogt, %564, %559 : vector<12x2xf32>
    %c6_i32_85 = arith.constant 6 : i32
    %566 = vector.broadcast %c6_i32_85 : i32 to vector<12x2xi32>
    %567 = arith.select %565, %566, %558 : vector<12x2xi1>, vector<12x2xi32>
    %568 = arith.select %565, %564, %559 : vector<12x2xi1>, vector<12x2xf32>
    %569 = vector.extract_strided_slice %492 {offsets = [7, 0], sizes = [1, 2], strides = [1, 1]} : vector<12x2xf32> to vector<1x2xf32>
    %570 = vector.broadcast %569 : vector<1x2xf32> to vector<12x2xf32>
    %571 = vector.broadcast %12 : vector<12x1xf32> to vector<12x2xf32>
    %572 = arith.addf %570, %571 : vector<12x2xf32>
    %573 = arith.addf %572, %508 : vector<12x2xf32>
    %574 = arith.cmpf ogt, %573, %568 : vector<12x2xf32>
    %c7_i32_86 = arith.constant 7 : i32
    %575 = vector.broadcast %c7_i32_86 : i32 to vector<12x2xi32>
    %576 = arith.select %574, %575, %567 : vector<12x2xi1>, vector<12x2xi32>
    %577 = arith.select %574, %573, %568 : vector<12x2xi1>, vector<12x2xf32>
    %578 = vector.extract_strided_slice %492 {offsets = [8, 0], sizes = [1, 2], strides = [1, 1]} : vector<12x2xf32> to vector<1x2xf32>
    %579 = vector.broadcast %578 : vector<1x2xf32> to vector<12x2xf32>
    %580 = vector.broadcast %13 : vector<12x1xf32> to vector<12x2xf32>
    %581 = arith.addf %579, %580 : vector<12x2xf32>
    %582 = arith.addf %581, %508 : vector<12x2xf32>
    %583 = arith.cmpf ogt, %582, %577 : vector<12x2xf32>
    %c8_i32_87 = arith.constant 8 : i32
    %584 = vector.broadcast %c8_i32_87 : i32 to vector<12x2xi32>
    %585 = arith.select %583, %584, %576 : vector<12x2xi1>, vector<12x2xi32>
    %586 = arith.select %583, %582, %577 : vector<12x2xi1>, vector<12x2xf32>
    %587 = vector.extract_strided_slice %492 {offsets = [9, 0], sizes = [1, 2], strides = [1, 1]} : vector<12x2xf32> to vector<1x2xf32>
    %588 = vector.broadcast %587 : vector<1x2xf32> to vector<12x2xf32>
    %589 = vector.broadcast %14 : vector<12x1xf32> to vector<12x2xf32>
    %590 = arith.addf %588, %589 : vector<12x2xf32>
    %591 = arith.addf %590, %508 : vector<12x2xf32>
    %592 = arith.cmpf ogt, %591, %586 : vector<12x2xf32>
    %c9_i32_88 = arith.constant 9 : i32
    %593 = vector.broadcast %c9_i32_88 : i32 to vector<12x2xi32>
    %594 = arith.select %592, %593, %585 : vector<12x2xi1>, vector<12x2xi32>
    %595 = arith.select %592, %591, %586 : vector<12x2xi1>, vector<12x2xf32>
    %596 = vector.extract_strided_slice %492 {offsets = [10, 0], sizes = [1, 2], strides = [1, 1]} : vector<12x2xf32> to vector<1x2xf32>
    %597 = vector.broadcast %596 : vector<1x2xf32> to vector<12x2xf32>
    %598 = vector.broadcast %15 : vector<12x1xf32> to vector<12x2xf32>
    %599 = arith.addf %597, %598 : vector<12x2xf32>
    %600 = arith.addf %599, %508 : vector<12x2xf32>
    %601 = arith.cmpf ogt, %600, %595 : vector<12x2xf32>
    %c10_i32_89 = arith.constant 10 : i32
    %602 = vector.broadcast %c10_i32_89 : i32 to vector<12x2xi32>
    %603 = arith.select %601, %602, %594 : vector<12x2xi1>, vector<12x2xi32>
    %604 = arith.select %601, %600, %595 : vector<12x2xi1>, vector<12x2xf32>
    %605 = vector.extract_strided_slice %492 {offsets = [11, 0], sizes = [1, 2], strides = [1, 1]} : vector<12x2xf32> to vector<1x2xf32>
    %606 = vector.broadcast %605 : vector<1x2xf32> to vector<12x2xf32>
    %607 = vector.broadcast %16 : vector<12x1xf32> to vector<12x2xf32>
    %608 = arith.addf %606, %607 : vector<12x2xf32>
    %609 = arith.addf %608, %508 : vector<12x2xf32>
    %610 = arith.cmpf ogt, %609, %604 : vector<12x2xf32>
    %c11_i32_90 = arith.constant 11 : i32
    %611 = vector.broadcast %c11_i32_90 : i32 to vector<12x2xi32>
    %612 = arith.select %610, %611, %603 : vector<12x2xi1>, vector<12x2xi32>
    %613 = arith.select %610, %609, %604 : vector<12x2xi1>, vector<12x2xf32>
    %c5_i32_91 = arith.constant 5 : i32
    %614 = vector.broadcast %c5_i32_91 : i32 to vector<1x2xi32>
    %615 = arith.cmpi sgt, %0, %614 : vector<1x2xi32>
    %c0_i32_92 = arith.constant 0 : i32
    %616 = vector.shape_cast %615 : vector<1x2xi1> to vector<1x2xi1>
    %617 = vector.broadcast %616 : vector<1x2xi1> to vector<12x2xi1>
    %618 = vector.broadcast %c0_i32_92 : i32 to vector<12x2xi32>
    %619 = arith.select %617, %612, %618 : vector<12x2xi1>, vector<12x2xi32>
    %c4_93 = arith.constant 4 : index
    %c0_94 = arith.constant 0 : index
    %c0_95 = arith.constant 0 : index
    %620 = vector.load %arg6[%c4_93, %c0_94, %c0_95] : memref<8x12x2xi32, #tpu.memory_space<vmem>>, vector<1x12x2xi32>
    %621 = vector.shape_cast %620 : vector<1x12x2xi32> to vector<12x2xi32>
    %622 = vector.shape_cast %619 : vector<12x2xi32> to vector<1x12x2xi32>
    tpu.vector_store %arg6[%c4_93, %c0_94, %c0_95], %622 {strides = array<i32>} : memref<8x12x2xi32, #tpu.memory_space<vmem>>, vector<1x12x2xi32>,
    %c5_i32_96 = arith.constant 5 : i32
    %623 = vector.broadcast %c5_i32_96 : i32 to vector<1x2xi32>
    %624 = arith.cmpi eq, %2, %623 : vector<1x2xi32>
    %625 = vector.shape_cast %624 : vector<1x2xi1> to vector<1x2xi1>
    %626 = vector.broadcast %625 : vector<1x2xi1> to vector<12x2xi1>
    %627 = arith.select %626, %613, %506 : vector<12x2xi1>, vector<12x2xf32>
    %c6 = arith.constant 6 : index
    %c0_97 = arith.constant 0 : index
    %c0_98 = arith.constant 0 : index
    %628 = vector.load %arg2[%c6, %c0_97, %c0_98] : memref<8x12x2xf32, #tpu.memory_space<vmem>>, vector<1x12x2xf32>
    %629 = vector.shape_cast %628 : vector<1x12x2xf32> to vector<12x2xf32>
    %630 = vector.extract_strided_slice %613 {offsets = [0, 0], sizes = [1, 2], strides = [1, 1]} : vector<12x2xf32> to vector<1x2xf32>
    %631 = vector.broadcast %630 : vector<1x2xf32> to vector<12x2xf32>
    %632 = vector.broadcast %5 : vector<12x1xf32> to vector<12x2xf32>
    %633 = arith.addf %631, %632 : vector<12x2xf32>
    %634 = arith.addf %633, %629 : vector<12x2xf32>
    %c0_i32_99 = arith.constant 0 : i32
    %635 = vector.broadcast %c0_i32_99 : i32 to vector<12x2xi32>
    %636 = vector.extract_strided_slice %613 {offsets = [1, 0], sizes = [1, 2], strides = [1, 1]} : vector<12x2xf32> to vector<1x2xf32>
    %637 = vector.broadcast %636 : vector<1x2xf32> to vector<12x2xf32>
    %638 = vector.broadcast %6 : vector<12x1xf32> to vector<12x2xf32>
    %639 = arith.addf %637, %638 : vector<12x2xf32>
    %640 = arith.addf %639, %629 : vector<12x2xf32>
    %641 = arith.cmpf ogt, %640, %634 : vector<12x2xf32>
    %c1_i32_100 = arith.constant 1 : i32
    %642 = vector.broadcast %c1_i32_100 : i32 to vector<12x2xi32>
    %643 = arith.select %641, %642, %635 : vector<12x2xi1>, vector<12x2xi32>
    %644 = arith.select %641, %640, %634 : vector<12x2xi1>, vector<12x2xf32>
    %645 = vector.extract_strided_slice %613 {offsets = [2, 0], sizes = [1, 2], strides = [1, 1]} : vector<12x2xf32> to vector<1x2xf32>
    %646 = vector.broadcast %645 : vector<1x2xf32> to vector<12x2xf32>
    %647 = vector.broadcast %7 : vector<12x1xf32> to vector<12x2xf32>
    %648 = arith.addf %646, %647 : vector<12x2xf32>
    %649 = arith.addf %648, %629 : vector<12x2xf32>
    %650 = arith.cmpf ogt, %649, %644 : vector<12x2xf32>
    %c2_i32_101 = arith.constant 2 : i32
    %651 = vector.broadcast %c2_i32_101 : i32 to vector<12x2xi32>
    %652 = arith.select %650, %651, %643 : vector<12x2xi1>, vector<12x2xi32>
    %653 = arith.select %650, %649, %644 : vector<12x2xi1>, vector<12x2xf32>
    %654 = vector.extract_strided_slice %613 {offsets = [3, 0], sizes = [1, 2], strides = [1, 1]} : vector<12x2xf32> to vector<1x2xf32>
    %655 = vector.broadcast %654 : vector<1x2xf32> to vector<12x2xf32>
    %656 = vector.broadcast %8 : vector<12x1xf32> to vector<12x2xf32>
    %657 = arith.addf %655, %656 : vector<12x2xf32>
    %658 = arith.addf %657, %629 : vector<12x2xf32>
    %659 = arith.cmpf ogt, %658, %653 : vector<12x2xf32>
    %c3_i32_102 = arith.constant 3 : i32
    %660 = vector.broadcast %c3_i32_102 : i32 to vector<12x2xi32>
    %661 = arith.select %659, %660, %652 : vector<12x2xi1>, vector<12x2xi32>
    %662 = arith.select %659, %658, %653 : vector<12x2xi1>, vector<12x2xf32>
    %663 = vector.extract_strided_slice %613 {offsets = [4, 0], sizes = [1, 2], strides = [1, 1]} : vector<12x2xf32> to vector<1x2xf32>
    %664 = vector.broadcast %663 : vector<1x2xf32> to vector<12x2xf32>
    %665 = vector.broadcast %9 : vector<12x1xf32> to vector<12x2xf32>
    %666 = arith.addf %664, %665 : vector<12x2xf32>
    %667 = arith.addf %666, %629 : vector<12x2xf32>
    %668 = arith.cmpf ogt, %667, %662 : vector<12x2xf32>
    %c4_i32_103 = arith.constant 4 : i32
    %669 = vector.broadcast %c4_i32_103 : i32 to vector<12x2xi32>
    %670 = arith.select %668, %669, %661 : vector<12x2xi1>, vector<12x2xi32>
    %671 = arith.select %668, %667, %662 : vector<12x2xi1>, vector<12x2xf32>
    %672 = vector.extract_strided_slice %613 {offsets = [5, 0], sizes = [1, 2], strides = [1, 1]} : vector<12x2xf32> to vector<1x2xf32>
    %673 = vector.broadcast %672 : vector<1x2xf32> to vector<12x2xf32>
    %674 = vector.broadcast %10 : vector<12x1xf32> to vector<12x2xf32>
    %675 = arith.addf %673, %674 : vector<12x2xf32>
    %676 = arith.addf %675, %629 : vector<12x2xf32>
    %677 = arith.cmpf ogt, %676, %671 : vector<12x2xf32>
    %c5_i32_104 = arith.constant 5 : i32
    %678 = vector.broadcast %c5_i32_104 : i32 to vector<12x2xi32>
    %679 = arith.select %677, %678, %670 : vector<12x2xi1>, vector<12x2xi32>
    %680 = arith.select %677, %676, %671 : vector<12x2xi1>, vector<12x2xf32>
    %681 = vector.extract_strided_slice %613 {offsets = [6, 0], sizes = [1, 2], strides = [1, 1]} : vector<12x2xf32> to vector<1x2xf32>
    %682 = vector.broadcast %681 : vector<1x2xf32> to vector<12x2xf32>
    %683 = vector.broadcast %11 : vector<12x1xf32> to vector<12x2xf32>
    %684 = arith.addf %682, %683 : vector<12x2xf32>
    %685 = arith.addf %684, %629 : vector<12x2xf32>
    %686 = arith.cmpf ogt, %685, %680 : vector<12x2xf32>
    %c6_i32_105 = arith.constant 6 : i32
    %687 = vector.broadcast %c6_i32_105 : i32 to vector<12x2xi32>
    %688 = arith.select %686, %687, %679 : vector<12x2xi1>, vector<12x2xi32>
    %689 = arith.select %686, %685, %680 : vector<12x2xi1>, vector<12x2xf32>
    %690 = vector.extract_strided_slice %613 {offsets = [7, 0], sizes = [1, 2], strides = [1, 1]} : vector<12x2xf32> to vector<1x2xf32>
    %691 = vector.broadcast %690 : vector<1x2xf32> to vector<12x2xf32>
    %692 = vector.broadcast %12 : vector<12x1xf32> to vector<12x2xf32>
    %693 = arith.addf %691, %692 : vector<12x2xf32>
    %694 = arith.addf %693, %629 : vector<12x2xf32>
    %695 = arith.cmpf ogt, %694, %689 : vector<12x2xf32>
    %c7_i32_106 = arith.constant 7 : i32
    %696 = vector.broadcast %c7_i32_106 : i32 to vector<12x2xi32>
    %697 = arith.select %695, %696, %688 : vector<12x2xi1>, vector<12x2xi32>
    %698 = arith.select %695, %694, %689 : vector<12x2xi1>, vector<12x2xf32>
    %699 = vector.extract_strided_slice %613 {offsets = [8, 0], sizes = [1, 2], strides = [1, 1]} : vector<12x2xf32> to vector<1x2xf32>
    %700 = vector.broadcast %699 : vector<1x2xf32> to vector<12x2xf32>
    %701 = vector.broadcast %13 : vector<12x1xf32> to vector<12x2xf32>
    %702 = arith.addf %700, %701 : vector<12x2xf32>
    %703 = arith.addf %702, %629 : vector<12x2xf32>
    %704 = arith.cmpf ogt, %703, %698 : vector<12x2xf32>
    %c8_i32_107 = arith.constant 8 : i32
    %705 = vector.broadcast %c8_i32_107 : i32 to vector<12x2xi32>
    %706 = arith.select %704, %705, %697 : vector<12x2xi1>, vector<12x2xi32>
    %707 = arith.select %704, %703, %698 : vector<12x2xi1>, vector<12x2xf32>
    %708 = vector.extract_strided_slice %613 {offsets = [9, 0], sizes = [1, 2], strides = [1, 1]} : vector<12x2xf32> to vector<1x2xf32>
    %709 = vector.broadcast %708 : vector<1x2xf32> to vector<12x2xf32>
    %710 = vector.broadcast %14 : vector<12x1xf32> to vector<12x2xf32>
    %711 = arith.addf %709, %710 : vector<12x2xf32>
    %712 = arith.addf %711, %629 : vector<12x2xf32>
    %713 = arith.cmpf ogt, %712, %707 : vector<12x2xf32>
    %c9_i32_108 = arith.constant 9 : i32
    %714 = vector.broadcast %c9_i32_108 : i32 to vector<12x2xi32>
    %715 = arith.select %713, %714, %706 : vector<12x2xi1>, vector<12x2xi32>
    %716 = arith.select %713, %712, %707 : vector<12x2xi1>, vector<12x2xf32>
    %717 = vector.extract_strided_slice %613 {offsets = [10, 0], sizes = [1, 2], strides = [1, 1]} : vector<12x2xf32> to vector<1x2xf32>
    %718 = vector.broadcast %717 : vector<1x2xf32> to vector<12x2xf32>
    %719 = vector.broadcast %15 : vector<12x1xf32> to vector<12x2xf32>
    %720 = arith.addf %718, %719 : vector<12x2xf32>
    %721 = arith.addf %720, %629 : vector<12x2xf32>
    %722 = arith.cmpf ogt, %721, %716 : vector<12x2xf32>
    %c10_i32_109 = arith.constant 10 : i32
    %723 = vector.broadcast %c10_i32_109 : i32 to vector<12x2xi32>
    %724 = arith.select %722, %723, %715 : vector<12x2xi1>, vector<12x2xi32>
    %725 = arith.select %722, %721, %716 : vector<12x2xi1>, vector<12x2xf32>
    %726 = vector.extract_strided_slice %613 {offsets = [11, 0], sizes = [1, 2], strides = [1, 1]} : vector<12x2xf32> to vector<1x2xf32>
    %727 = vector.broadcast %726 : vector<1x2xf32> to vector<12x2xf32>
    %728 = vector.broadcast %16 : vector<12x1xf32> to vector<12x2xf32>
    %729 = arith.addf %727, %728 : vector<12x2xf32>
    %730 = arith.addf %729, %629 : vector<12x2xf32>
    %731 = arith.cmpf ogt, %730, %725 : vector<12x2xf32>
    %c11_i32_110 = arith.constant 11 : i32
    %732 = vector.broadcast %c11_i32_110 : i32 to vector<12x2xi32>
    %733 = arith.select %731, %732, %724 : vector<12x2xi1>, vector<12x2xi32>
    %734 = arith.select %731, %730, %725 : vector<12x2xi1>, vector<12x2xf32>
    %c6_i32_111 = arith.constant 6 : i32
    %735 = vector.broadcast %c6_i32_111 : i32 to vector<1x2xi32>
    %736 = arith.cmpi sgt, %0, %735 : vector<1x2xi32>
    %c0_i32_112 = arith.constant 0 : i32
    %737 = vector.shape_cast %736 : vector<1x2xi1> to vector<1x2xi1>
    %738 = vector.broadcast %737 : vector<1x2xi1> to vector<12x2xi1>
    %739 = vector.broadcast %c0_i32_112 : i32 to vector<12x2xi32>
    %740 = arith.select %738, %733, %739 : vector<12x2xi1>, vector<12x2xi32>
    %c5_113 = arith.constant 5 : index
    %c0_114 = arith.constant 0 : index
    %c0_115 = arith.constant 0 : index
    %741 = vector.load %arg6[%c5_113, %c0_114, %c0_115] : memref<8x12x2xi32, #tpu.memory_space<vmem>>, vector<1x12x2xi32>
    %742 = vector.shape_cast %741 : vector<1x12x2xi32> to vector<12x2xi32>
    %743 = vector.shape_cast %740 : vector<12x2xi32> to vector<1x12x2xi32>
    tpu.vector_store %arg6[%c5_113, %c0_114, %c0_115], %743 {strides = array<i32>} : memref<8x12x2xi32, #tpu.memory_space<vmem>>, vector<1x12x2xi32>,
    %c6_i32_116 = arith.constant 6 : i32
    %744 = vector.broadcast %c6_i32_116 : i32 to vector<1x2xi32>
    %745 = arith.cmpi eq, %2, %744 : vector<1x2xi32>
    %746 = vector.shape_cast %745 : vector<1x2xi1> to vector<1x2xi1>
    %747 = vector.broadcast %746 : vector<1x2xi1> to vector<12x2xi1>
    %748 = arith.select %747, %734, %627 : vector<12x2xi1>, vector<12x2xf32>
    %c7 = arith.constant 7 : index
    %c0_117 = arith.constant 0 : index
    %c0_118 = arith.constant 0 : index
    %749 = vector.load %arg2[%c7, %c0_117, %c0_118] : memref<8x12x2xf32, #tpu.memory_space<vmem>>, vector<1x12x2xf32>
    %750 = vector.shape_cast %749 : vector<1x12x2xf32> to vector<12x2xf32>
    %751 = vector.extract_strided_slice %734 {offsets = [0, 0], sizes = [1, 2], strides = [1, 1]} : vector<12x2xf32> to vector<1x2xf32>
    %752 = vector.broadcast %751 : vector<1x2xf32> to vector<12x2xf32>
    %753 = vector.broadcast %5 : vector<12x1xf32> to vector<12x2xf32>
    %754 = arith.addf %752, %753 : vector<12x2xf32>
    %755 = arith.addf %754, %750 : vector<12x2xf32>
    %c0_i32_119 = arith.constant 0 : i32
    %756 = vector.broadcast %c0_i32_119 : i32 to vector<12x2xi32>
    %757 = vector.extract_strided_slice %734 {offsets = [1, 0], sizes = [1, 2], strides = [1, 1]} : vector<12x2xf32> to vector<1x2xf32>
    %758 = vector.broadcast %757 : vector<1x2xf32> to vector<12x2xf32>
    %759 = vector.broadcast %6 : vector<12x1xf32> to vector<12x2xf32>
    %760 = arith.addf %758, %759 : vector<12x2xf32>
    %761 = arith.addf %760, %750 : vector<12x2xf32>
    %762 = arith.cmpf ogt, %761, %755 : vector<12x2xf32>
    %c1_i32_120 = arith.constant 1 : i32
    %763 = vector.broadcast %c1_i32_120 : i32 to vector<12x2xi32>
    %764 = arith.select %762, %763, %756 : vector<12x2xi1>, vector<12x2xi32>
    %765 = arith.select %762, %761, %755 : vector<12x2xi1>, vector<12x2xf32>
    %766 = vector.extract_strided_slice %734 {offsets = [2, 0], sizes = [1, 2], strides = [1, 1]} : vector<12x2xf32> to vector<1x2xf32>
    %767 = vector.broadcast %766 : vector<1x2xf32> to vector<12x2xf32>
    %768 = vector.broadcast %7 : vector<12x1xf32> to vector<12x2xf32>
    %769 = arith.addf %767, %768 : vector<12x2xf32>
    %770 = arith.addf %769, %750 : vector<12x2xf32>
    %771 = arith.cmpf ogt, %770, %765 : vector<12x2xf32>
    %c2_i32_121 = arith.constant 2 : i32
    %772 = vector.broadcast %c2_i32_121 : i32 to vector<12x2xi32>
    %773 = arith.select %771, %772, %764 : vector<12x2xi1>, vector<12x2xi32>
    %774 = arith.select %771, %770, %765 : vector<12x2xi1>, vector<12x2xf32>
    %775 = vector.extract_strided_slice %734 {offsets = [3, 0], sizes = [1, 2], strides = [1, 1]} : vector<12x2xf32> to vector<1x2xf32>
    %776 = vector.broadcast %775 : vector<1x2xf32> to vector<12x2xf32>
    %777 = vector.broadcast %8 : vector<12x1xf32> to vector<12x2xf32>
    %778 = arith.addf %776, %777 : vector<12x2xf32>
    %779 = arith.addf %778, %750 : vector<12x2xf32>
    %780 = arith.cmpf ogt, %779, %774 : vector<12x2xf32>
    %c3_i32_122 = arith.constant 3 : i32
    %781 = vector.broadcast %c3_i32_122 : i32 to vector<12x2xi32>
    %782 = arith.select %780, %781, %773 : vector<12x2xi1>, vector<12x2xi32>
    %783 = arith.select %780, %779, %774 : vector<12x2xi1>, vector<12x2xf32>
    %784 = vector.extract_strided_slice %734 {offsets = [4, 0], sizes = [1, 2], strides = [1, 1]} : vector<12x2xf32> to vector<1x2xf32>
    %785 = vector.broadcast %784 : vector<1x2xf32> to vector<12x2xf32>
    %786 = vector.broadcast %9 : vector<12x1xf32> to vector<12x2xf32>
    %787 = arith.addf %785, %786 : vector<12x2xf32>
    %788 = arith.addf %787, %750 : vector<12x2xf32>
    %789 = arith.cmpf ogt, %788, %783 : vector<12x2xf32>
    %c4_i32_123 = arith.constant 4 : i32
    %790 = vector.broadcast %c4_i32_123 : i32 to vector<12x2xi32>
    %791 = arith.select %789, %790, %782 : vector<12x2xi1>, vector<12x2xi32>
    %792 = arith.select %789, %788, %783 : vector<12x2xi1>, vector<12x2xf32>
    %793 = vector.extract_strided_slice %734 {offsets = [5, 0], sizes = [1, 2], strides = [1, 1]} : vector<12x2xf32> to vector<1x2xf32>
    %794 = vector.broadcast %793 : vector<1x2xf32> to vector<12x2xf32>
    %795 = vector.broadcast %10 : vector<12x1xf32> to vector<12x2xf32>
    %796 = arith.addf %794, %795 : vector<12x2xf32>
    %797 = arith.addf %796, %750 : vector<12x2xf32>
    %798 = arith.cmpf ogt, %797, %792 : vector<12x2xf32>
    %c5_i32_124 = arith.constant 5 : i32
    %799 = vector.broadcast %c5_i32_124 : i32 to vector<12x2xi32>
    %800 = arith.select %798, %799, %791 : vector<12x2xi1>, vector<12x2xi32>
    %801 = arith.select %798, %797, %792 : vector<12x2xi1>, vector<12x2xf32>
    %802 = vector.extract_strided_slice %734 {offsets = [6, 0], sizes = [1, 2], strides = [1, 1]} : vector<12x2xf32> to vector<1x2xf32>
    %803 = vector.broadcast %802 : vector<1x2xf32> to vector<12x2xf32>
    %804 = vector.broadcast %11 : vector<12x1xf32> to vector<12x2xf32>
    %805 = arith.addf %803, %804 : vector<12x2xf32>
    %806 = arith.addf %805, %750 : vector<12x2xf32>
    %807 = arith.cmpf ogt, %806, %801 : vector<12x2xf32>
    %c6_i32_125 = arith.constant 6 : i32
    %808 = vector.broadcast %c6_i32_125 : i32 to vector<12x2xi32>
    %809 = arith.select %807, %808, %800 : vector<12x2xi1>, vector<12x2xi32>
    %810 = arith.select %807, %806, %801 : vector<12x2xi1>, vector<12x2xf32>
    %811 = vector.extract_strided_slice %734 {offsets = [7, 0], sizes = [1, 2], strides = [1, 1]} : vector<12x2xf32> to vector<1x2xf32>
    %812 = vector.broadcast %811 : vector<1x2xf32> to vector<12x2xf32>
    %813 = vector.broadcast %12 : vector<12x1xf32> to vector<12x2xf32>
    %814 = arith.addf %812, %813 : vector<12x2xf32>
    %815 = arith.addf %814, %750 : vector<12x2xf32>
    %816 = arith.cmpf ogt, %815, %810 : vector<12x2xf32>
    %c7_i32_126 = arith.constant 7 : i32
    %817 = vector.broadcast %c7_i32_126 : i32 to vector<12x2xi32>
    %818 = arith.select %816, %817, %809 : vector<12x2xi1>, vector<12x2xi32>
    %819 = arith.select %816, %815, %810 : vector<12x2xi1>, vector<12x2xf32>
    %820 = vector.extract_strided_slice %734 {offsets = [8, 0], sizes = [1, 2], strides = [1, 1]} : vector<12x2xf32> to vector<1x2xf32>
    %821 = vector.broadcast %820 : vector<1x2xf32> to vector<12x2xf32>
    %822 = vector.broadcast %13 : vector<12x1xf32> to vector<12x2xf32>
    %823 = arith.addf %821, %822 : vector<12x2xf32>
    %824 = arith.addf %823, %750 : vector<12x2xf32>
    %825 = arith.cmpf ogt, %824, %819 : vector<12x2xf32>
    %c8_i32_127 = arith.constant 8 : i32
    %826 = vector.broadcast %c8_i32_127 : i32 to vector<12x2xi32>
    %827 = arith.select %825, %826, %818 : vector<12x2xi1>, vector<12x2xi32>
    %828 = arith.select %825, %824, %819 : vector<12x2xi1>, vector<12x2xf32>
    %829 = vector.extract_strided_slice %734 {offsets = [9, 0], sizes = [1, 2], strides = [1, 1]} : vector<12x2xf32> to vector<1x2xf32>
    %830 = vector.broadcast %829 : vector<1x2xf32> to vector<12x2xf32>
    %831 = vector.broadcast %14 : vector<12x1xf32> to vector<12x2xf32>
    %832 = arith.addf %830, %831 : vector<12x2xf32>
    %833 = arith.addf %832, %750 : vector<12x2xf32>
    %834 = arith.cmpf ogt, %833, %828 : vector<12x2xf32>
    %c9_i32_128 = arith.constant 9 : i32
    %835 = vector.broadcast %c9_i32_128 : i32 to vector<12x2xi32>
    %836 = arith.select %834, %835, %827 : vector<12x2xi1>, vector<12x2xi32>
    %837 = arith.select %834, %833, %828 : vector<12x2xi1>, vector<12x2xf32>
    %838 = vector.extract_strided_slice %734 {offsets = [10, 0], sizes = [1, 2], strides = [1, 1]} : vector<12x2xf32> to vector<1x2xf32>
    %839 = vector.broadcast %838 : vector<1x2xf32> to vector<12x2xf32>
    %840 = vector.broadcast %15 : vector<12x1xf32> to vector<12x2xf32>
    %841 = arith.addf %839, %840 : vector<12x2xf32>
    %842 = arith.addf %841, %750 : vector<12x2xf32>
    %843 = arith.cmpf ogt, %842, %837 : vector<12x2xf32>
    %c10_i32_129 = arith.constant 10 : i32
    %844 = vector.broadcast %c10_i32_129 : i32 to vector<12x2xi32>
    %845 = arith.select %843, %844, %836 : vector<12x2xi1>, vector<12x2xi32>
    %846 = arith.select %843, %842, %837 : vector<12x2xi1>, vector<12x2xf32>
    %847 = vector.extract_strided_slice %734 {offsets = [11, 0], sizes = [1, 2], strides = [1, 1]} : vector<12x2xf32> to vector<1x2xf32>
    %848 = vector.broadcast %847 : vector<1x2xf32> to vector<12x2xf32>
    %849 = vector.broadcast %16 : vector<12x1xf32> to vector<12x2xf32>
    %850 = arith.addf %848, %849 : vector<12x2xf32>
    %851 = arith.addf %850, %750 : vector<12x2xf32>
    %852 = arith.cmpf ogt, %851, %846 : vector<12x2xf32>
    %c11_i32_130 = arith.constant 11 : i32
    %853 = vector.broadcast %c11_i32_130 : i32 to vector<12x2xi32>
    %854 = arith.select %852, %853, %845 : vector<12x2xi1>, vector<12x2xi32>
    %855 = arith.select %852, %851, %846 : vector<12x2xi1>, vector<12x2xf32>
    %c7_i32_131 = arith.constant 7 : i32
    %856 = vector.broadcast %c7_i32_131 : i32 to vector<1x2xi32>
    %857 = arith.cmpi sgt, %0, %856 : vector<1x2xi32>
    %c0_i32_132 = arith.constant 0 : i32
    %858 = vector.shape_cast %857 : vector<1x2xi1> to vector<1x2xi1>
    %859 = vector.broadcast %858 : vector<1x2xi1> to vector<12x2xi1>
    %860 = vector.broadcast %c0_i32_132 : i32 to vector<12x2xi32>
    %861 = arith.select %859, %854, %860 : vector<12x2xi1>, vector<12x2xi32>
    %c6_133 = arith.constant 6 : index
    %c0_134 = arith.constant 0 : index
    %c0_135 = arith.constant 0 : index
    %862 = vector.load %arg6[%c6_133, %c0_134, %c0_135] : memref<8x12x2xi32, #tpu.memory_space<vmem>>, vector<1x12x2xi32>
    %863 = vector.shape_cast %862 : vector<1x12x2xi32> to vector<12x2xi32>
    %864 = vector.shape_cast %861 : vector<12x2xi32> to vector<1x12x2xi32>
    tpu.vector_store %arg6[%c6_133, %c0_134, %c0_135], %864 {strides = array<i32>} : memref<8x12x2xi32, #tpu.memory_space<vmem>>, vector<1x12x2xi32>,
    %c7_i32_136 = arith.constant 7 : i32
    %865 = vector.broadcast %c7_i32_136 : i32 to vector<1x2xi32>
    %866 = arith.cmpi eq, %2, %865 : vector<1x2xi32>
    %867 = vector.shape_cast %866 : vector<1x2xi1> to vector<1x2xi1>
    %868 = vector.broadcast %867 : vector<1x2xi1> to vector<12x2xi1>
    %869 = arith.select %868, %855, %748 : vector<12x2xi1>, vector<12x2xf32>
    %870 = vector.broadcast %18 : vector<12x1xf32> to vector<12x2xf32>
    %871 = arith.addf %869, %870 : vector<12x2xf32>
    %872 = vector.extract_strided_slice %871 {offsets = [0, 0], sizes = [1, 2], strides = [1, 1]} : vector<12x2xf32> to vector<1x2xf32>
    %c0_i32_137 = arith.constant 0 : i32
    %873 = vector.broadcast %c0_i32_137 : i32 to vector<1x2xi32>
    %874 = vector.extract_strided_slice %871 {offsets = [1, 0], sizes = [1, 2], strides = [1, 1]} : vector<12x2xf32> to vector<1x2xf32>
    %875 = arith.cmpf ogt, %874, %872 : vector<1x2xf32>
    %c1_i32_138 = arith.constant 1 : i32
    %876 = vector.broadcast %c1_i32_138 : i32 to vector<1x2xi32>
    %877 = arith.select %875, %876, %873 : vector<1x2xi1>, vector<1x2xi32>
    %878 = arith.select %875, %874, %872 : vector<1x2xi1>, vector<1x2xf32>
    %879 = vector.extract_strided_slice %871 {offsets = [2, 0], sizes = [1, 2], strides = [1, 1]} : vector<12x2xf32> to vector<1x2xf32>
    %880 = arith.cmpf ogt, %879, %878 : vector<1x2xf32>
    %c2_i32_139 = arith.constant 2 : i32
    %881 = vector.broadcast %c2_i32_139 : i32 to vector<1x2xi32>
    %882 = arith.select %880, %881, %877 : vector<1x2xi1>, vector<1x2xi32>
    %883 = arith.select %880, %879, %878 : vector<1x2xi1>, vector<1x2xf32>
    %884 = vector.extract_strided_slice %871 {offsets = [3, 0], sizes = [1, 2], strides = [1, 1]} : vector<12x2xf32> to vector<1x2xf32>
    %885 = arith.cmpf ogt, %884, %883 : vector<1x2xf32>
    %c3_i32_140 = arith.constant 3 : i32
    %886 = vector.broadcast %c3_i32_140 : i32 to vector<1x2xi32>
    %887 = arith.select %885, %886, %882 : vector<1x2xi1>, vector<1x2xi32>
    %888 = arith.select %885, %884, %883 : vector<1x2xi1>, vector<1x2xf32>
    %889 = vector.extract_strided_slice %871 {offsets = [4, 0], sizes = [1, 2], strides = [1, 1]} : vector<12x2xf32> to vector<1x2xf32>
    %890 = arith.cmpf ogt, %889, %888 : vector<1x2xf32>
    %c4_i32_141 = arith.constant 4 : i32
    %891 = vector.broadcast %c4_i32_141 : i32 to vector<1x2xi32>
    %892 = arith.select %890, %891, %887 : vector<1x2xi1>, vector<1x2xi32>
    %893 = arith.select %890, %889, %888 : vector<1x2xi1>, vector<1x2xf32>
    %894 = vector.extract_strided_slice %871 {offsets = [5, 0], sizes = [1, 2], strides = [1, 1]} : vector<12x2xf32> to vector<1x2xf32>
    %895 = arith.cmpf ogt, %894, %893 : vector<1x2xf32>
    %c5_i32_142 = arith.constant 5 : i32
    %896 = vector.broadcast %c5_i32_142 : i32 to vector<1x2xi32>
    %897 = arith.select %895, %896, %892 : vector<1x2xi1>, vector<1x2xi32>
    %898 = arith.select %895, %894, %893 : vector<1x2xi1>, vector<1x2xf32>
    %899 = vector.extract_strided_slice %871 {offsets = [6, 0], sizes = [1, 2], strides = [1, 1]} : vector<12x2xf32> to vector<1x2xf32>
    %900 = arith.cmpf ogt, %899, %898 : vector<1x2xf32>
    %c6_i32_143 = arith.constant 6 : i32
    %901 = vector.broadcast %c6_i32_143 : i32 to vector<1x2xi32>
    %902 = arith.select %900, %901, %897 : vector<1x2xi1>, vector<1x2xi32>
    %903 = arith.select %900, %899, %898 : vector<1x2xi1>, vector<1x2xf32>
    %904 = vector.extract_strided_slice %871 {offsets = [7, 0], sizes = [1, 2], strides = [1, 1]} : vector<12x2xf32> to vector<1x2xf32>
    %905 = arith.cmpf ogt, %904, %903 : vector<1x2xf32>
    %c7_i32_144 = arith.constant 7 : i32
    %906 = vector.broadcast %c7_i32_144 : i32 to vector<1x2xi32>
    %907 = arith.select %905, %906, %902 : vector<1x2xi1>, vector<1x2xi32>
    %908 = arith.select %905, %904, %903 : vector<1x2xi1>, vector<1x2xf32>
    %909 = vector.extract_strided_slice %871 {offsets = [8, 0], sizes = [1, 2], strides = [1, 1]} : vector<12x2xf32> to vector<1x2xf32>
    %910 = arith.cmpf ogt, %909, %908 : vector<1x2xf32>
    %c8_i32_145 = arith.constant 8 : i32
    %911 = vector.broadcast %c8_i32_145 : i32 to vector<1x2xi32>
    %912 = arith.select %910, %911, %907 : vector<1x2xi1>, vector<1x2xi32>
    %913 = arith.select %910, %909, %908 : vector<1x2xi1>, vector<1x2xf32>
    %914 = vector.extract_strided_slice %871 {offsets = [9, 0], sizes = [1, 2], strides = [1, 1]} : vector<12x2xf32> to vector<1x2xf32>
    %915 = arith.cmpf ogt, %914, %913 : vector<1x2xf32>
    %c9_i32_146 = arith.constant 9 : i32
    %916 = vector.broadcast %c9_i32_146 : i32 to vector<1x2xi32>
    %917 = arith.select %915, %916, %912 : vector<1x2xi1>, vector<1x2xi32>
    %918 = arith.select %915, %914, %913 : vector<1x2xi1>, vector<1x2xf32>
    %919 = vector.extract_strided_slice %871 {offsets = [10, 0], sizes = [1, 2], strides = [1, 1]} : vector<12x2xf32> to vector<1x2xf32>
    %920 = arith.cmpf ogt, %919, %918 : vector<1x2xf32>
    %c10_i32_147 = arith.constant 10 : i32
    %921 = vector.broadcast %c10_i32_147 : i32 to vector<1x2xi32>
    %922 = arith.select %920, %921, %917 : vector<1x2xi1>, vector<1x2xi32>
    %923 = arith.select %920, %919, %918 : vector<1x2xi1>, vector<1x2xf32>
    %924 = vector.extract_strided_slice %871 {offsets = [11, 0], sizes = [1, 2], strides = [1, 1]} : vector<12x2xf32> to vector<1x2xf32>
    %925 = arith.cmpf ogt, %924, %923 : vector<1x2xf32>
    %c11_i32_148 = arith.constant 11 : i32
    %926 = vector.broadcast %c11_i32_148 : i32 to vector<1x2xi32>
    %927 = arith.select %925, %926, %922 : vector<1x2xi1>, vector<1x2xi32>
    %c7_149 = arith.constant 7 : index
    %c0_150 = arith.constant 0 : index
    %c0_151 = arith.constant 0 : index
    %928 = vector.load %arg5[%c7_149, %c0_150, %c0_151] : memref<8x1x2xi32, #tpu.memory_space<vmem>>, vector<1x1x2xi32>
    %929 = vector.shape_cast %928 : vector<1x1x2xi32> to vector<1x2xi32>
    %930 = vector.shape_cast %927 : vector<1x2xi32> to vector<1x1x2xi32>
    tpu.vector_store %arg5[%c7_149, %c0_150, %c0_151], %930 {strides = array<i32>} : memref<8x1x2xi32, #tpu.memory_space<vmem>>, vector<1x1x2xi32>,
    %c6_152 = arith.constant 6 : index
    %c0_153 = arith.constant 0 : index
    %c0_154 = arith.constant 0 : index
    %931 = vector.load %arg6[%c6_152, %c0_153, %c0_154] : memref<8x12x2xi32, #tpu.memory_space<vmem>>, vector<1x12x2xi32>
    %932 = vector.shape_cast %931 : vector<1x12x2xi32> to vector<12x2xi32>
    %c6_i32_155 = arith.constant 6 : i32
    %933 = vector.broadcast %c6_i32_155 : i32 to vector<1x2xi32>
    %934 = arith.cmpi eq, %2, %933 : vector<1x2xi32>
    %935 = vector.shape_cast %934 : vector<1x2xi1> to vector<1x2xi1>
    %936 = vector.broadcast %935 : vector<1x2xi1> to vector<12x2xi1>
    %937 = vector.shape_cast %927 : vector<1x2xi32> to vector<1x2xi32>
    %938 = vector.broadcast %937 : vector<1x2xi32> to vector<12x2xi32>
    %939 = arith.select %936, %938, %932 : vector<12x2xi1>, vector<12x2xi32>
    %940 = vector.extract_strided_slice %939 {offsets = [0, 0], sizes = [1, 2], strides = [1, 1]} : vector<12x2xi32> to vector<1x2xi32>
    %c1_i32_156 = arith.constant 1 : i32
    %941 = vector.broadcast %c1_i32_156 : i32 to vector<1x2xi32>
    %942 = arith.cmpi eq, %927, %941 : vector<1x2xi32>
    %943 = vector.extract_strided_slice %939 {offsets = [1, 0], sizes = [1, 2], strides = [1, 1]} : vector<12x2xi32> to vector<1x2xi32>
    %944 = arith.select %942, %943, %940 : vector<1x2xi1>, vector<1x2xi32>
    %c2_i32_157 = arith.constant 2 : i32
    %945 = vector.broadcast %c2_i32_157 : i32 to vector<1x2xi32>
    %946 = arith.cmpi eq, %927, %945 : vector<1x2xi32>
    %947 = vector.extract_strided_slice %939 {offsets = [2, 0], sizes = [1, 2], strides = [1, 1]} : vector<12x2xi32> to vector<1x2xi32>
    %948 = arith.select %946, %947, %944 : vector<1x2xi1>, vector<1x2xi32>
    %c3_i32_158 = arith.constant 3 : i32
    %949 = vector.broadcast %c3_i32_158 : i32 to vector<1x2xi32>
    %950 = arith.cmpi eq, %927, %949 : vector<1x2xi32>
    %951 = vector.extract_strided_slice %939 {offsets = [3, 0], sizes = [1, 2], strides = [1, 1]} : vector<12x2xi32> to vector<1x2xi32>
    %952 = arith.select %950, %951, %948 : vector<1x2xi1>, vector<1x2xi32>
    %c4_i32_159 = arith.constant 4 : i32
    %953 = vector.broadcast %c4_i32_159 : i32 to vector<1x2xi32>
    %954 = arith.cmpi eq, %927, %953 : vector<1x2xi32>
    %955 = vector.extract_strided_slice %939 {offsets = [4, 0], sizes = [1, 2], strides = [1, 1]} : vector<12x2xi32> to vector<1x2xi32>
    %956 = arith.select %954, %955, %952 : vector<1x2xi1>, vector<1x2xi32>
    %c5_i32_160 = arith.constant 5 : i32
    %957 = vector.broadcast %c5_i32_160 : i32 to vector<1x2xi32>
    %958 = arith.cmpi eq, %927, %957 : vector<1x2xi32>
    %959 = vector.extract_strided_slice %939 {offsets = [5, 0], sizes = [1, 2], strides = [1, 1]} : vector<12x2xi32> to vector<1x2xi32>
    %960 = arith.select %958, %959, %956 : vector<1x2xi1>, vector<1x2xi32>
    %c6_i32_161 = arith.constant 6 : i32
    %961 = vector.broadcast %c6_i32_161 : i32 to vector<1x2xi32>
    %962 = arith.cmpi eq, %927, %961 : vector<1x2xi32>
    %963 = vector.extract_strided_slice %939 {offsets = [6, 0], sizes = [1, 2], strides = [1, 1]} : vector<12x2xi32> to vector<1x2xi32>
    %964 = arith.select %962, %963, %960 : vector<1x2xi1>, vector<1x2xi32>
    %c7_i32_162 = arith.constant 7 : i32
    %965 = vector.broadcast %c7_i32_162 : i32 to vector<1x2xi32>
    %966 = arith.cmpi eq, %927, %965 : vector<1x2xi32>
    %967 = vector.extract_strided_slice %939 {offsets = [7, 0], sizes = [1, 2], strides = [1, 1]} : vector<12x2xi32> to vector<1x2xi32>
    %968 = arith.select %966, %967, %964 : vector<1x2xi1>, vector<1x2xi32>
    %c8_i32_163 = arith.constant 8 : i32
    %969 = vector.broadcast %c8_i32_163 : i32 to vector<1x2xi32>
    %970 = arith.cmpi eq, %927, %969 : vector<1x2xi32>
    %971 = vector.extract_strided_slice %939 {offsets = [8, 0], sizes = [1, 2], strides = [1, 1]} : vector<12x2xi32> to vector<1x2xi32>
    %972 = arith.select %970, %971, %968 : vector<1x2xi1>, vector<1x2xi32>
    %c9_i32_164 = arith.constant 9 : i32
    %973 = vector.broadcast %c9_i32_164 : i32 to vector<1x2xi32>
    %974 = arith.cmpi eq, %927, %973 : vector<1x2xi32>
    %975 = vector.extract_strided_slice %939 {offsets = [9, 0], sizes = [1, 2], strides = [1, 1]} : vector<12x2xi32> to vector<1x2xi32>
    %976 = arith.select %974, %975, %972 : vector<1x2xi1>, vector<1x2xi32>
    %c10_i32_165 = arith.constant 10 : i32
    %977 = vector.broadcast %c10_i32_165 : i32 to vector<1x2xi32>
    %978 = arith.cmpi eq, %927, %977 : vector<1x2xi32>
    %979 = vector.extract_strided_slice %939 {offsets = [10, 0], sizes = [1, 2], strides = [1, 1]} : vector<12x2xi32> to vector<1x2xi32>
    %980 = arith.select %978, %979, %976 : vector<1x2xi1>, vector<1x2xi32>
    %c11_i32_166 = arith.constant 11 : i32
    %981 = vector.broadcast %c11_i32_166 : i32 to vector<1x2xi32>
    %982 = arith.cmpi eq, %927, %981 : vector<1x2xi32>
    %983 = vector.extract_strided_slice %939 {offsets = [11, 0], sizes = [1, 2], strides = [1, 1]} : vector<12x2xi32> to vector<1x2xi32>
    %984 = arith.select %982, %983, %980 : vector<1x2xi1>, vector<1x2xi32>
    %c6_167 = arith.constant 6 : index
    %c0_168 = arith.constant 0 : index
    %c0_169 = arith.constant 0 : index
    %985 = vector.load %arg5[%c6_167, %c0_168, %c0_169] : memref<8x1x2xi32, #tpu.memory_space<vmem>>, vector<1x1x2xi32>
    %986 = vector.shape_cast %985 : vector<1x1x2xi32> to vector<1x2xi32>
    %987 = vector.shape_cast %984 : vector<1x2xi32> to vector<1x1x2xi32>
    tpu.vector_store %arg5[%c6_167, %c0_168, %c0_169], %987 {strides = array<i32>} : memref<8x1x2xi32, #tpu.memory_space<vmem>>, vector<1x1x2xi32>,
    %c5_170 = arith.constant 5 : index
    %c0_171 = arith.constant 0 : index
    %c0_172 = arith.constant 0 : index
    %988 = vector.load %arg6[%c5_170, %c0_171, %c0_172] : memref<8x12x2xi32, #tpu.memory_space<vmem>>, vector<1x12x2xi32>
    %989 = vector.shape_cast %988 : vector<1x12x2xi32> to vector<12x2xi32>
    %c5_i32_173 = arith.constant 5 : i32
    %990 = vector.broadcast %c5_i32_173 : i32 to vector<1x2xi32>
    %991 = arith.cmpi eq, %2, %990 : vector<1x2xi32>
    %992 = vector.shape_cast %991 : vector<1x2xi1> to vector<1x2xi1>
    %993 = vector.broadcast %992 : vector<1x2xi1> to vector<12x2xi1>
    %994 = vector.shape_cast %927 : vector<1x2xi32> to vector<1x2xi32>
    %995 = vector.broadcast %994 : vector<1x2xi32> to vector<12x2xi32>
    %996 = arith.select %993, %995, %989 : vector<12x2xi1>, vector<12x2xi32>
    %997 = vector.extract_strided_slice %996 {offsets = [0, 0], sizes = [1, 2], strides = [1, 1]} : vector<12x2xi32> to vector<1x2xi32>
    %c1_i32_174 = arith.constant 1 : i32
    %998 = vector.broadcast %c1_i32_174 : i32 to vector<1x2xi32>
    %999 = arith.cmpi eq, %984, %998 : vector<1x2xi32>
    %1000 = vector.extract_strided_slice %996 {offsets = [1, 0], sizes = [1, 2], strides = [1, 1]} : vector<12x2xi32> to vector<1x2xi32>
    %1001 = arith.select %999, %1000, %997 : vector<1x2xi1>, vector<1x2xi32>
    %c2_i32_175 = arith.constant 2 : i32
    %1002 = vector.broadcast %c2_i32_175 : i32 to vector<1x2xi32>
    %1003 = arith.cmpi eq, %984, %1002 : vector<1x2xi32>
    %1004 = vector.extract_strided_slice %996 {offsets = [2, 0], sizes = [1, 2], strides = [1, 1]} : vector<12x2xi32> to vector<1x2xi32>
    %1005 = arith.select %1003, %1004, %1001 : vector<1x2xi1>, vector<1x2xi32>
    %c3_i32_176 = arith.constant 3 : i32
    %1006 = vector.broadcast %c3_i32_176 : i32 to vector<1x2xi32>
    %1007 = arith.cmpi eq, %984, %1006 : vector<1x2xi32>
    %1008 = vector.extract_strided_slice %996 {offsets = [3, 0], sizes = [1, 2], strides = [1, 1]} : vector<12x2xi32> to vector<1x2xi32>
    %1009 = arith.select %1007, %1008, %1005 : vector<1x2xi1>, vector<1x2xi32>
    %c4_i32_177 = arith.constant 4 : i32
    %1010 = vector.broadcast %c4_i32_177 : i32 to vector<1x2xi32>
    %1011 = arith.cmpi eq, %984, %1010 : vector<1x2xi32>
    %1012 = vector.extract_strided_slice %996 {offsets = [4, 0], sizes = [1, 2], strides = [1, 1]} : vector<12x2xi32> to vector<1x2xi32>
    %1013 = arith.select %1011, %1012, %1009 : vector<1x2xi1>, vector<1x2xi32>
    %c5_i32_178 = arith.constant 5 : i32
    %1014 = vector.broadcast %c5_i32_178 : i32 to vector<1x2xi32>
    %1015 = arith.cmpi eq, %984, %1014 : vector<1x2xi32>
    %1016 = vector.extract_strided_slice %996 {offsets = [5, 0], sizes = [1, 2], strides = [1, 1]} : vector<12x2xi32> to vector<1x2xi32>
    %1017 = arith.select %1015, %1016, %1013 : vector<1x2xi1>, vector<1x2xi32>
    %c6_i32_179 = arith.constant 6 : i32
    %1018 = vector.broadcast %c6_i32_179 : i32 to vector<1x2xi32>
    %1019 = arith.cmpi eq, %984, %1018 : vector<1x2xi32>
    %1020 = vector.extract_strided_slice %996 {offsets = [6, 0], sizes = [1, 2], strides = [1, 1]} : vector<12x2xi32> to vector<1x2xi32>
    %1021 = arith.select %1019, %1020, %1017 : vector<1x2xi1>, vector<1x2xi32>
    %c7_i32_180 = arith.constant 7 : i32
    %1022 = vector.broadcast %c7_i32_180 : i32 to vector<1x2xi32>
    %1023 = arith.cmpi eq, %984, %1022 : vector<1x2xi32>
    %1024 = vector.extract_strided_slice %996 {offsets = [7, 0], sizes = [1, 2], strides = [1, 1]} : vector<12x2xi32> to vector<1x2xi32>
    %1025 = arith.select %1023, %1024, %1021 : vector<1x2xi1>, vector<1x2xi32>
    %c8_i32_181 = arith.constant 8 : i32
    %1026 = vector.broadcast %c8_i32_181 : i32 to vector<1x2xi32>
    %1027 = arith.cmpi eq, %984, %1026 : vector<1x2xi32>
    %1028 = vector.extract_strided_slice %996 {offsets = [8, 0], sizes = [1, 2], strides = [1, 1]} : vector<12x2xi32> to vector<1x2xi32>
    %1029 = arith.select %1027, %1028, %1025 : vector<1x2xi1>, vector<1x2xi32>
    %c9_i32_182 = arith.constant 9 : i32
    %1030 = vector.broadcast %c9_i32_182 : i32 to vector<1x2xi32>
    %1031 = arith.cmpi eq, %984, %1030 : vector<1x2xi32>
    %1032 = vector.extract_strided_slice %996 {offsets = [9, 0], sizes = [1, 2], strides = [1, 1]} : vector<12x2xi32> to vector<1x2xi32>
    %1033 = arith.select %1031, %1032, %1029 : vector<1x2xi1>, vector<1x2xi32>
    %c10_i32_183 = arith.constant 10 : i32
    %1034 = vector.broadcast %c10_i32_183 : i32 to vector<1x2xi32>
    %1035 = arith.cmpi eq, %984, %1034 : vector<1x2xi32>
    %1036 = vector.extract_strided_slice %996 {offsets = [10, 0], sizes = [1, 2], strides = [1, 1]} : vector<12x2xi32> to vector<1x2xi32>
    %1037 = arith.select %1035, %1036, %1033 : vector<1x2xi1>, vector<1x2xi32>
    %c11_i32_184 = arith.constant 11 : i32
    %1038 = vector.broadcast %c11_i32_184 : i32 to vector<1x2xi32>
    %1039 = arith.cmpi eq, %984, %1038 : vector<1x2xi32>
    %1040 = vector.extract_strided_slice %996 {offsets = [11, 0], sizes = [1, 2], strides = [1, 1]} : vector<12x2xi32> to vector<1x2xi32>
    %1041 = arith.select %1039, %1040, %1037 : vector<1x2xi1>, vector<1x2xi32>
    %c5_185 = arith.constant 5 : index
    %c0_186 = arith.constant 0 : index
    %c0_187 = arith.constant 0 : index
    %1042 = vector.load %arg5[%c5_185, %c0_186, %c0_187] : memref<8x1x2xi32, #tpu.memory_space<vmem>>, vector<1x1x2xi32>
    %1043 = vector.shape_cast %1042 : vector<1x1x2xi32> to vector<1x2xi32>
    %1044 = vector.shape_cast %1041 : vector<1x2xi32> to vector<1x1x2xi32>
    tpu.vector_store %arg5[%c5_185, %c0_186, %c0_187], %1044 {strides = array<i32>} : memref<8x1x2xi32, #tpu.memory_space<vmem>>, vector<1x1x2xi32>,
    %c4_188 = arith.constant 4 : index
    %c0_189 = arith.constant 0 : index
    %c0_190 = arith.constant 0 : index
    %1045 = vector.load %arg6[%c4_188, %c0_189, %c0_190] : memref<8x12x2xi32, #tpu.memory_space<vmem>>, vector<1x12x2xi32>
    %1046 = vector.shape_cast %1045 : vector<1x12x2xi32> to vector<12x2xi32>
    %c4_i32_191 = arith.constant 4 : i32
    %1047 = vector.broadcast %c4_i32_191 : i32 to vector<1x2xi32>
    %1048 = arith.cmpi eq, %2, %1047 : vector<1x2xi32>
    %1049 = vector.shape_cast %1048 : vector<1x2xi1> to vector<1x2xi1>
    %1050 = vector.broadcast %1049 : vector<1x2xi1> to vector<12x2xi1>
    %1051 = vector.shape_cast %927 : vector<1x2xi32> to vector<1x2xi32>
    %1052 = vector.broadcast %1051 : vector<1x2xi32> to vector<12x2xi32>
    %1053 = arith.select %1050, %1052, %1046 : vector<12x2xi1>, vector<12x2xi32>
    %1054 = vector.extract_strided_slice %1053 {offsets = [0, 0], sizes = [1, 2], strides = [1, 1]} : vector<12x2xi32> to vector<1x2xi32>
    %c1_i32_192 = arith.constant 1 : i32
    %1055 = vector.broadcast %c1_i32_192 : i32 to vector<1x2xi32>
    %1056 = arith.cmpi eq, %1041, %1055 : vector<1x2xi32>
    %1057 = vector.extract_strided_slice %1053 {offsets = [1, 0], sizes = [1, 2], strides = [1, 1]} : vector<12x2xi32> to vector<1x2xi32>
    %1058 = arith.select %1056, %1057, %1054 : vector<1x2xi1>, vector<1x2xi32>
    %c2_i32_193 = arith.constant 2 : i32
    %1059 = vector.broadcast %c2_i32_193 : i32 to vector<1x2xi32>
    %1060 = arith.cmpi eq, %1041, %1059 : vector<1x2xi32>
    %1061 = vector.extract_strided_slice %1053 {offsets = [2, 0], sizes = [1, 2], strides = [1, 1]} : vector<12x2xi32> to vector<1x2xi32>
    %1062 = arith.select %1060, %1061, %1058 : vector<1x2xi1>, vector<1x2xi32>
    %c3_i32_194 = arith.constant 3 : i32
    %1063 = vector.broadcast %c3_i32_194 : i32 to vector<1x2xi32>
    %1064 = arith.cmpi eq, %1041, %1063 : vector<1x2xi32>
    %1065 = vector.extract_strided_slice %1053 {offsets = [3, 0], sizes = [1, 2], strides = [1, 1]} : vector<12x2xi32> to vector<1x2xi32>
    %1066 = arith.select %1064, %1065, %1062 : vector<1x2xi1>, vector<1x2xi32>
    %c4_i32_195 = arith.constant 4 : i32
    %1067 = vector.broadcast %c4_i32_195 : i32 to vector<1x2xi32>
    %1068 = arith.cmpi eq, %1041, %1067 : vector<1x2xi32>
    %1069 = vector.extract_strided_slice %1053 {offsets = [4, 0], sizes = [1, 2], strides = [1, 1]} : vector<12x2xi32> to vector<1x2xi32>
    %1070 = arith.select %1068, %1069, %1066 : vector<1x2xi1>, vector<1x2xi32>
    %c5_i32_196 = arith.constant 5 : i32
    %1071 = vector.broadcast %c5_i32_196 : i32 to vector<1x2xi32>
    %1072 = arith.cmpi eq, %1041, %1071 : vector<1x2xi32>
    %1073 = vector.extract_strided_slice %1053 {offsets = [5, 0], sizes = [1, 2], strides = [1, 1]} : vector<12x2xi32> to vector<1x2xi32>
    %1074 = arith.select %1072, %1073, %1070 : vector<1x2xi1>, vector<1x2xi32>
    %c6_i32_197 = arith.constant 6 : i32
    %1075 = vector.broadcast %c6_i32_197 : i32 to vector<1x2xi32>
    %1076 = arith.cmpi eq, %1041, %1075 : vector<1x2xi32>
    %1077 = vector.extract_strided_slice %1053 {offsets = [6, 0], sizes = [1, 2], strides = [1, 1]} : vector<12x2xi32> to vector<1x2xi32>
    %1078 = arith.select %1076, %1077, %1074 : vector<1x2xi1>, vector<1x2xi32>
    %c7_i32_198 = arith.constant 7 : i32
    %1079 = vector.broadcast %c7_i32_198 : i32 to vector<1x2xi32>
    %1080 = arith.cmpi eq, %1041, %1079 : vector<1x2xi32>
    %1081 = vector.extract_strided_slice %1053 {offsets = [7, 0], sizes = [1, 2], strides = [1, 1]} : vector<12x2xi32> to vector<1x2xi32>
    %1082 = arith.select %1080, %1081, %1078 : vector<1x2xi1>, vector<1x2xi32>
    %c8_i32_199 = arith.constant 8 : i32
    %1083 = vector.broadcast %c8_i32_199 : i32 to vector<1x2xi32>
    %1084 = arith.cmpi eq, %1041, %1083 : vector<1x2xi32>
    %1085 = vector.extract_strided_slice %1053 {offsets = [8, 0], sizes = [1, 2], strides = [1, 1]} : vector<12x2xi32> to vector<1x2xi32>
    %1086 = arith.select %1084, %1085, %1082 : vector<1x2xi1>, vector<1x2xi32>
    %c9_i32_200 = arith.constant 9 : i32
    %1087 = vector.broadcast %c9_i32_200 : i32 to vector<1x2xi32>
    %1088 = arith.cmpi eq, %1041, %1087 : vector<1x2xi32>
    %1089 = vector.extract_strided_slice %1053 {offsets = [9, 0], sizes = [1, 2], strides = [1, 1]} : vector<12x2xi32> to vector<1x2xi32>
    %1090 = arith.select %1088, %1089, %1086 : vector<1x2xi1>, vector<1x2xi32>
    %c10_i32_201 = arith.constant 10 : i32
    %1091 = vector.broadcast %c10_i32_201 : i32 to vector<1x2xi32>
    %1092 = arith.cmpi eq, %1041, %1091 : vector<1x2xi32>
    %1093 = vector.extract_strided_slice %1053 {offsets = [10, 0], sizes = [1, 2], strides = [1, 1]} : vector<12x2xi32> to vector<1x2xi32>
    %1094 = arith.select %1092, %1093, %1090 : vector<1x2xi1>, vector<1x2xi32>
    %c11_i32_202 = arith.constant 11 : i32
    %1095 = vector.broadcast %c11_i32_202 : i32 to vector<1x2xi32>
    %1096 = arith.cmpi eq, %1041, %1095 : vector<1x2xi32>
    %1097 = vector.extract_strided_slice %1053 {offsets = [11, 0], sizes = [1, 2], strides = [1, 1]} : vector<12x2xi32> to vector<1x2xi32>
    %1098 = arith.select %1096, %1097, %1094 : vector<1x2xi1>, vector<1x2xi32>
    %c4_203 = arith.constant 4 : index
    %c0_204 = arith.constant 0 : index
    %c0_205 = arith.constant 0 : index
    %1099 = vector.load %arg5[%c4_203, %c0_204, %c0_205] : memref<8x1x2xi32, #tpu.memory_space<vmem>>, vector<1x1x2xi32>
    %1100 = vector.shape_cast %1099 : vector<1x1x2xi32> to vector<1x2xi32>
    %1101 = vector.shape_cast %1098 : vector<1x2xi32> to vector<1x1x2xi32>
    tpu.vector_store %arg5[%c4_203, %c0_204, %c0_205], %1101 {strides = array<i32>} : memref<8x1x2xi32, #tpu.memory_space<vmem>>, vector<1x1x2xi32>,
    %c3_206 = arith.constant 3 : index
    %c0_207 = arith.constant 0 : index
    %c0_208 = arith.constant 0 : index
    %1102 = vector.load %arg6[%c3_206, %c0_207, %c0_208] : memref<8x12x2xi32, #tpu.memory_space<vmem>>, vector<1x12x2xi32>
    %1103 = vector.shape_cast %1102 : vector<1x12x2xi32> to vector<12x2xi32>
    %c3_i32_209 = arith.constant 3 : i32
    %1104 = vector.broadcast %c3_i32_209 : i32 to vector<1x2xi32>
    %1105 = arith.cmpi eq, %2, %1104 : vector<1x2xi32>
    %1106 = vector.shape_cast %1105 : vector<1x2xi1> to vector<1x2xi1>
    %1107 = vector.broadcast %1106 : vector<1x2xi1> to vector<12x2xi1>
    %1108 = vector.shape_cast %927 : vector<1x2xi32> to vector<1x2xi32>
    %1109 = vector.broadcast %1108 : vector<1x2xi32> to vector<12x2xi32>
    %1110 = arith.select %1107, %1109, %1103 : vector<12x2xi1>, vector<12x2xi32>
    %1111 = vector.extract_strided_slice %1110 {offsets = [0, 0], sizes = [1, 2], strides = [1, 1]} : vector<12x2xi32> to vector<1x2xi32>
    %c1_i32_210 = arith.constant 1 : i32
    %1112 = vector.broadcast %c1_i32_210 : i32 to vector<1x2xi32>
    %1113 = arith.cmpi eq, %1098, %1112 : vector<1x2xi32>
    %1114 = vector.extract_strided_slice %1110 {offsets = [1, 0], sizes = [1, 2], strides = [1, 1]} : vector<12x2xi32> to vector<1x2xi32>
    %1115 = arith.select %1113, %1114, %1111 : vector<1x2xi1>, vector<1x2xi32>
    %c2_i32_211 = arith.constant 2 : i32
    %1116 = vector.broadcast %c2_i32_211 : i32 to vector<1x2xi32>
    %1117 = arith.cmpi eq, %1098, %1116 : vector<1x2xi32>
    %1118 = vector.extract_strided_slice %1110 {offsets = [2, 0], sizes = [1, 2], strides = [1, 1]} : vector<12x2xi32> to vector<1x2xi32>
    %1119 = arith.select %1117, %1118, %1115 : vector<1x2xi1>, vector<1x2xi32>
    %c3_i32_212 = arith.constant 3 : i32
    %1120 = vector.broadcast %c3_i32_212 : i32 to vector<1x2xi32>
    %1121 = arith.cmpi eq, %1098, %1120 : vector<1x2xi32>
    %1122 = vector.extract_strided_slice %1110 {offsets = [3, 0], sizes = [1, 2], strides = [1, 1]} : vector<12x2xi32> to vector<1x2xi32>
    %1123 = arith.select %1121, %1122, %1119 : vector<1x2xi1>, vector<1x2xi32>
    %c4_i32_213 = arith.constant 4 : i32
    %1124 = vector.broadcast %c4_i32_213 : i32 to vector<1x2xi32>
    %1125 = arith.cmpi eq, %1098, %1124 : vector<1x2xi32>
    %1126 = vector.extract_strided_slice %1110 {offsets = [4, 0], sizes = [1, 2], strides = [1, 1]} : vector<12x2xi32> to vector<1x2xi32>
    %1127 = arith.select %1125, %1126, %1123 : vector<1x2xi1>, vector<1x2xi32>
    %c5_i32_214 = arith.constant 5 : i32
    %1128 = vector.broadcast %c5_i32_214 : i32 to vector<1x2xi32>
    %1129 = arith.cmpi eq, %1098, %1128 : vector<1x2xi32>
    %1130 = vector.extract_strided_slice %1110 {offsets = [5, 0], sizes = [1, 2], strides = [1, 1]} : vector<12x2xi32> to vector<1x2xi32>
    %1131 = arith.select %1129, %1130, %1127 : vector<1x2xi1>, vector<1x2xi32>
    %c6_i32_215 = arith.constant 6 : i32
    %1132 = vector.broadcast %c6_i32_215 : i32 to vector<1x2xi32>
    %1133 = arith.cmpi eq, %1098, %1132 : vector<1x2xi32>
    %1134 = vector.extract_strided_slice %1110 {offsets = [6, 0], sizes = [1, 2], strides = [1, 1]} : vector<12x2xi32> to vector<1x2xi32>
    %1135 = arith.select %1133, %1134, %1131 : vector<1x2xi1>, vector<1x2xi32>
    %c7_i32_216 = arith.constant 7 : i32
    %1136 = vector.broadcast %c7_i32_216 : i32 to vector<1x2xi32>
    %1137 = arith.cmpi eq, %1098, %1136 : vector<1x2xi32>
    %1138 = vector.extract_strided_slice %1110 {offsets = [7, 0], sizes = [1, 2], strides = [1, 1]} : vector<12x2xi32> to vector<1x2xi32>
    %1139 = arith.select %1137, %1138, %1135 : vector<1x2xi1>, vector<1x2xi32>
    %c8_i32_217 = arith.constant 8 : i32
    %1140 = vector.broadcast %c8_i32_217 : i32 to vector<1x2xi32>
    %1141 = arith.cmpi eq, %1098, %1140 : vector<1x2xi32>
    %1142 = vector.extract_strided_slice %1110 {offsets = [8, 0], sizes = [1, 2], strides = [1, 1]} : vector<12x2xi32> to vector<1x2xi32>
    %1143 = arith.select %1141, %1142, %1139 : vector<1x2xi1>, vector<1x2xi32>
    %c9_i32_218 = arith.constant 9 : i32
    %1144 = vector.broadcast %c9_i32_218 : i32 to vector<1x2xi32>
    %1145 = arith.cmpi eq, %1098, %1144 : vector<1x2xi32>
    %1146 = vector.extract_strided_slice %1110 {offsets = [9, 0], sizes = [1, 2], strides = [1, 1]} : vector<12x2xi32> to vector<1x2xi32>
    %1147 = arith.select %1145, %1146, %1143 : vector<1x2xi1>, vector<1x2xi32>
    %c10_i32_219 = arith.constant 10 : i32
    %1148 = vector.broadcast %c10_i32_219 : i32 to vector<1x2xi32>
    %1149 = arith.cmpi eq, %1098, %1148 : vector<1x2xi32>
    %1150 = vector.extract_strided_slice %1110 {offsets = [10, 0], sizes = [1, 2], strides = [1, 1]} : vector<12x2xi32> to vector<1x2xi32>
    %1151 = arith.select %1149, %1150, %1147 : vector<1x2xi1>, vector<1x2xi32>
    %c11_i32_220 = arith.constant 11 : i32
    %1152 = vector.broadcast %c11_i32_220 : i32 to vector<1x2xi32>
    %1153 = arith.cmpi eq, %1098, %1152 : vector<1x2xi32>
    %1154 = vector.extract_strided_slice %1110 {offsets = [11, 0], sizes = [1, 2], strides = [1, 1]} : vector<12x2xi32> to vector<1x2xi32>
    %1155 = arith.select %1153, %1154, %1151 : vector<1x2xi1>, vector<1x2xi32>
    %c3_221 = arith.constant 3 : index
    %c0_222 = arith.constant 0 : index
    %c0_223 = arith.constant 0 : index
    %1156 = vector.load %arg5[%c3_221, %c0_222, %c0_223] : memref<8x1x2xi32, #tpu.memory_space<vmem>>, vector<1x1x2xi32>
    %1157 = vector.shape_cast %1156 : vector<1x1x2xi32> to vector<1x2xi32>
    %1158 = vector.shape_cast %1155 : vector<1x2xi32> to vector<1x1x2xi32>
    tpu.vector_store %arg5[%c3_221, %c0_222, %c0_223], %1158 {strides = array<i32>} : memref<8x1x2xi32, #tpu.memory_space<vmem>>, vector<1x1x2xi32>,
    %c2_224 = arith.constant 2 : index
    %c0_225 = arith.constant 0 : index
    %c0_226 = arith.constant 0 : index
    %1159 = vector.load %arg6[%c2_224, %c0_225, %c0_226] : memref<8x12x2xi32, #tpu.memory_space<vmem>>, vector<1x12x2xi32>
    %1160 = vector.shape_cast %1159 : vector<1x12x2xi32> to vector<12x2xi32>
    %c2_i32_227 = arith.constant 2 : i32
    %1161 = vector.broadcast %c2_i32_227 : i32 to vector<1x2xi32>
    %1162 = arith.cmpi eq, %2, %1161 : vector<1x2xi32>
    %1163 = vector.shape_cast %1162 : vector<1x2xi1> to vector<1x2xi1>
    %1164 = vector.broadcast %1163 : vector<1x2xi1> to vector<12x2xi1>
    %1165 = vector.shape_cast %927 : vector<1x2xi32> to vector<1x2xi32>
    %1166 = vector.broadcast %1165 : vector<1x2xi32> to vector<12x2xi32>
    %1167 = arith.select %1164, %1166, %1160 : vector<12x2xi1>, vector<12x2xi32>
    %1168 = vector.extract_strided_slice %1167 {offsets = [0, 0], sizes = [1, 2], strides = [1, 1]} : vector<12x2xi32> to vector<1x2xi32>
    %c1_i32_228 = arith.constant 1 : i32
    %1169 = vector.broadcast %c1_i32_228 : i32 to vector<1x2xi32>
    %1170 = arith.cmpi eq, %1155, %1169 : vector<1x2xi32>
    %1171 = vector.extract_strided_slice %1167 {offsets = [1, 0], sizes = [1, 2], strides = [1, 1]} : vector<12x2xi32> to vector<1x2xi32>
    %1172 = arith.select %1170, %1171, %1168 : vector<1x2xi1>, vector<1x2xi32>
    %c2_i32_229 = arith.constant 2 : i32
    %1173 = vector.broadcast %c2_i32_229 : i32 to vector<1x2xi32>
    %1174 = arith.cmpi eq, %1155, %1173 : vector<1x2xi32>
    %1175 = vector.extract_strided_slice %1167 {offsets = [2, 0], sizes = [1, 2], strides = [1, 1]} : vector<12x2xi32> to vector<1x2xi32>
    %1176 = arith.select %1174, %1175, %1172 : vector<1x2xi1>, vector<1x2xi32>
    %c3_i32_230 = arith.constant 3 : i32
    %1177 = vector.broadcast %c3_i32_230 : i32 to vector<1x2xi32>
    %1178 = arith.cmpi eq, %1155, %1177 : vector<1x2xi32>
    %1179 = vector.extract_strided_slice %1167 {offsets = [3, 0], sizes = [1, 2], strides = [1, 1]} : vector<12x2xi32> to vector<1x2xi32>
    %1180 = arith.select %1178, %1179, %1176 : vector<1x2xi1>, vector<1x2xi32>
    %c4_i32_231 = arith.constant 4 : i32
    %1181 = vector.broadcast %c4_i32_231 : i32 to vector<1x2xi32>
    %1182 = arith.cmpi eq, %1155, %1181 : vector<1x2xi32>
    %1183 = vector.extract_strided_slice %1167 {offsets = [4, 0], sizes = [1, 2], strides = [1, 1]} : vector<12x2xi32> to vector<1x2xi32>
    %1184 = arith.select %1182, %1183, %1180 : vector<1x2xi1>, vector<1x2xi32>
    %c5_i32_232 = arith.constant 5 : i32
    %1185 = vector.broadcast %c5_i32_232 : i32 to vector<1x2xi32>
    %1186 = arith.cmpi eq, %1155, %1185 : vector<1x2xi32>
    %1187 = vector.extract_strided_slice %1167 {offsets = [5, 0], sizes = [1, 2], strides = [1, 1]} : vector<12x2xi32> to vector<1x2xi32>
    %1188 = arith.select %1186, %1187, %1184 : vector<1x2xi1>, vector<1x2xi32>
    %c6_i32_233 = arith.constant 6 : i32
    %1189 = vector.broadcast %c6_i32_233 : i32 to vector<1x2xi32>
    %1190 = arith.cmpi eq, %1155, %1189 : vector<1x2xi32>
    %1191 = vector.extract_strided_slice %1167 {offsets = [6, 0], sizes = [1, 2], strides = [1, 1]} : vector<12x2xi32> to vector<1x2xi32>
    %1192 = arith.select %1190, %1191, %1188 : vector<1x2xi1>, vector<1x2xi32>
    %c7_i32_234 = arith.constant 7 : i32
    %1193 = vector.broadcast %c7_i32_234 : i32 to vector<1x2xi32>
    %1194 = arith.cmpi eq, %1155, %1193 : vector<1x2xi32>
    %1195 = vector.extract_strided_slice %1167 {offsets = [7, 0], sizes = [1, 2], strides = [1, 1]} : vector<12x2xi32> to vector<1x2xi32>
    %1196 = arith.select %1194, %1195, %1192 : vector<1x2xi1>, vector<1x2xi32>
    %c8_i32_235 = arith.constant 8 : i32
    %1197 = vector.broadcast %c8_i32_235 : i32 to vector<1x2xi32>
    %1198 = arith.cmpi eq, %1155, %1197 : vector<1x2xi32>
    %1199 = vector.extract_strided_slice %1167 {offsets = [8, 0], sizes = [1, 2], strides = [1, 1]} : vector<12x2xi32> to vector<1x2xi32>
    %1200 = arith.select %1198, %1199, %1196 : vector<1x2xi1>, vector<1x2xi32>
    %c9_i32_236 = arith.constant 9 : i32
    %1201 = vector.broadcast %c9_i32_236 : i32 to vector<1x2xi32>
    %1202 = arith.cmpi eq, %1155, %1201 : vector<1x2xi32>
    %1203 = vector.extract_strided_slice %1167 {offsets = [9, 0], sizes = [1, 2], strides = [1, 1]} : vector<12x2xi32> to vector<1x2xi32>
    %1204 = arith.select %1202, %1203, %1200 : vector<1x2xi1>, vector<1x2xi32>
    %c10_i32_237 = arith.constant 10 : i32
    %1205 = vector.broadcast %c10_i32_237 : i32 to vector<1x2xi32>
    %1206 = arith.cmpi eq, %1155, %1205 : vector<1x2xi32>
    %1207 = vector.extract_strided_slice %1167 {offsets = [10, 0], sizes = [1, 2], strides = [1, 1]} : vector<12x2xi32> to vector<1x2xi32>
    %1208 = arith.select %1206, %1207, %1204 : vector<1x2xi1>, vector<1x2xi32>
    %c11_i32_238 = arith.constant 11 : i32
    %1209 = vector.broadcast %c11_i32_238 : i32 to vector<1x2xi32>
    %1210 = arith.cmpi eq, %1155, %1209 : vector<1x2xi32>
    %1211 = vector.extract_strided_slice %1167 {offsets = [11, 0], sizes = [1, 2], strides = [1, 1]} : vector<12x2xi32> to vector<1x2xi32>
    %1212 = arith.select %1210, %1211, %1208 : vector<1x2xi1>, vector<1x2xi32>
    %c2_239 = arith.constant 2 : index
    %c0_240 = arith.constant 0 : index
    %c0_241 = arith.constant 0 : index
    %1213 = vector.load %arg5[%c2_239, %c0_240, %c0_241] : memref<8x1x2xi32, #tpu.memory_space<vmem>>, vector<1x1x2xi32>
    %1214 = vector.shape_cast %1213 : vector<1x1x2xi32> to vector<1x2xi32>
    %1215 = vector.shape_cast %1212 : vector<1x2xi32> to vector<1x1x2xi32>
    tpu.vector_store %arg5[%c2_239, %c0_240, %c0_241], %1215 {strides = array<i32>} : memref<8x1x2xi32, #tpu.memory_space<vmem>>, vector<1x1x2xi32>,
    %c1_242 = arith.constant 1 : index
    %c0_243 = arith.constant 0 : index
    %c0_244 = arith.constant 0 : index
    %1216 = vector.load %arg6[%c1_242, %c0_243, %c0_244] : memref<8x12x2xi32, #tpu.memory_space<vmem>>, vector<1x12x2xi32>
    %1217 = vector.shape_cast %1216 : vector<1x12x2xi32> to vector<12x2xi32>
    %c1_i32_245 = arith.constant 1 : i32
    %1218 = vector.broadcast %c1_i32_245 : i32 to vector<1x2xi32>
    %1219 = arith.cmpi eq, %2, %1218 : vector<1x2xi32>
    %1220 = vector.shape_cast %1219 : vector<1x2xi1> to vector<1x2xi1>
    %1221 = vector.broadcast %1220 : vector<1x2xi1> to vector<12x2xi1>
    %1222 = vector.shape_cast %927 : vector<1x2xi32> to vector<1x2xi32>
    %1223 = vector.broadcast %1222 : vector<1x2xi32> to vector<12x2xi32>
    %1224 = arith.select %1221, %1223, %1217 : vector<12x2xi1>, vector<12x2xi32>
    %1225 = vector.extract_strided_slice %1224 {offsets = [0, 0], sizes = [1, 2], strides = [1, 1]} : vector<12x2xi32> to vector<1x2xi32>
    %c1_i32_246 = arith.constant 1 : i32
    %1226 = vector.broadcast %c1_i32_246 : i32 to vector<1x2xi32>
    %1227 = arith.cmpi eq, %1212, %1226 : vector<1x2xi32>
    %1228 = vector.extract_strided_slice %1224 {offsets = [1, 0], sizes = [1, 2], strides = [1, 1]} : vector<12x2xi32> to vector<1x2xi32>
    %1229 = arith.select %1227, %1228, %1225 : vector<1x2xi1>, vector<1x2xi32>
    %c2_i32_247 = arith.constant 2 : i32
    %1230 = vector.broadcast %c2_i32_247 : i32 to vector<1x2xi32>
    %1231 = arith.cmpi eq, %1212, %1230 : vector<1x2xi32>
    %1232 = vector.extract_strided_slice %1224 {offsets = [2, 0], sizes = [1, 2], strides = [1, 1]} : vector<12x2xi32> to vector<1x2xi32>
    %1233 = arith.select %1231, %1232, %1229 : vector<1x2xi1>, vector<1x2xi32>
    %c3_i32_248 = arith.constant 3 : i32
    %1234 = vector.broadcast %c3_i32_248 : i32 to vector<1x2xi32>
    %1235 = arith.cmpi eq, %1212, %1234 : vector<1x2xi32>
    %1236 = vector.extract_strided_slice %1224 {offsets = [3, 0], sizes = [1, 2], strides = [1, 1]} : vector<12x2xi32> to vector<1x2xi32>
    %1237 = arith.select %1235, %1236, %1233 : vector<1x2xi1>, vector<1x2xi32>
    %c4_i32_249 = arith.constant 4 : i32
    %1238 = vector.broadcast %c4_i32_249 : i32 to vector<1x2xi32>
    %1239 = arith.cmpi eq, %1212, %1238 : vector<1x2xi32>
    %1240 = vector.extract_strided_slice %1224 {offsets = [4, 0], sizes = [1, 2], strides = [1, 1]} : vector<12x2xi32> to vector<1x2xi32>
    %1241 = arith.select %1239, %1240, %1237 : vector<1x2xi1>, vector<1x2xi32>
    %c5_i32_250 = arith.constant 5 : i32
    %1242 = vector.broadcast %c5_i32_250 : i32 to vector<1x2xi32>
    %1243 = arith.cmpi eq, %1212, %1242 : vector<1x2xi32>
    %1244 = vector.extract_strided_slice %1224 {offsets = [5, 0], sizes = [1, 2], strides = [1, 1]} : vector<12x2xi32> to vector<1x2xi32>
    %1245 = arith.select %1243, %1244, %1241 : vector<1x2xi1>, vector<1x2xi32>
    %c6_i32_251 = arith.constant 6 : i32
    %1246 = vector.broadcast %c6_i32_251 : i32 to vector<1x2xi32>
    %1247 = arith.cmpi eq, %1212, %1246 : vector<1x2xi32>
    %1248 = vector.extract_strided_slice %1224 {offsets = [6, 0], sizes = [1, 2], strides = [1, 1]} : vector<12x2xi32> to vector<1x2xi32>
    %1249 = arith.select %1247, %1248, %1245 : vector<1x2xi1>, vector<1x2xi32>
    %c7_i32_252 = arith.constant 7 : i32
    %1250 = vector.broadcast %c7_i32_252 : i32 to vector<1x2xi32>
    %1251 = arith.cmpi eq, %1212, %1250 : vector<1x2xi32>
    %1252 = vector.extract_strided_slice %1224 {offsets = [7, 0], sizes = [1, 2], strides = [1, 1]} : vector<12x2xi32> to vector<1x2xi32>
    %1253 = arith.select %1251, %1252, %1249 : vector<1x2xi1>, vector<1x2xi32>
    %c8_i32_253 = arith.constant 8 : i32
    %1254 = vector.broadcast %c8_i32_253 : i32 to vector<1x2xi32>
    %1255 = arith.cmpi eq, %1212, %1254 : vector<1x2xi32>
    %1256 = vector.extract_strided_slice %1224 {offsets = [8, 0], sizes = [1, 2], strides = [1, 1]} : vector<12x2xi32> to vector<1x2xi32>
    %1257 = arith.select %1255, %1256, %1253 : vector<1x2xi1>, vector<1x2xi32>
    %c9_i32_254 = arith.constant 9 : i32
    %1258 = vector.broadcast %c9_i32_254 : i32 to vector<1x2xi32>
    %1259 = arith.cmpi eq, %1212, %1258 : vector<1x2xi32>
    %1260 = vector.extract_strided_slice %1224 {offsets = [9, 0], sizes = [1, 2], strides = [1, 1]} : vector<12x2xi32> to vector<1x2xi32>
    %1261 = arith.select %1259, %1260, %1257 : vector<1x2xi1>, vector<1x2xi32>
    %c10_i32_255 = arith.constant 10 : i32
    %1262 = vector.broadcast %c10_i32_255 : i32 to vector<1x2xi32>
    %1263 = arith.cmpi eq, %1212, %1262 : vector<1x2xi32>
    %1264 = vector.extract_strided_slice %1224 {offsets = [10, 0], sizes = [1, 2], strides = [1, 1]} : vector<12x2xi32> to vector<1x2xi32>
    %1265 = arith.select %1263, %1264, %1261 : vector<1x2xi1>, vector<1x2xi32>
    %c11_i32_256 = arith.constant 11 : i32
    %1266 = vector.broadcast %c11_i32_256 : i32 to vector<1x2xi32>
    %1267 = arith.cmpi eq, %1212, %1266 : vector<1x2xi32>
    %1268 = vector.extract_strided_slice %1224 {offsets = [11, 0], sizes = [1, 2], strides = [1, 1]} : vector<12x2xi32> to vector<1x2xi32>
    %1269 = arith.select %1267, %1268, %1265 : vector<1x2xi1>, vector<1x2xi32>
    %c1_257 = arith.constant 1 : index
    %c0_258 = arith.constant 0 : index
    %c0_259 = arith.constant 0 : index
    %1270 = vector.load %arg5[%c1_257, %c0_258, %c0_259] : memref<8x1x2xi32, #tpu.memory_space<vmem>>, vector<1x1x2xi32>
    %1271 = vector.shape_cast %1270 : vector<1x1x2xi32> to vector<1x2xi32>
    %1272 = vector.shape_cast %1269 : vector<1x2xi32> to vector<1x1x2xi32>
    tpu.vector_store %arg5[%c1_257, %c0_258, %c0_259], %1272 {strides = array<i32>} : memref<8x1x2xi32, #tpu.memory_space<vmem>>, vector<1x1x2xi32>,
    %c0_260 = arith.constant 0 : index
    %c0_261 = arith.constant 0 : index
    %c0_262 = arith.constant 0 : index
    %1273 = vector.load %arg6[%c0_260, %c0_261, %c0_262] : memref<8x12x2xi32, #tpu.memory_space<vmem>>, vector<1x12x2xi32>
    %1274 = vector.shape_cast %1273 : vector<1x12x2xi32> to vector<12x2xi32>
    %c0_i32_263 = arith.constant 0 : i32
    %1275 = vector.broadcast %c0_i32_263 : i32 to vector<1x2xi32>
    %1276 = arith.cmpi eq, %2, %1275 : vector<1x2xi32>
    %1277 = vector.shape_cast %1276 : vector<1x2xi1> to vector<1x2xi1>
    %1278 = vector.broadcast %1277 : vector<1x2xi1> to vector<12x2xi1>
    %1279 = vector.shape_cast %927 : vector<1x2xi32> to vector<1x2xi32>
    %1280 = vector.broadcast %1279 : vector<1x2xi32> to vector<12x2xi32>
    %1281 = arith.select %1278, %1280, %1274 : vector<12x2xi1>, vector<12x2xi32>
    %1282 = vector.extract_strided_slice %1281 {offsets = [0, 0], sizes = [1, 2], strides = [1, 1]} : vector<12x2xi32> to vector<1x2xi32>
    %c1_i32_264 = arith.constant 1 : i32
    %1283 = vector.broadcast %c1_i32_264 : i32 to vector<1x2xi32>
    %1284 = arith.cmpi eq, %1269, %1283 : vector<1x2xi32>
    %1285 = vector.extract_strided_slice %1281 {offsets = [1, 0], sizes = [1, 2], strides = [1, 1]} : vector<12x2xi32> to vector<1x2xi32>
    %1286 = arith.select %1284, %1285, %1282 : vector<1x2xi1>, vector<1x2xi32>
    %c2_i32_265 = arith.constant 2 : i32
    %1287 = vector.broadcast %c2_i32_265 : i32 to vector<1x2xi32>
    %1288 = arith.cmpi eq, %1269, %1287 : vector<1x2xi32>
    %1289 = vector.extract_strided_slice %1281 {offsets = [2, 0], sizes = [1, 2], strides = [1, 1]} : vector<12x2xi32> to vector<1x2xi32>
    %1290 = arith.select %1288, %1289, %1286 : vector<1x2xi1>, vector<1x2xi32>
    %c3_i32_266 = arith.constant 3 : i32
    %1291 = vector.broadcast %c3_i32_266 : i32 to vector<1x2xi32>
    %1292 = arith.cmpi eq, %1269, %1291 : vector<1x2xi32>
    %1293 = vector.extract_strided_slice %1281 {offsets = [3, 0], sizes = [1, 2], strides = [1, 1]} : vector<12x2xi32> to vector<1x2xi32>
    %1294 = arith.select %1292, %1293, %1290 : vector<1x2xi1>, vector<1x2xi32>
    %c4_i32_267 = arith.constant 4 : i32
    %1295 = vector.broadcast %c4_i32_267 : i32 to vector<1x2xi32>
    %1296 = arith.cmpi eq, %1269, %1295 : vector<1x2xi32>
    %1297 = vector.extract_strided_slice %1281 {offsets = [4, 0], sizes = [1, 2], strides = [1, 1]} : vector<12x2xi32> to vector<1x2xi32>
    %1298 = arith.select %1296, %1297, %1294 : vector<1x2xi1>, vector<1x2xi32>
    %c5_i32_268 = arith.constant 5 : i32
    %1299 = vector.broadcast %c5_i32_268 : i32 to vector<1x2xi32>
    %1300 = arith.cmpi eq, %1269, %1299 : vector<1x2xi32>
    %1301 = vector.extract_strided_slice %1281 {offsets = [5, 0], sizes = [1, 2], strides = [1, 1]} : vector<12x2xi32> to vector<1x2xi32>
    %1302 = arith.select %1300, %1301, %1298 : vector<1x2xi1>, vector<1x2xi32>
    %c6_i32_269 = arith.constant 6 : i32
    %1303 = vector.broadcast %c6_i32_269 : i32 to vector<1x2xi32>
    %1304 = arith.cmpi eq, %1269, %1303 : vector<1x2xi32>
    %1305 = vector.extract_strided_slice %1281 {offsets = [6, 0], sizes = [1, 2], strides = [1, 1]} : vector<12x2xi32> to vector<1x2xi32>
    %1306 = arith.select %1304, %1305, %1302 : vector<1x2xi1>, vector<1x2xi32>
    %c7_i32_270 = arith.constant 7 : i32
    %1307 = vector.broadcast %c7_i32_270 : i32 to vector<1x2xi32>
    %1308 = arith.cmpi eq, %1269, %1307 : vector<1x2xi32>
    %1309 = vector.extract_strided_slice %1281 {offsets = [7, 0], sizes = [1, 2], strides = [1, 1]} : vector<12x2xi32> to vector<1x2xi32>
    %1310 = arith.select %1308, %1309, %1306 : vector<1x2xi1>, vector<1x2xi32>
    %c8_i32_271 = arith.constant 8 : i32
    %1311 = vector.broadcast %c8_i32_271 : i32 to vector<1x2xi32>
    %1312 = arith.cmpi eq, %1269, %1311 : vector<1x2xi32>
    %1313 = vector.extract_strided_slice %1281 {offsets = [8, 0], sizes = [1, 2], strides = [1, 1]} : vector<12x2xi32> to vector<1x2xi32>
    %1314 = arith.select %1312, %1313, %1310 : vector<1x2xi1>, vector<1x2xi32>
    %c9_i32_272 = arith.constant 9 : i32
    %1315 = vector.broadcast %c9_i32_272 : i32 to vector<1x2xi32>
    %1316 = arith.cmpi eq, %1269, %1315 : vector<1x2xi32>
    %1317 = vector.extract_strided_slice %1281 {offsets = [9, 0], sizes = [1, 2], strides = [1, 1]} : vector<12x2xi32> to vector<1x2xi32>
    %1318 = arith.select %1316, %1317, %1314 : vector<1x2xi1>, vector<1x2xi32>
    %c10_i32_273 = arith.constant 10 : i32
    %1319 = vector.broadcast %c10_i32_273 : i32 to vector<1x2xi32>
    %1320 = arith.cmpi eq, %1269, %1319 : vector<1x2xi32>
    %1321 = vector.extract_strided_slice %1281 {offsets = [10, 0], sizes = [1, 2], strides = [1, 1]} : vector<12x2xi32> to vector<1x2xi32>
    %1322 = arith.select %1320, %1321, %1318 : vector<1x2xi1>, vector<1x2xi32>
    %c11_i32_274 = arith.constant 11 : i32
    %1323 = vector.broadcast %c11_i32_274 : i32 to vector<1x2xi32>
    %1324 = arith.cmpi eq, %1269, %1323 : vector<1x2xi32>
    %1325 = vector.extract_strided_slice %1281 {offsets = [11, 0], sizes = [1, 2], strides = [1, 1]} : vector<12x2xi32> to vector<1x2xi32>
    %1326 = arith.select %1324, %1325, %1322 : vector<1x2xi1>, vector<1x2xi32>
    %c0_275 = arith.constant 0 : index
    %c0_276 = arith.constant 0 : index
    %c0_277 = arith.constant 0 : index
    %1327 = vector.load %arg5[%c0_275, %c0_276, %c0_277] : memref<8x1x2xi32, #tpu.memory_space<vmem>>, vector<1x1x2xi32>
    %1328 = vector.shape_cast %1327 : vector<1x1x2xi32> to vector<1x2xi32>
    %1329 = vector.shape_cast %1326 : vector<1x2xi32> to vector<1x1x2xi32>
    tpu.vector_store %arg5[%c0_275, %c0_276, %c0_277], %1329 {strides = array<i32>} : memref<8x1x2xi32, #tpu.memory_space<vmem>>, vector<1x1x2xi32>,
    return
  }
  func.func @transform_0(%arg0: i32) -> (i32, i32) {
    %c0_i32 = arith.constant 0 : i32
    %c0_i32_0 = arith.constant 0 : i32
    return %c0_i32, %arg0 : i32, i32
  }
  func.func @transform_1(%arg0: i32) -> (i32, i32, i32) {
    %c0_i32 = arith.constant 0 : i32
    %c0_i32_0 = arith.constant 0 : i32
    %c0_i32_1 = arith.constant 0 : i32
    return %c0_i32, %c0_i32_0, %arg0 : i32, i32, i32
  }
  func.func @transform_2(%arg0: i32) -> (i32, i32) {
    %c0_i32 = arith.constant 0 : i32
    %c0_i32_0 = arith.constant 0 : i32
    %c0_i32_1 = arith.constant 0 : i32
    return %c0_i32, %c0_i32_0 : i32, i32
  }
  func.func @transform_3(%arg0: i32) -> (i32, i32) {
    %c0_i32 = arith.constant 0 : i32
    %c0_i32_0 = arith.constant 0 : i32
    %c0_i32_1 = arith.constant 0 : i32
    return %c0_i32, %c0_i32_0 : i32, i32
  }
  func.func @transform_4(%arg0: i32) -> (i32, i32, i32) {
    %c0_i32 = arith.constant 0 : i32
    %c0_i32_0 = arith.constant 0 : i32
    %c0_i32_1 = arith.constant 0 : i32
    return %c0_i32, %c0_i32_0, %arg0 : i32, i32, i32
  }
}

</mosaic_0001>

<bundles_post_ra>
// kernel: tpu_custom_call.1
= control target key start
LH: loop header
LB: loop body
LE: loop exit
PB: predicated region body
PF: predicated region fallthrough
CT: control target
= control target key end

     0   :  { %v1858_v0 = vmov 1   ;;  %v1859_v1 = vmov 10   ;;  %v1860_v3 = vmov 2   ;;  %v3150_v4 = vmov 0   ;;  %s3145_s3 = inlined_call_operand.vmem [shape: f32[12,12], index: 3, kind: input, shape index: {}]   ;;  %s3146_s1 = inlined_call_operand.vmem [shape: f32[8,12,2], index: 1, kind: input, shape index: {}]   ;;  %s3147_s2 = inlined_call_operand.vmem [shape: f32[12,12], index: 2, kind: input, shape index: {}]   ;;  %s3148_s0 = inlined_call_operand.vmem [shape: s32[1,2], index: 0, kind: input, shape index: {}]   ;;  %s3149_s4 = inlined_call_operand.vmem [shape: s32[8,1,2], index: 4, kind: output, shape index: {}]  }
   0x1   :  { %1834 = vset.pattern.permute.xlu1 %v1858_v0  ;;  %1832 = vset.pattern.permute.xlu0 %v1859_v1  ;;  %v21_v2 = vld [vmem:[%s3145_s3] sm:$0xff]  ;;  %v1862_v5 = vmov 3   ;;  %v1863_v6 = vmov 4   ;;  %v1864_v7 = vmov 5   ;;  %v1865_v8 = vmov 6   ;;  %v1940_v29 = vld [vmem:[%s3146_s1 + $0x10] sm:$0xff] }
   0x2   :  { %61 = vperm.xlu1 %1834, %v21_v2   ;;  %27 = vperm.xlu0 %1832, %v21_v2   ;;  %v22_v9 = vld [vmem:[%s3145_s3 + $0x8] sm:$0xf]  ;;  %v1866_v10 = vmov 7   ;;  %v1867_v11 = vmov 9   ;;  %v1868_v12 = vmov 11   ;;  %v1869_v13 = vmov 8  }
   0x3   :  { %v40_v14 = vlaneseq  ;;  %v23_v16 = vld [vmem:[%s3146_s1] sm:$0xff]  ;;  %v20_v55 = vld [vmem:[%s3147_s2 + $0x8] sm:$0xf]  ;;  %vm299_vm15 = vcmask 15360  }
   0x4   :  { %v19_v49 = vld [vmem:[%s3147_s2] sm:$0xff]  ;;  %v24_v63 = vld [vmem:[%s3146_s1 + $0x8] sm:$0xf] }
   0x5   :  { %v41_v15 = vshrl.u32 %v40_v14, 7  ;;  %v2040_v14 = vld [vmem:[%s3148_s0] sm:$0x1] }
   0x6   :  { %1835 = vset.pattern.permute.xlu1 %v1860_v3  ;;  %1833 = vset.pattern.permute.xlu0 %v3150_v4  ;;  %3227 = vst [vmem:[#allocation16_spill] sm:$0xff] %v2040_v14  ;;  %vm290_vm6 = vcmp.gt.s32.totalorder %v2040_v14, 1 }
   0x7   :  { %83 = vperm.xlu1 %1835, %v21_v2   ;;  %45 = vperm.xlu0 %1833, %v21_v2   ;;  %v1906_v17 = vsub.s32 2, %v41_v15  ;;  %v1908_v18 = vsub.s32 0, %v41_v15  ;;  %v1914_v21 = vsub.s32 1, %v41_v15  ;;  %v1927_v25 = vsub.s32 3, %v41_v15 }
   0x8   :  { %v1929_v26 = vsub.s32 4, %v41_v15  ;;  %v1965_v41 = vsub.s32 5, %v41_v15  ;;  %v1984_v51 = vsub.s32 6, %v41_v15  ;;  %v2000_v58 = vsub.s32 7, %v41_v15 }
   0xa   :  { %3217 = vst [vmem:[#allocation6_spill] sm:$0xff] %v1929_v26  ;;  %3222 = vst [vmem:[#allocation11_spill] sm:$0xff] %v1965_v41 }
   0xb   :  { %1836 = vset.pattern.permute.xlu1 %v1862_v5  ;;  %1837 = vset.pattern.permute.xlu0 %v1863_v6  ;;  %3223 = vst [vmem:[#allocation12_spill] sm:$0xff] %v1984_v51 }
   0xc   :  { %105 = vperm.xlu1 %1836, %v21_v2   ;;  %127 = vperm.xlu0 %1837, %v21_v2  }
  0x10   :  { %1838 = vset.pattern.permute.xlu1 %v1864_v7  ;;  %1840 = vset.pattern.permute.xlu0 %v1865_v8 }
  0x11   :  { %149 = vperm.xlu1 %1838, %v21_v2   ;;  %171 = vperm.xlu0 %1840, %v21_v2  }
  0x15   :  { %1839 = vset.pattern.permute.xlu1 %v1859_v1  ;;  %1843 = vset.pattern.permute.xlu0 %v1858_v0 }
  0x16   :  { %32 = vperm.xlu1 %1839, %v22_v9   ;;  %65 = vperm.xlu0 %1843, %v22_v9  }
  0x1a   :  { %1841 = vset.pattern.permute.xlu1 %v1866_v10  ;;  %1846 = vset.pattern.permute.xlu0 %v1867_v11 }
  0x1b   :  { %193 = vperm.xlu1 %1841, %v21_v2   ;;  %237 = vperm.xlu0 %1846, %v21_v2  }
  0x1f   :  { %1842 = vset.pattern.permute.xlu1 %v3150_v4  ;;  %1849 = vset.pattern.permute.xlu0 %v1868_v12 }
  0x20   :  { %49 = vperm.xlu1 %1842, %v22_v9   ;;  %273 = vperm.xlu0 %1849, %v21_v2  }
  0x24   :  { %1844 = vset.pattern.permute.xlu1 %v1869_v13  ;;  %1852 = vset.pattern.permute.xlu0 %v1866_v10 }
  0x25   :  { %215 = vperm.xlu1 %1844, %v21_v2   ;;  %197 = vperm.xlu0 %1852, %v22_v9  }
  0x29   :  { %1845 = vset.pattern.permute.xlu1 %v1860_v3  ;;  %1855 = vset.pattern.permute.xlu0 %v1868_v12 }
  0x2a   :  { %87 = vperm.xlu1 %1845, %v22_v9   ;;  %277 = vperm.xlu0 %1855, %v22_v9  }
  0x2e   :  { %1847 = vset.pattern.permute.xlu1 %v1862_v5 }
  0x2f   :  { %109 = vperm.xlu1 %1847, %v22_v9  }
  0x33   :  { %1848 = vset.pattern.permute.xlu1 %v1863_v6 }
  0x34   :  { %131 = vperm.xlu1 %1848, %v22_v9  }
  0x38   :  { %1850 = vset.pattern.permute.xlu1 %v1864_v7 }
  0x39   :  { %153 = vperm.xlu1 %1850, %v22_v9  }
  0x3d   :  { %1851 = vset.pattern.permute.xlu1 %v1865_v8 }
  0x3e   :  { %175 = vperm.xlu1 %1851, %v22_v9  }
  0x42   :  { %1853 = vset.pattern.permute.xlu1 %v1869_v13 }
  0x43   :  { %219 = vperm.xlu1 %1853, %v22_v9  }
  0x47   :  { %1854 = vset.pattern.permute.xlu1 %v1867_v11 }
  0x48   :  { %241 = vperm.xlu1 %1854, %v22_v9  }
  0x4c   :  { %1856 = vset.pattern.permute.xlu1 %v1868_v12 }
  0x4d   :  { %1430 = vperm.xlu1 %1856, %v19_v49  }
  0x51   :  { %1435 = vperm.xlu1 %1856, %v20_v55   ;;  %v2081_v55 = vld [vmem:[%s3146_s1 + $0x18] sm:$0xf] }
  0x81   :  { %v1910_v19 = vpop.permute.xlu1 %61  ;;  %v1912_v20 = vpop.permute.xlu0 %27 }
  0x82   :  { %3214 = vst [vmem:[#allocation3_spill] sm:$0xff] %v1910_v19  ;;  %3215 = vst [vmem:[#allocation4_spill] sm:$0xff] %v1912_v20  ;;  %v1917_v22 = vadd.f32 %v1912_v20, %v23_v16 }
  0x84   :  { %3216 = vst [vmem:[#allocation5_spill] sm:$0xff] %v1917_v22  ;;  %v1921_v23 = vrot.slane %v1917_v22, %v1906_v17  ;;  %v1925_v24 = vrot.slane %v1917_v22, %v1908_v18  ;;  %v1933_v27 = vrot.slane %v1917_v22, %v1914_v21  ;;  %v1952_v34 = vrot.slane %v1917_v22, %v1927_v25 }
  0x85   :  { %v1957_v36 = vrot.slane %v1917_v22, %v1929_v26  ;;  %v1976_v47 = vrot.slane %v1917_v22, %v1965_v41  ;;  %v1996_v56 = vrot.slane %v1917_v22, %v1984_v51  ;;  %v2008_v62 = vrot.slane %v1917_v22, %v2000_v58 }
  0x86   :  { %v1935_v28 = vpop.permute.xlu1 %83  ;;  %v1942_v30 = vpop.permute.xlu0 %45  ;;  %v68_v33 = vadd.f32 %v1910_v19, %v1933_v27 }
  0x87   :  { %3218 = vst [vmem:[#allocation7_spill] sm:$0xff] %v1935_v28  ;;  %3219 = vst [vmem:[#allocation8_spill] sm:$0xff] %v1942_v30  ;;  %v90_v31 = vadd.f32 %v1935_v28, %v1921_v23  ;;  %v52_v32 = vadd.f32 %v1942_v30, %v1925_v24 }
  0x88   :  { %v70_v37 = vadd.f32 %v1940_v29, %v68_v33 }
  0x89   :  { %v54_v35 = vadd.f32 %v1940_v29, %v52_v32  ;;  %v92_v38 = vadd.f32 %v1940_v29, %v90_v31 }
  0x8b   :  { %v1961_v39 = vpop.permute.xlu1 %105  ;;  %v1963_v40 = vpop.permute.xlu0 %127  ;;  %vm72_vm0 = vcmp.gt.f32.partialorder %v70_v37, %v54_v35 }
  0x8c   :  { %3220 = vst [vmem:[#allocation9_spill] sm:$0xff] %v1961_v39  ;;  %3221 = vst [vmem:[#allocation10_spill] sm:$0xff] %v1963_v40  ;;  %v112_v42 = vadd.f32 %v1961_v39, %v1952_v34  ;;  %v76_v43 = vsel %vm72_vm0, %v70_v37, %v54_v35  ;;  %v134_v44 = vadd.f32 %v1963_v40, %v1957_v36  ;;  %v74_v5 = vsel %vm72_vm0, 1, %v3150_v4 }
  0x8d   :  { %vm94_vm1 = vcmp.gt.f32.partialorder %v92_v38, %v76_v43 }
  0x8e   :  { %v114_v45 = vadd.f32 %v1940_v29, %v112_v42  ;;  %v98_v46 = vsel %vm94_vm1, %v92_v38, %v76_v43  ;;  %v136_v50 = vadd.f32 %v1940_v29, %v134_v44  ;;  %v96_v9 = vsel %vm94_vm1, 2, %v74_v5 }
  0x8f   :  { %v291_v44 = vsel %vm290_vm6, 1, %v3150_v4  ;;  %vm477_vm1 = vcmp.gt.s32.totalorder %v2040_v14, 2 }
  0x90   :  { %v1978_v48 = vpop.permute.xlu1 %149  ;;  %vm116_vm2 = vcmp.gt.f32.partialorder %v114_v45, %v98_v46  ;;  %v1989_v54 = vpop.permute.xlu0 %171 }
  0x91   :  { %v120_v52 = vsel %vm116_vm2, %v114_v45, %v98_v46  ;;  %v156_v53 = vadd.f32 %v1978_v48, %v1976_v47  ;;  %v178_v61 = vadd.f32 %v1989_v54, %v1996_v56  ;;  %v118_v11 = vsel %vm116_vm2, 3, %v96_v9 }
  0x92   :  { %vm138_vm3 = vcmp.gt.f32.partialorder %v136_v50, %v120_v52 }
  0x93   :  { %v158_v59 = vadd.f32 %v1940_v29, %v156_v53  ;;  %v142_v60 = vsel %vm138_vm3, %v136_v50, %v120_v52  ;;  %v180_v2 = vadd.f32 %v1940_v29, %v178_v61  ;;  %v140_v31 = vsel %vm138_vm3, 4, %v118_v11 }
  0x95   :  { %v1998_v57 = vpop.permute.xlu1 %32  ;;  %v2013_v0 = vpop.permute.xlu0 %65  ;;  %vm160_vm4 = vcmp.gt.f32.partialorder %v158_v59, %v142_v60 }
  0x96   :  { %3224 = vst [vmem:[#allocation13_spill] sm:$0xff] %v2013_v0  ;;  %v2019_v3 = vadd.f32 %v1998_v57, %v24_v63  ;;  %v164_v7 = vsel %vm160_vm4, %v158_v59, %v142_v60  ;;  %v162_v35 = vsel %vm160_vm4, 5, %v140_v31  ;;  %v69_v42 = vadd.f32 %v2013_v0, %v1933_v27 }
  0x97   :  { %vm182_vm5 = vcmp.gt.f32.partialorder %v180_v2, %v164_v7  ;;  %v2076_v27 = vadd.s32 4294967295, %v2040_v14 }
  0x98   :  { %v2035_v13 = vrot.slane %v2019_v3, %v1914_v21  ;;  %v2044_v15 = vrot.slane %v2019_v3, %v1906_v17  ;;  %v2048_v16 = vrot.slane %v2019_v3, %v1908_v18  ;;  %v186_v32 = vsel %vm182_vm5, %v180_v2, %v164_v7 }
  0x99   :  { %v2072_v50 = vrot.slane %v2019_v3, %v1927_v25  ;;  %v184_v52 = vsel %vm182_vm5, 6, %v162_v35  ;;  %3230 = vst [vmem:[#allocation19_spill] sm:$0xff] %v2076_v27  ;;  %v2089_v63 = vadd.f32 %v2081_v55, %v69_v42  ;;  %vm303_vm11 = vcmp.eq.s32.totalorder %v2076_v27, 1 }
  0x9a   :  { %v2015_v1 = vpop.permute.xlu1 %193  ;;  %v2029_v10 = vpop.permute.xlu0 %237  ;;  %v258_v45 = vadd.f32 %v2044_v15, %v1912_v20 }
  0x9b   :  { %v200_v6 = vadd.f32 %v2015_v1, %v2008_v62  ;;  %3226 = vst [vmem:[#allocation15_spill] sm:$0xff] %v2029_v10  ;;  %v244_v37 = vadd.f32 %v2029_v10, %v2035_v13 }
  0x9c   :  { %v260_v11 = vadd.f32 %v1940_v29, %v258_v45  ;;  %v304_v45 = vsel %vm303_vm11, 1, %v3150_v4 }
  0x9d   :  { %v202_v12 = vadd.f32 %v1940_v29, %v200_v6  ;;  %v295_v6 = vrot.slane %v291_v44, %v1908_v18 }
  0x9f   :  { %v2026_v8 = vpop.permute.xlu1 %49  ;;  %vm204_vm7 = vcmp.gt.f32.partialorder %v202_v12, %v186_v32  ;;  %v2062_v43 = vpop.permute.xlu0 %273  ;;  %vm2100_vm12 = vcmp.eq.s32.totalorder %v295_v6, 1 }
  0xa0   :  { %3225 = vst [vmem:[#allocation14_spill] sm:$0xff] %v2026_v8  ;;  %3229 = vst [vmem:[#allocation18_spill] sm:$0xff] %v2062_v43  ;;  %v53_v46 = vadd.f32 %v2026_v8, %v1925_v24  ;;  %v208_v53 = vsel %vm204_vm7, %v202_v12, %v186_v32  ;;  %v206_v59 = vsel %vm204_vm7, 7, %v184_v52  ;;  %v246_v24 = vadd.f32 %v1940_v29, %v244_v37 }
  0xa1   :  { %v280_v61 = vadd.f32 %v2062_v43, %v2072_v50 }
  0xa2   :  { %v2093_v7 = vadd.f32 %v2081_v55, %v53_v46 }
  0xa3   :  { %v282_v32 = vadd.f32 %v1940_v29, %v280_v61  ;;  %v2137_v61 = vld [vmem:[%s3146_s1 + $0x20] sm:$0xff] }
  0xa4   :  { %v2053_v33 = vpop.permute.xlu1 %215  ;;  %vm73_vm13 = vcmp.gt.f32.partialorder %v2089_v63, %v2093_v7 }
  0xa5   :  { %3228 = vst [vmem:[#allocation17_spill] sm:$0xff] %v2053_v33  ;;  %v222_v38 = vadd.f32 %v2053_v33, %v2048_v16 }
  0xa7   :  { %v224_v49 = vadd.f32 %v1940_v29, %v222_v38 }
  0xa9   :  { %vm226_vm8 = vcmp.gt.f32.partialorder %v224_v49, %v208_v53  ;;  %v2084_v60 = vpop.permute.xlu1 %87 }
  0xaa   :  { %3231 = vst [vmem:[#allocation20_spill] sm:$0xff] %v2084_v60  ;;  %v228_v2 = vsel %vm226_vm8, 8, %v206_v59  ;;  %v230_v5 = vsel %vm226_vm8, %v224_v49, %v208_v53  ;;  %v91_v9 = vadd.f32 %v2084_v60, %v1921_v23  ;;  %v2127_v59 = vsel %vm73_vm13, %v2089_v63, %v2093_v7 }
  0xab   :  { %vm248_vm9 = vcmp.gt.f32.partialorder %v246_v24, %v230_v5 }
  0xac   :  { %v250_v12 = vsel %vm248_vm9, 9, %v228_v2  ;;  %v252_v31 = vsel %vm248_vm9, %v246_v24, %v230_v5  ;;  %v2109_v23 = vadd.f32 %v2081_v55, %v91_v9  ;;  %v2132_v24 = vld [vmem:[%s3146_s1 + $0x28] sm:$0xf]  ;;  %vm663_vm9 = vcmp.gt.s32.totalorder %v2040_v14, 3 }
  0xad   :  { %vm262_vm10 = vcmp.gt.f32.partialorder %v260_v11, %v252_v31 }
  0xae   :  { %v264_v35 = vsel %vm262_vm10, 10, %v250_v12  ;;  %v266_v37 = vsel %vm262_vm10, %v260_v11, %v252_v31  ;;  %v2104_v42 = vpop.permute.xlu1 %109  ;;  %vm95_vm0 = vcmp.gt.f32.partialorder %v2109_v23, %v2127_v59  ;;  %v308_v11 = vrot.slane %v304_v45, %v1908_v18 }
  0xaf   :  { %3234 = vst [vmem:[#allocation21_spill] sm:$0xff] %v2104_v42  ;;  %vm284_vm14 = vcmp.gt.f32.partialorder %v282_v32, %v266_v37  ;;  %v113_v52 = vadd.f32 %v2104_v42, %v1952_v34  ;;  %vm489_vm10 = vcmp.eq.s32.totalorder %v2076_v27, 2 }
  0xb0   :  { %v286_v44 = vsel %vm284_vm14, 11, %v264_v35  ;;  %v2111_v29 = vsel %vm284_vm14, %v282_v32, %v266_v37  ;;  %vm2174_vm2 = vcmp.eq.s32.totalorder %v308_v11, 1 }
  0xb1   :  { %v297_v46 = vsel %vm2100_vm12, %v286_v44, 0  ;;  %v340_v49 = vrot.slane %v2111_v29, %v1906_v17  ;;  %v318_v53 = vrot.slane %v2111_v29, %v1908_v18  ;;  %v326_v34 = vrot.slane %v2111_v29, %v1914_v21 }
  0xb2   :  { %v354_v2 = vrot.slane %v2111_v29, %v1927_v25  ;;  %300 = vst.msk [vmem:[#allocation2] sm:$0xff] %vm299_vm15, %v297_v46  ;;  %v2156_v37 = vadd.f32 %v2081_v55, %v113_v52 }
  0xb3   :  { %v319_v5 = vadd.f32 %v318_v53, %v1942_v30  ;;  %v320_v6 = vadd.f32 %v318_v53, %v2026_v8  ;;  %v2148_v9 = vpop.permute.xlu1 %131  ;;  %v342_v12 = vadd.f32 %v340_v49, %v2084_v60  ;;  %v327_v31 = vadd.f32 %v326_v34, %v1910_v19 }
  0xb4   :  { %3235 = vst [vmem:[#allocation22_spill] sm:$0xff] %v2148_v9  ;;  %v328_v32 = vadd.f32 %v326_v34, %v2013_v0  ;;  %v341_v35 = vadd.f32 %v340_v49, %v1935_v28  ;;  %v355_v53 = vadd.f32 %v354_v2, %v1961_v39  ;;  %v368_v60 = vrot.slane %v2111_v29, %v1929_v26 }
  0xb5   :  { %v321_v44 = vadd.f32 %v2137_v61, %v319_v5  ;;  %v322_v46 = vadd.f32 %v2132_v24, %v320_v6  ;;  %v329_v4 = vadd.f32 %v2137_v61, %v327_v31  ;;  %v99_v49 = vsel %vm95_vm0, %v2109_v23, %v2127_v59 }
  0xb6   :  { %v330_v45 = vadd.f32 %v2132_v24, %v328_v32  ;;  %v356_v52 = vadd.f32 %v354_v2, %v2104_v42  ;;  %v135_v34 = vadd.f32 %v2148_v9, %v1957_v36  ;;  %v3236_v5 = vmov 0 }
  0xb7   :  { %v3237_v5 = vsel %vm2174_vm2, 4294967295, %v3236_v5  ;;  %v344_v6 = vadd.f32 %v2132_v24, %v342_v12  ;;  %vm331_vm3 = vcmp.gt.f32.partialorder %v329_v4, %v321_v44  ;;  %v343_v31 = vadd.f32 %v2137_v61, %v341_v35 }
  0xb8   :  { %3238 = vst [vmem:[#allocation23_spill] sm:$0xff] %v3237_v5  ;;  %vm332_vm4 = vcmp.gt.f32.partialorder %v330_v45, %v322_v46  ;;  %v2180_v32 = vpop.permute.xlu1 %153  ;;  %vm117_vm5 = vcmp.gt.f32.partialorder %v2156_v37, %v99_v49  ;;  %v335_v2 = vsel %vm331_vm3, %v329_v4, %v321_v44  ;;  %v2186_v42 = vadd.f32 %v2137_v61, %v355_v53  ;;  %v2202_v53 = vpop.permute.xlu0 %197 }
  0xb9   :  { %3239 = vst [vmem:[#allocation24_spill] sm:$0xff] %v2180_v32  ;;  %v336_v36 = vsel %vm332_vm4, %v330_v45, %v322_v46  ;;  %vm345_vm6 = vcmp.gt.f32.partialorder %v343_v31, %v335_v2  ;;  %v137_v11 = vadd.f32 %v2081_v55, %v135_v34  ;;  %v369_v12 = vadd.f32 %v368_v60, %v1963_v40 }
  0xba   :  { %vm346_vm7 = vcmp.gt.f32.partialorder %v344_v6, %v336_v36  ;;  %v349_v39 = vsel %vm345_vm6, %v343_v31, %v335_v2  ;;  %v2195_v28 = vadd.f32 %v2132_v24, %v356_v52  ;;  %v3240_v0 = vmov 0   ;;  %3242 = vst [vmem:[#allocation26_spill] sm:$0xff] %v2202_v53 }
  0xbb   :  { %v2192_v35 = vsel %vm346_vm7, %v344_v6, %v336_v36  ;;  %v2200_v19 = vsel %vm477_vm1, 1, %v3240_v0  ;;  %vm359_vm8 = vcmp.gt.f32.partialorder %v2186_v42, %v349_v39  ;;  %v382_v34 = vrot.slane %v2111_v29, %v1965_v41 }
  0xbc   :  { %3241 = vst [vmem:[#allocation25_spill] sm:$0xff] %v2200_v19  ;;  %vm360_vm11 = vcmp.gt.f32.partialorder %v2195_v28, %v2192_v35  ;;  %v121_v52 = vsel %vm117_vm5, %v2156_v37, %v99_v49  ;;  %v363_v40 = vsel %vm359_vm8, %v2186_v42, %v349_v39  ;;  %v370_v8 = vadd.f32 %v368_v60, %v2148_v9  ;;  %v2288_v2 = vpop.permute.xlu0 %277 }
  0xbd   :  { %v2218_v30 = vpop.permute.xlu1 %175  ;;  %vm139_vm14 = vcmp.gt.f32.partialorder %v137_v11, %v121_v52  ;;  %v371_v41 = vadd.f32 %v2137_v61, %v369_v12  ;;  %v157_v26 = vadd.f32 %v2180_v32, %v1976_v47  ;;  %v75_v20 = vsel %vm73_vm13, 1, %v3240_v0 }
  0xbe   :  { %3243 = vst [vmem:[#allocation27_spill] sm:$0xff] %v2218_v30  ;;  %v201_v27 = vadd.f32 %v2202_v53, %v2008_v62  ;;  %v2232_v60 = vsel %vm663_vm9, 1, %v3240_v0  ;;  %v2235_v9 = vsel %vm489_vm10, 1, %v3240_v0  ;;  %v364_v47 = vsel %vm360_vm11, %v2195_v28, %v2192_v35 }
  0xbf   :  { %vm373_vm1 = vcmp.gt.f32.partialorder %v371_v41, %v363_v40  ;;  %v159_v12 = vadd.f32 %v2081_v55, %v157_v26  ;;  %v383_v63 = vadd.f32 %v382_v34, %v1978_v48  ;;  %v333_v62 = vsel %vm331_vm3, 1, %v3240_v0 }
  0xc0   :  { %v372_v7 = vadd.f32 %v2132_v24, %v370_v8  ;;  %v143_v43 = vsel %vm139_vm14, %v137_v11, %v121_v52  ;;  %v179_v14 = vadd.f32 %v2218_v30, %v1996_v56  ;;  %v334_v19 = vsel %vm332_vm4, 1, %v3240_v0 }
  0xc1   :  { %vm161_vm13 = vcmp.gt.f32.partialorder %v159_v12, %v143_v43  ;;  %v384_v10 = vadd.f32 %v382_v34, %v2180_v32  ;;  %v377_v26 = vsel %vm373_vm1, %v371_v41, %v363_v40  ;;  %v396_v56 = vrot.slane %v2111_v29, %v1984_v51 }
  0xc2   :  { %v2253_v33 = vpop.permute.xlu1 %219  ;;  %vm374_vm3 = vcmp.gt.f32.partialorder %v372_v7, %v364_v47  ;;  %v181_v8 = vadd.f32 %v2081_v55, %v179_v14  ;;  %v203_v44 = vadd.f32 %v2081_v55, %v201_v27  ;;  %v97_v46 = vsel %vm95_vm0, 2, %v75_v20 }
  0xc3   :  { %3244 = vst [vmem:[#allocation28_spill] sm:$0xff] %v2253_v33  ;;  %v385_v45 = vadd.f32 %v2137_v61, %v383_v63  ;;  %v165_v34 = vsel %vm161_vm13, %v159_v12, %v143_v43  ;;  %v119_v4 = vsel %vm117_vm5, 3, %v97_v46  ;;  %v347_v22 = vsel %vm345_vm6, 2, %v333_v62 }
  0xc4   :  { %v348_v14 = vsel %vm346_vm7, 2, %v334_v19  ;;  %vm183_vm4 = vcmp.gt.f32.partialorder %v181_v8, %v165_v34  ;;  %v378_v51 = vsel %vm374_vm3, %v372_v7, %v364_v47  ;;  %v386_v27 = vadd.f32 %v2132_v24, %v384_v10 }
  0xc5   :  { %vm387_vm9 = vcmp.gt.f32.partialorder %v385_v45, %v377_v26  ;;  %v187_v23 = vsel %vm183_vm4, %v181_v8, %v165_v34  ;;  %v397_v20 = vadd.f32 %v396_v56, %v1989_v54  ;;  %v398_v59 = vadd.f32 %v396_v56, %v2218_v30 }
  0xc6   :  { %vm205_vm0 = vcmp.gt.f32.partialorder %v203_v44, %v187_v23  ;;  %v223_v37 = vadd.f32 %v2253_v33, %v2048_v16  ;;  %v259_v19 = vadd.f32 %v2044_v15, %v1998_v57  ;;  %v361_v6 = vsel %vm359_vm8, 3, %v347_v22 }
  0xc7   :  { %v2280_v49 = vpop.permute.xlu1 %241  ;;  %v141_v10 = vsel %vm139_vm14, 4, %v119_v4  ;;  %v209_v31 = vsel %vm205_vm0, %v203_v44, %v187_v23  ;;  %vm388_vm5 = vcmp.gt.f32.partialorder %v386_v27, %v378_v51  ;;  %v410_v16 = vrot.slane %v2111_v29, %v2000_v58 }
  0xc8   :  { %3245 = vst [vmem:[#allocation29_spill] sm:$0xff] %v2280_v49  ;;  %v163_v36 = vsel %vm161_vm13, 5, %v141_v10  ;;  %v225_v63 = vadd.f32 %v2081_v55, %v223_v37  ;;  %v362_v15 = vsel %vm360_vm11, 3, %v348_v14  ;;  %v391_v39 = vsel %vm387_vm9, %v385_v45, %v377_v26  ;;  %v3266_v45 = vld [vmem:[#allocation10_spill] sm:$0xff] }
  0xc9   :  { %v185_v22 = vsel %vm183_vm4, 6, %v163_v36  ;;  %v245_v42 = vadd.f32 %v2280_v49, %v2035_v13  ;;  %vm301_vm6 = vcmask 11264   ;;  %v375_v43 = vsel %vm373_vm1, 4, %v361_v6 }
  0xca   :  { %v399_v11 = vadd.f32 %v2137_v61, %v397_v20  ;;  %v400_v52 = vadd.f32 %v2132_v24, %v398_v59  ;;  %vm227_vm7 = vcmp.gt.f32.partialorder %v225_v63, %v209_v31  ;;  %v261_v12 = vadd.f32 %v2081_v55, %v259_v19 }
  0xcb   :  { %v281_v28 = vadd.f32 %v2288_v2, %v2072_v50  ;;  %v392_v35 = vsel %vm388_vm5, %v386_v27, %v378_v51  ;;  %v247_v62 = vadd.f32 %v2081_v55, %v245_v42  ;;  %v411_v13 = vadd.f32 %v410_v16, %v2015_v1 }
  0xcc   :  { %vm401_vm8 = vcmp.gt.f32.partialorder %v399_v11, %v391_v39  ;;  %v207_v40 = vsel %vm205_vm0, 7, %v185_v22  ;;  %v231_v41 = vsel %vm227_vm7, %v225_v63, %v209_v31  ;;  %v376_v4 = vsel %vm374_vm3, 4, %v362_v15  ;;  %v3246_v63 = vld [vmem:[#allocation17_spill] sm:$0xff] }
  0xcd   :  { %v389_v8 = vsel %vm387_vm9, 5, %v375_v43  ;;  %v229_v56 = vsel %vm227_vm7, 8, %v207_v40  ;;  %vm249_vm10 = vcmp.gt.f32.partialorder %v247_v62, %v231_v41  ;;  %vm402_vm11 = vcmp.gt.f32.partialorder %v400_v52, %v392_v35 }
  0xce   :  { %v251_v46 = vsel %vm249_vm10, 9, %v229_v56  ;;  %v253_v34 = vsel %vm249_vm10, %v247_v62, %v231_v41  ;;  %v412_v50 = vadd.f32 %v410_v16, %v2202_v53  ;;  %v283_v14 = vadd.f32 %v2081_v55, %v281_v28  ;;  %v3252_v62 = vld [vmem:[#allocation16_spill] sm:$0xff] }
  0xcf   :  { %v405_v20 = vsel %vm401_vm8, %v399_v11, %v391_v39  ;;  %vm263_vm14 = vcmp.gt.f32.partialorder %v261_v12, %v253_v34  ;;  %v413_v47 = vadd.f32 %v2137_v61, %v411_v13  ;;  %v390_v23 = vsel %vm388_vm5, 5, %v376_v4  ;;  %v3247_v39 = vld [vmem:[#allocation15_spill] sm:$0xff]  ;;  %v3254_v4 = vld [vmem:[#allocation4_spill] sm:$0xff] }
  0xd0   :  { %v265_v7 = vsel %vm263_vm14, 10, %v251_v46  ;;  %v267_v26 = vsel %vm263_vm14, %v261_v12, %v253_v34  ;;  %v403_v59 = vsel %vm401_vm8, 6, %v389_v8  ;;  %v406_v37 = vsel %vm402_vm11, %v400_v52, %v392_v35  ;;  %v3248_v12 = vld [vmem:[#allocation25_spill] sm:$0xff]  ;;  %v3253_v13 = vld [vmem:[#allocation19_spill] sm:$0xff] }
  0xd1   :  { %vm285_vm1 = vcmp.gt.f32.partialorder %v283_v14, %v267_v26  ;;  %vm415_vm13 = vcmp.gt.f32.partialorder %v413_v47, %v405_v20  ;;  %v414_v6 = vadd.f32 %v2132_v24, %v412_v50  ;;  %v404_v36 = vsel %vm402_vm11, 6, %v390_v23  ;;  %v3255_v50 = vld [vmem:[#allocation18_spill] sm:$0xff] }
  0xd2   :  { %v287_v55 = vsel %vm285_vm1, 11, %v265_v7  ;;  %v2324_v19 = vsel %vm285_vm1, %v283_v14, %v267_v26  ;;  %v417_v11 = vsel %vm415_vm13, 7, %v403_v59  ;;  %v419_v52 = vsel %vm415_vm13, %v413_v47, %v405_v20 }
  0xd3   :  { %v298_v10 = vsel %vm2100_vm12, %v287_v55, 0  ;;  %v424_v31 = vrot.slane %v2324_v19, %v1908_v18  ;;  %v438_v51 = vrot.slane %v2324_v19, %v1914_v21  ;;  %v452_v27 = vrot.slane %v2324_v19, %v1906_v17 }
  0xd4   :  { %vm416_vm3 = vcmp.gt.f32.partialorder %v414_v6, %v406_v37  ;;  %v466_v16 = vrot.slane %v2324_v19, %v1927_v25  ;;  %302 = vst.msk [vmem:[#allocation2 + $0x8] sm:$0xf] %vm301_vm6, %v298_v10  ;;  %v3249_v28 = vrot.slane %v3248_v12, %v1908_v18  ;;  %vm849_vm4 = vcmp.gt.s32.totalorder %v3252_v62, 4 }
  0xd5   :  { %v425_v15 = vadd.f32 %v424_v31, %v3246_v63  ;;  %v426_v22 = vadd.f32 %v424_v31, %v2253_v33  ;;  %v439_v42 = vadd.f32 %v438_v51, %v3247_v39  ;;  %v440_v43 = vadd.f32 %v438_v51, %v2280_v49 }
  0xd6   :  { %vm2352_vm12 = vcmp.eq.s32.totalorder %v3249_v28, 1  ;;  %vm675_vm9 = vcmp.eq.s32.totalorder %v3253_v13, 3  ;;  %v453_v8 = vadd.f32 %v452_v27, %v3254_v4  ;;  %v454_v56 = vadd.f32 %v452_v27, %v1998_v57  ;;  %v3267_v13 = vld [vmem:[#allocation22_spill] sm:$0xff] }
  0xd7   :  { %v427_v40 = vadd.f32 %v2137_v61, %v425_v15  ;;  %v428_v41 = vadd.f32 %v2132_v24, %v426_v22  ;;  %v418_v46 = vsel %vm416_vm3, 7, %v404_v36  ;;  %v420_v34 = vsel %vm416_vm3, %v414_v6, %v406_v37 }
  0xd8   :  { %v467_v14 = vadd.f32 %v466_v16, %v3255_v50  ;;  %v468_v20 = vadd.f32 %v466_v16, %v2288_v2  ;;  %v441_v47 = vadd.f32 %v2137_v61, %v439_v42  ;;  %v442_v7 = vadd.f32 %v2132_v24, %v440_v43 }
  0xd9   :  { %vm429_vm0 = vcmp.gt.f32.partialorder %v427_v40, %v419_v52  ;;  %vm430_vm5 = vcmp.gt.f32.partialorder %v428_v41, %v420_v34  ;;  %v455_v10 = vadd.f32 %v2137_v61, %v453_v8  ;;  %v456_v37 = vadd.f32 %v2132_v24, %v454_v56 }
  0xda   :  { %v431_v26 = vsel %vm429_vm0, 8, %v417_v11  ;;  %v432_v23 = vsel %vm430_vm5, 8, %v418_v46  ;;  %v433_v59 = vsel %vm429_vm0, %v427_v40, %v419_v52  ;;  %v434_v55 = vsel %vm430_vm5, %v428_v41, %v420_v34  ;;  %v2397_v46 = vld [vmem:[%s3146_s1 + $0x30] sm:$0xff]  ;;  %v2402_v34 = vld [vmem:[%s3146_s1 + $0x38] sm:$0xf] }
  0xdb   :  { %vm443_vm7 = vcmp.gt.f32.partialorder %v441_v47, %v433_v59  ;;  %vm444_vm8 = vcmp.gt.f32.partialorder %v442_v7, %v434_v55  ;;  %v469_v36 = vadd.f32 %v2137_v61, %v467_v14  ;;  %v470_v16 = vadd.f32 %v2132_v24, %v468_v20  ;;  %v3256_v20 = vld [vmem:[#allocation6_spill] sm:$0xff] }
  0xdc   :  { %v445_v6 = vsel %vm443_vm7, 9, %v431_v26  ;;  %v446_v31 = vsel %vm444_vm8, 9, %v432_v23  ;;  %v447_v51 = vsel %vm443_vm7, %v441_v47, %v433_v59  ;;  %v448_v27 = vsel %vm444_vm8, %v442_v7, %v434_v55  ;;  %v3257_v7 = vld [vmem:[#allocation11_spill] sm:$0xff]  ;;  %v3258_v23 = vld [vmem:[#allocation8_spill] sm:$0xff]  ;;  %v3259_v55 = vld [vmem:[#allocation14_spill] sm:$0xff] }
  0xdd   :  { %vm457_vm10 = vcmp.gt.f32.partialorder %v455_v10, %v447_v51  ;;  %vm458_vm11 = vcmp.gt.f32.partialorder %v456_v37, %v448_v27  ;;  %v2375_v11 = vsel %vm849_vm4, 1, %v3240_v0  ;;  %v2380_v52 = vsel %vm675_vm9, 1, %v3240_v0 }
  0xde   :  { %v459_v15 = vsel %vm457_vm10, 10, %v445_v6  ;;  %v460_v22 = vsel %vm458_vm11, 10, %v446_v31  ;;  %v461_v42 = vsel %vm457_vm10, %v455_v10, %v447_v51  ;;  %v462_v43 = vsel %vm458_vm11, %v456_v37, %v448_v27  ;;  %v3260_v37 = vld [vmem:[#allocation3_spill] sm:$0xff]  ;;  %v3261_v31 = vld [vmem:[#allocation13_spill] sm:$0xff] }
  0xdf   :  { %vm471_vm14 = vcmp.gt.f32.partialorder %v469_v36, %v461_v42  ;;  %vm472_vm1 = vcmp.gt.f32.partialorder %v470_v16, %v462_v43  ;;  %v3262_v27 = vld [vmem:[#allocation7_spill] sm:$0xff] }
  0xe0   :  { %v473_v12 = vsel %vm471_vm14, 11, %v459_v15  ;;  %v474_v61 = vsel %vm472_vm1, 11, %v460_v22  ;;  %v2382_v28 = vsel %vm471_vm14, %v469_v36, %v461_v42  ;;  %v2384_v24 = vsel %vm472_vm1, %v470_v16, %v462_v43  ;;  %v3263_v16 = vld [vmem:[#allocation20_spill] sm:$0xff]  ;;  %v3264_v22 = vld [vmem:[#allocation9_spill] sm:$0xff] }
  0xe1   :  { %v484_v40 = vsel %vm2352_vm12, %v473_v12, 0  ;;  %v485_v41 = vsel %vm2352_vm12, %v474_v61, 0  ;;  %v504_v8 = vrot.slane %v2382_v28, %v1908_v18  ;;  %v512_v56 = vrot.slane %v2382_v28, %v1914_v21  ;;  %v3265_v43 = vld [vmem:[#allocation21_spill] sm:$0xff] }
  0xe2   :  { %v526_v35 = vrot.slane %v2382_v28, %v1906_v17  ;;  %v540_v14 = vrot.slane %v2382_v28, %v1927_v25  ;;  %v554_v47 = vrot.slane %v2382_v28, %v3256_v20  ;;  %v568_v26 = vrot.slane %v2382_v28, %v3257_v7  ;;  %487 = vst.msk [vmem:[#allocation2 + $0x10] sm:$0xff] %vm299_vm15, %v484_v40 }
  0xe3   :  { %488 = vst.msk [vmem:[#allocation2 + $0x18] sm:$0xf] %vm301_vm6, %v485_v41  ;;  %v505_v59 = vadd.f32 %v504_v8, %v3258_v23  ;;  %v506_v10 = vadd.f32 %v504_v8, %v3259_v55  ;;  %v513_v6 = vadd.f32 %v512_v56, %v3260_v37  ;;  %v514_v51 = vadd.f32 %v512_v56, %v3261_v31 }
  0xe4   :  { %v527_v36 = vadd.f32 %v526_v35, %v3262_v27  ;;  %v528_v15 = vadd.f32 %v526_v35, %v3263_v16  ;;  %v541_v42 = vadd.f32 %v540_v14, %v3264_v22  ;;  %v542_v12 = vadd.f32 %v540_v14, %v3265_v43 }
  0xe5   :  { %v507_v61 = vadd.f32 %v2397_v46, %v505_v59  ;;  %v508_v40 = vadd.f32 %v2402_v34, %v506_v10  ;;  %v515_v41 = vadd.f32 %v2397_v46, %v513_v6  ;;  %v516_v8 = vadd.f32 %v2402_v34, %v514_v51 }
  0xe6   :  { %v529_v38 = vadd.f32 %v2397_v46, %v527_v36  ;;  %v530_v56 = vadd.f32 %v2402_v34, %v528_v15  ;;  %v543_v44 = vadd.f32 %v2397_v46, %v541_v42  ;;  %v544_v35 = vadd.f32 %v2402_v34, %v542_v12 }
  0xe7   :  { %vm517_vm13 = vcmp.gt.f32.partialorder %v515_v41, %v507_v61  ;;  %vm518_vm3 = vcmp.gt.f32.partialorder %v516_v8, %v508_v40  ;;  %v555_v14 = vadd.f32 %v554_v47, %v3266_v45  ;;  %v556_v59 = vadd.f32 %v554_v47, %v3267_v13 }
  0xe8   :  { %v519_v10 = vsel %vm517_vm13, 1, %v3240_v0  ;;  %v520_v6 = vsel %vm518_vm3, 1, %v3240_v0  ;;  %v521_v43 = vsel %vm517_vm13, %v515_v41, %v507_v61  ;;  %v522_v51 = vsel %vm518_vm3, %v516_v8, %v508_v40 }
  0xe9   :  { %vm531_vm12 = vcmp.gt.f32.partialorder %v529_v38, %v521_v43  ;;  %vm532_vm4 = vcmp.gt.f32.partialorder %v530_v56, %v522_v51  ;;  %v557_v36 = vadd.f32 %v2397_v46, %v555_v14  ;;  %v558_v15 = vadd.f32 %v2402_v34, %v556_v59 }
  0xea   :  { %v533_v42 = vsel %vm531_vm12, 2, %v519_v10  ;;  %v534_v12 = vsel %vm532_vm4, 2, %v520_v6  ;;  %v535_v22 = vsel %vm531_vm12, %v529_v38, %v521_v43  ;;  %v536_v16 = vsel %vm532_vm4, %v530_v56, %v522_v51  ;;  %v3268_v56 = vld [vmem:[#allocation12_spill] sm:$0xff] }
  0xeb   :  { %vm545_vm9 = vcmp.gt.f32.partialorder %v543_v44, %v535_v22  ;;  %vm546_vm0 = vcmp.gt.f32.partialorder %v544_v35, %v536_v16  ;;  %v569_v47 = vadd.f32 %v568_v26, %v1978_v48  ;;  %v570_v13 = vadd.f32 %v568_v26, %v2180_v32 }
  0xec   :  { %v547_v45 = vsel %vm545_vm9, 3, %v533_v42  ;;  %v548_v27 = vsel %vm546_vm0, 3, %v534_v12  ;;  %v549_v61 = vsel %vm545_vm9, %v543_v44, %v535_v22  ;;  %v550_v40 = vsel %vm546_vm0, %v544_v35, %v536_v16 }
  0xed   :  { %vm559_vm5 = vcmp.gt.f32.partialorder %v557_v36, %v549_v61  ;;  %vm560_vm7 = vcmp.gt.f32.partialorder %v558_v15, %v550_v40  ;;  %v571_v41 = vadd.f32 %v2397_v46, %v569_v47  ;;  %v572_v8 = vadd.f32 %v2402_v34, %v570_v13 }
  0xee   :  { %v561_v14 = vsel %vm559_vm5, 4, %v547_v45  ;;  %v562_v59 = vsel %vm560_vm7, 4, %v548_v27  ;;  %v563_v38 = vsel %vm559_vm5, %v557_v36, %v549_v61  ;;  %v564_v43 = vsel %vm560_vm7, %v558_v15, %v550_v40 }
  0xef   :  { %vm573_vm8 = vcmp.gt.f32.partialorder %v571_v41, %v563_v38  ;;  %vm574_vm10 = vcmp.gt.f32.partialorder %v572_v8, %v564_v43  ;;  %v582_v10 = vrot.slane %v2382_v28, %v3268_v56  ;;  %v596_v26 = vrot.slane %v2382_v28, %v2000_v58 }
  0xf0   :  { %v575_v44 = vsel %vm573_vm8, 5, %v561_v14  ;;  %v576_v16 = vsel %vm574_vm10, 5, %v562_v59  ;;  %v577_v22 = vsel %vm573_vm8, %v571_v41, %v563_v38  ;;  %v578_v35 = vsel %vm574_vm10, %v572_v8, %v564_v43 }
  0xf1   :  { %v583_v6 = vadd.f32 %v582_v10, %v1989_v54  ;;  %v584_v13 = vadd.f32 %v582_v10, %v2218_v30  ;;  %v597_v45 = vadd.f32 %v596_v26, %v2015_v1  ;;  %v598_v27 = vadd.f32 %v596_v26, %v2202_v53 }
  0xf2   :  { %v610_v51 = vrot.slane %v2384_v24, %v1908_v18  ;;  %v624_v36 = vrot.slane %v2384_v24, %v1914_v21  ;;  %v638_v15 = vrot.slane %v2384_v24, %v1906_v17  ;;  %v652_v42 = vrot.slane %v2384_v24, %v1927_v25 }
  0xf3   :  { %v585_v12 = vadd.f32 %v2397_v46, %v583_v6  ;;  %v586_v47 = vadd.f32 %v2402_v34, %v584_v13  ;;  %v599_v61 = vadd.f32 %v2397_v46, %v597_v45  ;;  %v600_v40 = vadd.f32 %v2402_v34, %v598_v27 }
  0xf4   :  { %v611_v41 = vadd.f32 %v610_v51, %v3246_v63  ;;  %v612_v8 = vadd.f32 %v610_v51, %v2253_v33  ;;  %v625_v14 = vadd.f32 %v624_v36, %v3247_v39  ;;  %v626_v59 = vadd.f32 %v624_v36, %v2280_v49 }
  0xf5   :  { %v3269_v38 = vrot.slane %v2235_v9, %v1908_v18  ;;  %v3270_v43 = vmov 0  ;;  %vm587_vm14 = vcmp.gt.f32.partialorder %v585_v12, %v577_v22  ;;  %vm588_vm1 = vcmp.gt.f32.partialorder %v586_v47, %v578_v35 }
  0xf6   :  { %v639_v10 = vadd.f32 %v638_v15, %v3254_v4  ;;  %v640_v26 = vadd.f32 %v638_v15, %v1998_v57  ;;  %v589_v6 = vsel %vm587_vm14, 6, %v575_v44  ;;  %v590_v13 = vsel %vm588_vm1, 6, %v576_v16 }
  0xf7   :  { %vm2467_vm11 = vcmp.eq.s32.totalorder %v3269_v38, 1  ;;  %v591_v45 = vsel %vm587_vm14, %v585_v12, %v577_v22  ;;  %v592_v27 = vsel %vm588_vm1, %v586_v47, %v578_v35  ;;  %v613_v51 = vadd.f32 %v2397_v46, %v611_v41 }
  0xf8   :  { %v3271_v43 = vsel %vm2467_vm11, 4294967295, %v3270_v43  ;;  %vm601_vm13 = vcmp.gt.f32.partialorder %v599_v61, %v591_v45  ;;  %vm602_vm3 = vcmp.gt.f32.partialorder %v600_v40, %v592_v27  ;;  %v614_v9 = vadd.f32 %v2402_v34, %v612_v8 }
  0xf9   :  { %3272 = vst [vmem:[#allocation25_spill] sm:$0xff] %v3271_v43  ;;  %v603_v36 = vsel %vm601_vm13, 7, %v589_v6  ;;  %v604_v38 = vsel %vm602_vm3, 7, %v590_v13  ;;  %v605_v49 = vsel %vm601_vm13, %v599_v61, %v591_v45  ;;  %v606_v39 = vsel %vm602_vm3, %v600_v40, %v592_v27 }
  0xfa   :  { %vm615_vm12 = vcmp.gt.f32.partialorder %v613_v51, %v605_v49  ;;  %vm616_vm4 = vcmp.gt.f32.partialorder %v614_v9, %v606_v39  ;;  %v627_v4 = vadd.f32 %v2397_v46, %v625_v14  ;;  %v628_v15 = vadd.f32 %v2402_v34, %v626_v59 }
  0xfb   :  { %v617_v44 = vsel %vm615_vm12, 8, %v603_v36  ;;  %v618_v16 = vsel %vm616_vm4, 8, %v604_v38  ;;  %v619_v22 = vsel %vm615_vm12, %v613_v51, %v605_v49  ;;  %v620_v35 = vsel %vm616_vm4, %v614_v9, %v606_v39 }
  0xfc   :  { %vm629_vm9 = vcmp.gt.f32.partialorder %v627_v4, %v619_v22  ;;  %vm630_vm0 = vcmp.gt.f32.partialorder %v628_v15, %v620_v35  ;;  %v641_v12 = vadd.f32 %v2397_v46, %v639_v10  ;;  %v642_v47 = vadd.f32 %v2402_v34, %v640_v26 }
  0xfd   :  { %v631_v41 = vsel %vm629_vm9, 9, %v617_v44  ;;  %v632_v8 = vsel %vm630_vm0, 9, %v618_v16  ;;  %v633_v61 = vsel %vm629_vm9, %v627_v4, %v619_v22  ;;  %v634_v40 = vsel %vm630_vm0, %v628_v15, %v620_v35  ;;  %v3273_v4 = vld [vmem:[#allocation5_spill] sm:$0xff]  ;;  %v2533_v44 = vld [vmem:[%s3146_s1 + $0x40] sm:$0xff]  ;;  %v2538_v16 = vld [vmem:[%s3146_s1 + $0x48] sm:$0xf] }
  0xfe   :  { %vm643_vm5 = vcmp.gt.f32.partialorder %v641_v12, %v633_v61  ;;  %vm644_vm7 = vcmp.gt.f32.partialorder %v642_v47, %v634_v40  ;;  %v653_v14 = vadd.f32 %v652_v42, %v3255_v50  ;;  %v654_v59 = vadd.f32 %v652_v42, %v2288_v2 }
  0xff   :  { %v645_v6 = vsel %vm643_vm5, 10, %v631_v41  ;;  %v647_v13 = vsel %vm643_vm5, %v641_v12, %v633_v61  ;;  %v648_v49 = vsel %vm644_vm7, %v642_v47, %v634_v40  ;;  %vm1035_vm8 = vcmp.gt.s32.totalorder %v3252_v62, 5 }
 0x100   :  { %v646_v39 = vsel %vm644_vm7, 10, %v632_v8  ;;  %v655_v10 = vadd.f32 %v2397_v46, %v653_v14  ;;  %v656_v26 = vadd.f32 %v2402_v34, %v654_v59  ;;  %v3274_v45 = vsel %vm2174_vm2, %v2111_v29, %v3273_v4  ;;  %v3281_v14 = vld [vmem:[#allocation7_spill] sm:$0xff] }
 0x101   :  { %v2492_v27 = vsel %vm2467_vm11, %v2382_v28, %v3274_v45  ;;  %v3275_v42 = vrot.slane %v2232_v60, %v1908_v18  ;;  %v3278_v29 = vsel %vm2174_vm2, %v2324_v19, %v2019_v3  ;;  %v2516_v34 = vsel %vm1035_vm8, 1, %v3240_v0 }
 0x102   :  { %v2511_v28 = vsel %vm2467_vm11, %v2384_v24, %v3278_v29  ;;  %vm657_vm14 = vcmp.gt.f32.partialorder %v655_v10, %v647_v13  ;;  %vm658_vm1 = vcmp.gt.f32.partialorder %v656_v26, %v648_v49 }
 0x103   :  { %vm2497_vm10 = vcmp.eq.s32.totalorder %v3275_v42, 1  ;;  %3279 = vst [vmem:[#allocation16_spill] sm:$0xff] %v2511_v28  ;;  %v659_v51 = vsel %vm657_vm14, 11, %v645_v6  ;;  %v660_v9 = vsel %vm658_vm1, 11, %v646_v39  ;;  %v2518_v36 = vsel %vm657_vm14, %v655_v10, %v647_v13  ;;  %v3282_v6 = vld [vmem:[#allocation20_spill] sm:$0xff]  ;;  %v3284_v10 = vld [vmem:[#allocation21_spill] sm:$0xff] }
 0x104   :  { %v2520_v38 = vsel %vm658_vm1, %v656_v26, %v648_v49  ;;  %v670_v3 = vsel %vm2497_vm10, %v659_v51, 0  ;;  %v671_v19 = vsel %vm2497_vm10, %v660_v9, 0  ;;  %v690_v24 = vrot.slane %v2518_v36, %v1908_v18  ;;  %v3283_v49 = vld [vmem:[#allocation9_spill] sm:$0xff] }
 0x105   :  { %3280 = vst [vmem:[#allocation18_spill] sm:$0xff] %v2520_v38  ;;  %v698_v15 = vrot.slane %v2518_v36, %v1914_v21  ;;  %v712_v22 = vrot.slane %v2518_v36, %v1906_v17  ;;  %v726_v35 = vrot.slane %v2518_v36, %v1927_v25  ;;  %v740_v12 = vrot.slane %v2518_v36, %v3256_v20 }
 0x106   :  { %v754_v47 = vrot.slane %v2518_v36, %v3257_v7  ;;  %673 = vst.msk [vmem:[#allocation2 + $0x20] sm:$0xff] %vm299_vm15, %v670_v3  ;;  %v691_v41 = vadd.f32 %v690_v24, %v3258_v23  ;;  %v692_v8 = vadd.f32 %v690_v24, %v3259_v55 }
 0x107   :  { %674 = vst.msk [vmem:[#allocation2 + $0x28] sm:$0xf] %vm301_vm6, %v671_v19  ;;  %v699_v61 = vadd.f32 %v698_v15, %v3260_v37  ;;  %v700_v40 = vadd.f32 %v698_v15, %v3261_v31  ;;  %v713_v59 = vadd.f32 %v712_v22, %v3281_v14  ;;  %v714_v13 = vadd.f32 %v712_v22, %v3282_v6  ;;  %v3285_v19 = vld [vmem:[#allocation10_spill] sm:$0xff] }
 0x108   :  { %v727_v39 = vadd.f32 %v726_v35, %v3283_v49  ;;  %v728_v26 = vadd.f32 %v726_v35, %v3284_v10  ;;  %v693_v4 = vadd.f32 %v2533_v44, %v691_v41  ;;  %v694_v45 = vadd.f32 %v2538_v16, %v692_v8  ;;  %v3286_v15 = vld [vmem:[#allocation22_spill] sm:$0xff] }
 0x109   :  { %v701_v42 = vadd.f32 %v2533_v44, %v699_v61  ;;  %v702_v62 = vadd.f32 %v2538_v16, %v700_v40  ;;  %v715_v29 = vadd.f32 %v2533_v44, %v713_v59  ;;  %v716_v51 = vadd.f32 %v2538_v16, %v714_v13 }
 0x10a   :  { %v729_v9 = vadd.f32 %v2533_v44, %v727_v39  ;;  %v730_v3 = vadd.f32 %v2538_v16, %v728_v26  ;;  %v741_v24 = vadd.f32 %v740_v12, %v3285_v19  ;;  %v742_v22 = vadd.f32 %v740_v12, %v3286_v15 }
 0x10b   :  { %vm703_vm13 = vcmp.gt.f32.partialorder %v701_v42, %v693_v4  ;;  %vm704_vm3 = vcmp.gt.f32.partialorder %v702_v62, %v694_v45  ;;  %v755_v12 = vadd.f32 %v754_v47, %v1978_v48  ;;  %v756_v46 = vadd.f32 %v754_v47, %v2180_v32 }
 0x10c   :  { %v705_v35 = vsel %vm703_vm13, 1, %v3240_v0  ;;  %v706_v41 = vsel %vm704_vm3, 1, %v3240_v0  ;;  %v707_v8 = vsel %vm703_vm13, %v701_v42, %v693_v4  ;;  %v708_v61 = vsel %vm704_vm3, %v702_v62, %v694_v45 }
 0x10d   :  { %vm717_vm12 = vcmp.gt.f32.partialorder %v715_v29, %v707_v8  ;;  %vm718_vm4 = vcmp.gt.f32.partialorder %v716_v51, %v708_v61  ;;  %v743_v40 = vadd.f32 %v2533_v44, %v741_v24  ;;  %v744_v59 = vadd.f32 %v2538_v16, %v742_v22 }
 0x10e   :  { %v719_v13 = vsel %vm717_vm12, 2, %v705_v35  ;;  %v720_v39 = vsel %vm718_vm4, 2, %v706_v41  ;;  %v721_v26 = vsel %vm717_vm12, %v715_v29, %v707_v8  ;;  %v722_v60 = vsel %vm718_vm4, %v716_v51, %v708_v61 }
 0x10f   :  { %vm731_vm9 = vcmp.gt.f32.partialorder %v729_v9, %v721_v26  ;;  %vm732_vm0 = vcmp.gt.f32.partialorder %v730_v3, %v722_v60  ;;  %v757_v42 = vadd.f32 %v2533_v44, %v755_v12  ;;  %v758_v62 = vadd.f32 %v2538_v16, %v756_v46 }
 0x110   :  { %v733_v5 = vsel %vm731_vm9, 3, %v719_v13  ;;  %v734_v43 = vsel %vm732_vm0, 3, %v720_v39  ;;  %v735_v4 = vsel %vm731_vm9, %v729_v9, %v721_v26  ;;  %v736_v45 = vsel %vm732_vm0, %v730_v3, %v722_v60 }
 0x111   :  { %vm745_vm5 = vcmp.gt.f32.partialorder %v743_v40, %v735_v4  ;;  %vm746_vm7 = vcmp.gt.f32.partialorder %v744_v59, %v736_v45  ;;  %v768_v35 = vrot.slane %v2518_v36, %v3268_v56  ;;  %v782_v47 = vrot.slane %v2518_v36, %v2000_v58 }
 0x112   :  { %v747_v24 = vsel %vm745_vm5, 4, %v733_v5  ;;  %v748_v22 = vsel %vm746_vm7, 4, %v734_v43  ;;  %v749_v29 = vsel %vm745_vm5, %v743_v40, %v735_v4  ;;  %v750_v51 = vsel %vm746_vm7, %v744_v59, %v736_v45  ;;  %v3287_v45 = vld [vmem:[#allocation19_spill] sm:$0xff] }
 0x113   :  { %vm759_vm8 = vcmp.gt.f32.partialorder %v757_v42, %v749_v29  ;;  %vm760_vm10 = vcmp.gt.f32.partialorder %v758_v62, %v750_v51  ;;  %v769_v8 = vadd.f32 %v768_v35, %v1989_v54  ;;  %v770_v46 = vadd.f32 %v768_v35, %v2218_v30 }
 0x114   :  { %v761_v9 = vsel %vm759_vm8, 5, %v747_v24  ;;  %v762_v60 = vsel %vm760_vm10, 5, %v748_v22  ;;  %v763_v3 = vsel %vm759_vm8, %v757_v42, %v749_v29  ;;  %v764_v41 = vsel %vm760_vm10, %v758_v62, %v750_v51  ;;  %v3288_v24 = vld [vmem:[#allocation15_spill] sm:$0xff]  ;;  %v3289_v29 = vld [vmem:[#allocation29_spill] sm:$0xff] }
 0x115   :  { %v783_v5 = vadd.f32 %v782_v47, %v2015_v1  ;;  %v784_v43 = vadd.f32 %v782_v47, %v2202_v53  ;;  %v796_v61 = vrot.slane %v2520_v38, %v1908_v18  ;;  %v810_v40 = vrot.slane %v2520_v38, %v1914_v21 }
 0x116   :  { %v824_v59 = vrot.slane %v2520_v38, %v1906_v17  ;;  %v838_v13 = vrot.slane %v2520_v38, %v1927_v25  ;;  %v771_v39 = vadd.f32 %v2533_v44, %v769_v8  ;;  %v772_v26 = vadd.f32 %v2538_v16, %v770_v46  ;;  %v3293_v8 = vld [vmem:[#allocation4_spill] sm:$0xff] }
 0x117   :  { %v785_v12 = vadd.f32 %v2533_v44, %v783_v5  ;;  %v786_v4 = vadd.f32 %v2538_v16, %v784_v43  ;;  %vm861_vm14 = vcmp.eq.s32.totalorder %v3287_v45, 4  ;;  %v797_v42 = vadd.f32 %v796_v61, %v3246_v63 }
 0x118   :  { %v798_v62 = vadd.f32 %v796_v61, %v2253_v33  ;;  %v811_v22 = vadd.f32 %v810_v40, %v3288_v24  ;;  %v812_v51 = vadd.f32 %v810_v40, %v3289_v29  ;;  %v3290_v35 = vrot.slane %v2380_v52, %v1908_v18 }
 0x119   :  { %vm773_vm13 = vcmp.gt.f32.partialorder %v771_v39, %v763_v3  ;;  %vm774_vm3 = vcmp.gt.f32.partialorder %v772_v26, %v764_v41  ;;  %v825_v46 = vadd.f32 %v824_v59, %v3293_v8  ;;  %v826_v5 = vadd.f32 %v824_v59, %v1998_v57 }
 0x11a   :  { %vm2604_vm1 = vcmp.eq.s32.totalorder %v3290_v35, 1  ;;  %v775_v43 = vsel %vm773_vm13, 6, %v761_v9  ;;  %v776_v38 = vsel %vm774_vm3, 6, %v762_v60  ;;  %v777_v61 = vsel %vm773_vm13, %v771_v39, %v763_v3 }
 0x11b   :  { %v778_v28 = vsel %vm774_vm3, %v772_v26, %v764_v41  ;;  %vm787_vm12 = vcmp.gt.f32.partialorder %v785_v12, %v777_v61  ;;  %v799_v40 = vadd.f32 %v2533_v44, %v797_v42  ;;  %v800_v52 = vadd.f32 %v2538_v16, %v798_v62 }
 0x11c   :  { %vm788_vm4 = vcmp.gt.f32.partialorder %v786_v4, %v778_v28  ;;  %v789_v35 = vsel %vm787_vm12, 7, %v775_v43  ;;  %v791_v24 = vsel %vm787_vm12, %v785_v12, %v777_v61  ;;  %v813_v8 = vadd.f32 %v2533_v44, %v811_v22 }
 0x11d   :  { %v790_v29 = vsel %vm788_vm4, 7, %v776_v38  ;;  %v792_v33 = vsel %vm788_vm4, %v786_v4, %v778_v28  ;;  %vm801_vm9 = vcmp.gt.f32.partialorder %v799_v40, %v791_v24  ;;  %v814_v59 = vadd.f32 %v2538_v16, %v812_v51 }
 0x11e   :  { %vm802_vm0 = vcmp.gt.f32.partialorder %v800_v52, %v792_v33  ;;  %v803_v9 = vsel %vm801_vm9, 8, %v789_v35  ;;  %v805_v3 = vsel %vm801_vm9, %v799_v40, %v791_v24  ;;  %v827_v39 = vadd.f32 %v2533_v44, %v825_v46 }
 0x11f   :  { %v804_v60 = vsel %vm802_vm0, 8, %v790_v29  ;;  %v806_v41 = vsel %vm802_vm0, %v800_v52, %v792_v33  ;;  %vm815_vm5 = vcmp.gt.f32.partialorder %v813_v8, %v805_v3  ;;  %v828_v26 = vadd.f32 %v2538_v16, %v826_v5 }
 0x120   :  { %vm816_vm7 = vcmp.gt.f32.partialorder %v814_v59, %v806_v41  ;;  %v817_v42 = vsel %vm815_vm5, 9, %v803_v9  ;;  %v819_v12 = vsel %vm815_vm5, %v813_v8, %v805_v3  ;;  %v839_v4 = vadd.f32 %v838_v13, %v3255_v50  ;;  %v2655_v3 = vld [vmem:[%s3146_s1 + $0x50] sm:$0xff] }
 0x121   :  { %v818_v38 = vsel %vm816_vm7, 9, %v804_v60  ;;  %v820_v28 = vsel %vm816_vm7, %v814_v59, %v806_v41  ;;  %vm829_vm8 = vcmp.gt.f32.partialorder %v827_v39, %v819_v12  ;;  %v840_v62 = vadd.f32 %v838_v13, %v2288_v2  ;;  %v2660_v41 = vld [vmem:[%s3146_s1 + $0x58] sm:$0xf] }
 0x122   :  { %vm830_vm10 = vcmp.gt.f32.partialorder %v828_v26, %v820_v28  ;;  %v831_v22 = vsel %vm829_vm8, 10, %v817_v42  ;;  %v833_v29 = vsel %vm829_vm8, %v827_v39, %v819_v12  ;;  %v2621_v33 = vsel %vm861_vm14, 1, %v3240_v0 }
 0x123   :  { %v834_v24 = vsel %vm830_vm10, %v828_v26, %v820_v28  ;;  %v832_v51 = vsel %vm830_vm10, 10, %v818_v38  ;;  %v841_v46 = vadd.f32 %v2533_v44, %v839_v4  ;;  %v842_v8 = vadd.f32 %v2538_v16, %v840_v62 }
 0x124   :  { %v3294_v13 = vrot.slane %v2375_v11, %v1908_v18 }
 0x125   :  { %vm843_vm3 = vcmp.gt.f32.partialorder %v841_v46, %v833_v29  ;;  %vm844_vm14 = vcmp.gt.f32.partialorder %v842_v8, %v834_v24 }
 0x126   :  { %vm2632_vm13 = vcmp.eq.s32.totalorder %v3294_v13, 1  ;;  %v845_v16 = vsel %vm843_vm3, 11, %v831_v22  ;;  %v846_v40 = vsel %vm844_vm14, 11, %v832_v51  ;;  %v2640_v52 = vsel %vm843_vm3, %v841_v46, %v833_v29 }
 0x127   :  { %v2642_v35 = vsel %vm844_vm14, %v842_v8, %v834_v24  ;;  %v856_v11 = vsel %vm2632_vm13, %v845_v16, 0  ;;  %v857_v59 = vsel %vm2632_vm13, %v846_v40, 0  ;;  %v876_v9 = vrot.slane %v2640_v52, %v1908_v18 }
 0x128   :  { %3297 = vst [vmem:[#allocation6_spill] sm:$0xff] %v2642_v35  ;;  %v884_v60 = vrot.slane %v2640_v52, %v1914_v21  ;;  %v898_v39 = vrot.slane %v2640_v52, %v1906_v17  ;;  %v912_v26 = vrot.slane %v2640_v52, %v1927_v25  ;;  %v926_v42 = vrot.slane %v2640_v52, %v3256_v20 }
 0x129   :  { %v940_v38 = vrot.slane %v2640_v52, %v3257_v7  ;;  %859 = vst.msk [vmem:[#allocation2 + $0x30] sm:$0xff] %vm299_vm15, %v856_v11  ;;  %v877_v12 = vadd.f32 %v876_v9, %v3258_v23  ;;  %v878_v28 = vadd.f32 %v876_v9, %v3259_v55  ;;  %vm1047_vm14 = vcmp.eq.s32.totalorder %v3287_v45, 5 }
 0x12a   :  { %860 = vst.msk [vmem:[#allocation2 + $0x38] sm:$0xf] %vm301_vm6, %v857_v59  ;;  %v885_v4 = vadd.f32 %v884_v60, %v3260_v37  ;;  %v886_v62 = vadd.f32 %v884_v60, %v3261_v31  ;;  %v899_v22 = vadd.f32 %v898_v39, %v3281_v14  ;;  %v900_v29 = vadd.f32 %v898_v39, %v3282_v6 }
 0x12b   :  { %v913_v24 = vadd.f32 %v912_v26, %v3283_v49  ;;  %v914_v51 = vadd.f32 %v912_v26, %v3284_v10  ;;  %v879_v46 = vadd.f32 %v2655_v3, %v877_v12  ;;  %v880_v8 = vadd.f32 %v2660_v41, %v878_v28 }
 0x12c   :  { %v887_v13 = vadd.f32 %v2655_v3, %v885_v4  ;;  %v888_v43 = vadd.f32 %v2660_v41, %v886_v62  ;;  %v901_v16 = vadd.f32 %v2655_v3, %v899_v22  ;;  %v902_v40 = vadd.f32 %v2660_v41, %v900_v29 }
 0x12d   :  { %v915_v11 = vadd.f32 %v2655_v3, %v913_v24  ;;  %v916_v59 = vadd.f32 %v2660_v41, %v914_v51  ;;  %v927_v9 = vadd.f32 %v926_v42, %v3285_v19  ;;  %v928_v60 = vadd.f32 %v926_v42, %v3286_v15 }
 0x12e   :  { %vm889_vm12 = vcmp.gt.f32.partialorder %v887_v13, %v879_v46  ;;  %vm890_vm4 = vcmp.gt.f32.partialorder %v888_v43, %v880_v8  ;;  %v941_v42 = vadd.f32 %v940_v38, %v1978_v48  ;;  %v942_v61 = vadd.f32 %v940_v38, %v2180_v32 }
 0x12f   :  { %v891_v39 = vsel %vm889_vm12, 1, %v3240_v0  ;;  %v892_v26 = vsel %vm890_vm4, 1, %v3240_v0  ;;  %v893_v12 = vsel %vm889_vm12, %v887_v13, %v879_v46  ;;  %v894_v28 = vsel %vm890_vm4, %v888_v43, %v880_v8 }
 0x130   :  { %vm903_vm9 = vcmp.gt.f32.partialorder %v901_v16, %v893_v12  ;;  %vm904_vm0 = vcmp.gt.f32.partialorder %v902_v40, %v894_v28  ;;  %v929_v4 = vadd.f32 %v2655_v3, %v927_v9  ;;  %v930_v62 = vadd.f32 %v2660_v41, %v928_v60 }
 0x131   :  { %v905_v22 = vsel %vm903_vm9, 2, %v891_v39  ;;  %v906_v29 = vsel %vm904_vm0, 2, %v892_v26  ;;  %v907_v24 = vsel %vm903_vm9, %v901_v16, %v893_v12  ;;  %v908_v51 = vsel %vm904_vm0, %v902_v40, %v894_v28 }
 0x132   :  { %vm917_vm5 = vcmp.gt.f32.partialorder %v915_v11, %v907_v24  ;;  %vm918_vm7 = vcmp.gt.f32.partialorder %v916_v59, %v908_v51  ;;  %v943_v13 = vadd.f32 %v2655_v3, %v941_v42  ;;  %v944_v43 = vadd.f32 %v2660_v41, %v942_v61 }
 0x133   :  { %v919_v5 = vsel %vm917_vm5, 3, %v905_v22  ;;  %v920_v44 = vsel %vm918_vm7, 3, %v906_v29  ;;  %v921_v46 = vsel %vm917_vm5, %v915_v11, %v907_v24  ;;  %v922_v8 = vsel %vm918_vm7, %v916_v59, %v908_v51 }
 0x134   :  { %vm931_vm8 = vcmp.gt.f32.partialorder %v929_v4, %v921_v46  ;;  %vm932_vm10 = vcmp.gt.f32.partialorder %v930_v62, %v922_v8  ;;  %v954_v39 = vrot.slane %v2640_v52, %v3268_v56  ;;  %v968_v38 = vrot.slane %v2640_v52, %v2000_v58 }
 0x135   :  { %v933_v9 = vsel %vm931_vm8, 4, %v919_v5  ;;  %v934_v60 = vsel %vm932_vm10, 4, %v920_v44  ;;  %v935_v16 = vsel %vm931_vm8, %v929_v4, %v921_v46  ;;  %v936_v40 = vsel %vm932_vm10, %v930_v62, %v922_v8 }
 0x136   :  { %vm945_vm13 = vcmp.gt.f32.partialorder %v943_v13, %v935_v16  ;;  %vm946_vm3 = vcmp.gt.f32.partialorder %v944_v43, %v936_v40  ;;  %v955_v28 = vadd.f32 %v954_v39, %v1989_v54  ;;  %v956_v61 = vadd.f32 %v954_v39, %v2218_v30 }
 0x137   :  { %v947_v11 = vsel %vm945_vm13, 5, %v933_v9  ;;  %v948_v59 = vsel %vm946_vm3, 5, %v934_v60  ;;  %v949_v26 = vsel %vm945_vm13, %v943_v13, %v935_v16  ;;  %v950_v12 = vsel %vm946_vm3, %v944_v43, %v936_v40  ;;  %v3298_v13 = vld [vmem:[#allocation28_spill] sm:$0xff]  ;;  %v3299_v9 = vld [vmem:[#allocation15_spill] sm:$0xff]  ;;  %v3300_v16 = vld [vmem:[#allocation29_spill] sm:$0xff] }
 0x138   :  { %v969_v5 = vadd.f32 %v968_v38, %v2015_v1  ;;  %v970_v44 = vadd.f32 %v968_v38, %v2202_v53  ;;  %v982_v4 = vrot.slane %v2642_v35, %v1908_v18  ;;  %v996_v62 = vrot.slane %v2642_v35, %v1914_v21 }
 0x139   :  { %v1010_v22 = vrot.slane %v2642_v35, %v1906_v17  ;;  %v1024_v29 = vrot.slane %v2642_v35, %v1927_v25  ;;  %v957_v24 = vadd.f32 %v2655_v3, %v955_v28  ;;  %v958_v51 = vadd.f32 %v2660_v41, %v956_v61  ;;  %v3304_v28 = vld [vmem:[#allocation4_spill] sm:$0xff] }
 0x13a   :  { %v971_v42 = vadd.f32 %v2655_v3, %v969_v5  ;;  %v972_v46 = vadd.f32 %v2660_v41, %v970_v44  ;;  %v983_v8 = vadd.f32 %v982_v4, %v3246_v63  ;;  %v984_v43 = vadd.f32 %v982_v4, %v3298_v13 }
 0x13b   :  { %v997_v60 = vadd.f32 %v996_v62, %v3299_v9  ;;  %v998_v40 = vadd.f32 %v996_v62, %v3300_v16  ;;  %v3301_v39 = vrot.slane %v2621_v33, %v1908_v18  ;;  %vm959_vm4 = vcmp.gt.f32.partialorder %v957_v24, %v949_v26 }
 0x13c   :  { %vm960_vm9 = vcmp.gt.f32.partialorder %v958_v51, %v950_v12  ;;  %v1011_v61 = vadd.f32 %v1010_v22, %v3304_v28  ;;  %v1012_v5 = vadd.f32 %v1010_v22, %v1998_v57  ;;  %v961_v44 = vsel %vm959_vm4, 6, %v947_v11 }
 0x13d   :  { %vm2726_vm12 = vcmp.eq.s32.totalorder %v3301_v39, 1  ;;  %v962_v35 = vsel %vm960_vm9, 6, %v948_v59  ;;  %v963_v4 = vsel %vm959_vm4, %v957_v24, %v949_v26  ;;  %v964_v13 = vsel %vm960_vm9, %v958_v51, %v950_v12 }
 0x13e   :  { %vm973_vm0 = vcmp.gt.f32.partialorder %v971_v42, %v963_v4  ;;  %vm974_vm5 = vcmp.gt.f32.partialorder %v972_v46, %v964_v13  ;;  %v985_v62 = vadd.f32 %v2655_v3, %v983_v8  ;;  %v986_v33 = vadd.f32 %v2660_v41, %v984_v43 }
 0x13f   :  { %v975_v39 = vsel %vm973_vm0, 7, %v961_v44  ;;  %v976_v16 = vsel %vm974_vm5, 7, %v962_v35  ;;  %v977_v9 = vsel %vm973_vm0, %v971_v42, %v963_v4  ;;  %v978_v63 = vsel %vm974_vm5, %v972_v46, %v964_v13  ;;  %v2817_v4 = vld [vmem:[%s3148_s0] sm:$0x1] }
 0x140   :  { %vm987_vm7 = vcmp.gt.f32.partialorder %v985_v62, %v977_v9  ;;  %vm988_vm8 = vcmp.gt.f32.partialorder %v986_v33, %v978_v63  ;;  %v999_v28 = vadd.f32 %v2655_v3, %v997_v60  ;;  %v1000_v22 = vadd.f32 %v2660_v41, %v998_v40 }
 0x141   :  { %v989_v11 = vsel %vm987_vm7, 8, %v975_v39  ;;  %v990_v59 = vsel %vm988_vm8, 8, %v976_v16  ;;  %v991_v26 = vsel %vm987_vm7, %v985_v62, %v977_v9  ;;  %v992_v12 = vsel %vm988_vm8, %v986_v33, %v978_v63  ;;  %v3310_v62 = vld [vmem:[#allocation18_spill] sm:$0xff] }
 0x142   :  { %vm1001_vm10 = vcmp.gt.f32.partialorder %v999_v28, %v991_v26  ;;  %vm1002_vm13 = vcmp.gt.f32.partialorder %v1000_v22, %v992_v12  ;;  %v1013_v24 = vadd.f32 %v2655_v3, %v1011_v61  ;;  %v1014_v51 = vadd.f32 %v2660_v41, %v1012_v5 }
 0x143   :  { %v1003_v8 = vsel %vm1001_vm10, 9, %v989_v11  ;;  %v1004_v35 = vsel %vm1002_vm13, 9, %v990_v59  ;;  %v1005_v42 = vsel %vm1001_vm10, %v999_v28, %v991_v26  ;;  %v1006_v46 = vsel %vm1002_vm13, %v1000_v22, %v992_v12  ;;  %v2785_v26 = vld [vmem:[%s3146_s1 + $0x60] sm:$0xff]  ;;  %v2790_v12 = vld [vmem:[%s3146_s1 + $0x68] sm:$0xf] }
 0x144   :  { %vm1015_vm3 = vcmp.gt.f32.partialorder %v1013_v24, %v1005_v42  ;;  %vm1016_vm4 = vcmp.gt.f32.partialorder %v1014_v51, %v1006_v46  ;;  %v1025_v13 = vadd.f32 %v1024_v29, %v3255_v50  ;;  %v1026_v43 = vadd.f32 %v1024_v29, %v2288_v2 }
 0x145   :  { %v1017_v60 = vsel %vm1015_vm3, 10, %v1003_v8  ;;  %v1019_v16 = vsel %vm1015_vm3, %v1013_v24, %v1005_v42  ;;  %v1020_v9 = vsel %vm1016_vm4, %v1014_v51, %v1006_v46  ;;  %v2743_v63 = vsel %vm1047_vm14, 1, %v3240_v0 }
 0x146   :  { %v1018_v40 = vsel %vm1016_vm4, 10, %v1004_v35  ;;  %v1027_v61 = vadd.f32 %v2655_v3, %v1025_v13  ;;  %v1028_v28 = vadd.f32 %v2660_v41, %v1026_v43  ;;  %v3305_v5 = vsel %vm2604_vm1, %v2518_v36, %v2492_v27  ;;  %v3309_v41 = vld [vmem:[#allocation16_spill] sm:$0xff] }
 0x147   :  { %v2755_v29 = vsel %vm2726_vm12, %v2640_v52, %v3305_v5  ;;  %v3306_v44 = vrot.slane %v2516_v34, %v1908_v18  ;;  %vm1221_vm5 = vcmp.gt.s32.totalorder %v2817_v4, 6 }
 0x148   :  { %vm1029_vm9 = vcmp.gt.f32.partialorder %v1027_v61, %v1019_v16  ;;  %vm1030_vm0 = vcmp.gt.f32.partialorder %v1028_v28, %v1020_v9 }
 0x149   :  { %vm2760_vm14 = vcmp.eq.s32.totalorder %v3306_v44, 1  ;;  %v1031_v36 = vsel %vm1029_vm9, 11, %v1017_v60  ;;  %v1032_v52 = vsel %vm1030_vm0, 11, %v1018_v40  ;;  %v2770_v33 = vsel %vm1029_vm9, %v1027_v61, %v1019_v16 }
 0x14a   :  { %v2772_v39 = vsel %vm1030_vm0, %v1028_v28, %v1020_v9  ;;  %v1042_v34 = vsel %vm2760_vm14, %v1031_v36, 0  ;;  %v1043_v22 = vsel %vm2760_vm14, %v1032_v52, 0  ;;  %v1062_v11 = vrot.slane %v2770_v33, %v1908_v18 }
 0x14b   :  { %v1070_v59 = vrot.slane %v2770_v33, %v1914_v21  ;;  %v1084_v24 = vrot.slane %v2770_v33, %v1906_v17  ;;  %v1098_v51 = vrot.slane %v2770_v33, %v1927_v25  ;;  %v1112_v8 = vrot.slane %v2770_v33, %v3256_v20  ;;  %1045 = vst.msk [vmem:[#allocation2 + $0x40] sm:$0xff] %vm299_vm15, %v1042_v34 }
 0x14c   :  { %v1126_v35 = vrot.slane %v2770_v33, %v3257_v7  ;;  %1046 = vst.msk [vmem:[#allocation2 + $0x48] sm:$0xf] %vm301_vm6, %v1043_v22  ;;  %v1063_v42 = vadd.f32 %v1062_v11, %v3258_v23  ;;  %v1064_v46 = vadd.f32 %v1062_v11, %v3259_v55 }
 0x14d   :  { %v1071_v13 = vadd.f32 %v1070_v59, %v3260_v37  ;;  %v1072_v43 = vadd.f32 %v1070_v59, %v3261_v31  ;;  %v1085_v60 = vadd.f32 %v1084_v24, %v3281_v14  ;;  %v1086_v16 = vadd.f32 %v1084_v24, %v3282_v6 }
 0x14e   :  { %v1099_v9 = vadd.f32 %v1098_v51, %v3283_v49  ;;  %v1100_v40 = vadd.f32 %v1098_v51, %v3284_v10  ;;  %v1065_v61 = vadd.f32 %v2785_v26, %v1063_v42  ;;  %v1066_v28 = vadd.f32 %v2790_v12, %v1064_v46 }
 0x14f   :  { %v1073_v5 = vadd.f32 %v2785_v26, %v1071_v13  ;;  %v1074_v44 = vadd.f32 %v2790_v12, %v1072_v43  ;;  %v1087_v36 = vadd.f32 %v2785_v26, %v1085_v60  ;;  %v1088_v52 = vadd.f32 %v2790_v12, %v1086_v16 }
 0x150   :  { %v1101_v34 = vadd.f32 %v2785_v26, %v1099_v9  ;;  %v1102_v22 = vadd.f32 %v2790_v12, %v1100_v40  ;;  %v1113_v11 = vadd.f32 %v1112_v8, %v3285_v19  ;;  %v1114_v59 = vadd.f32 %v1112_v8, %v3286_v15 }
 0x151   :  { %vm1075_vm7 = vcmp.gt.f32.partialorder %v1073_v5, %v1065_v61  ;;  %vm1076_vm8 = vcmp.gt.f32.partialorder %v1074_v44, %v1066_v28  ;;  %v1127_v8 = vadd.f32 %v1126_v35, %v1978_v48  ;;  %v1128_v27 = vadd.f32 %v1126_v35, %v2180_v32 }
 0x152   :  { %v1077_v24 = vsel %vm1075_vm7, 1, %v3240_v0  ;;  %v1078_v51 = vsel %vm1076_vm8, 1, %v3240_v0  ;;  %v1079_v42 = vsel %vm1075_vm7, %v1073_v5, %v1065_v61  ;;  %v1080_v46 = vsel %vm1076_vm8, %v1074_v44, %v1066_v28 }
 0x153   :  { %vm1089_vm10 = vcmp.gt.f32.partialorder %v1087_v36, %v1079_v42  ;;  %vm1090_vm13 = vcmp.gt.f32.partialorder %v1088_v52, %v1080_v46  ;;  %v1115_v13 = vadd.f32 %v2785_v26, %v1113_v11  ;;  %v1116_v43 = vadd.f32 %v2790_v12, %v1114_v59 }
 0x154   :  { %v1091_v60 = vsel %vm1089_vm10, 2, %v1077_v24  ;;  %v1092_v16 = vsel %vm1090_vm13, 2, %v1078_v51  ;;  %v1093_v9 = vsel %vm1089_vm10, %v1087_v36, %v1079_v42  ;;  %v1094_v40 = vsel %vm1090_vm13, %v1088_v52, %v1080_v46 }
 0x155   :  { %vm1103_vm3 = vcmp.gt.f32.partialorder %v1101_v34, %v1093_v9  ;;  %vm1104_vm4 = vcmp.gt.f32.partialorder %v1102_v22, %v1094_v40  ;;  %v1129_v5 = vadd.f32 %v2785_v26, %v1127_v8  ;;  %v1130_v44 = vadd.f32 %v2790_v12, %v1128_v27 }
 0x156   :  { %v1105_v3 = vsel %vm1103_vm3, 3, %v1091_v60  ;;  %v1106_v15 = vsel %vm1104_vm4, 3, %v1092_v16  ;;  %v1107_v61 = vsel %vm1103_vm3, %v1101_v34, %v1093_v9  ;;  %v1108_v28 = vsel %vm1104_vm4, %v1102_v22, %v1094_v40 }
 0x157   :  { %vm1117_vm14 = vcmp.gt.f32.partialorder %v1115_v13, %v1107_v61  ;;  %vm1118_vm9 = vcmp.gt.f32.partialorder %v1116_v43, %v1108_v28  ;;  %v1140_v24 = vrot.slane %v2770_v33, %v3268_v56  ;;  %v1154_v35 = vrot.slane %v2770_v33, %v2000_v58 }
 0x158   :  { %v1119_v11 = vsel %vm1117_vm14, 4, %v1105_v3  ;;  %v1120_v59 = vsel %vm1118_vm9, 4, %v1106_v15  ;;  %v1121_v36 = vsel %vm1117_vm14, %v1115_v13, %v1107_v61  ;;  %v1122_v52 = vsel %vm1118_vm9, %v1116_v43, %v1108_v28  ;;  %v3311_v28 = vld [vmem:[#allocation17_spill] sm:$0xff] }
 0x159   :  { %vm1131_vm0 = vcmp.gt.f32.partialorder %v1129_v5, %v1121_v36  ;;  %vm1132_vm7 = vcmp.gt.f32.partialorder %v1130_v44, %v1122_v52  ;;  %v2841_v42 = vsel %vm1221_vm5, 1, %v3240_v0  ;;  %v1141_v15 = vadd.f32 %v1140_v24, %v1989_v54 }
 0x15a   :  { %v1133_v34 = vsel %vm1131_vm0, 5, %v1119_v11  ;;  %v1134_v22 = vsel %vm1132_vm7, 5, %v1120_v59  ;;  %v1135_v51 = vsel %vm1131_vm0, %v1129_v5, %v1121_v36  ;;  %v1142_v3 = vadd.f32 %v1140_v24, %v2218_v30  ;;  %v3313_v59 = vld [vmem:[#allocation15_spill] sm:$0xff] }
 0x15b   :  { %v1155_v27 = vadd.f32 %v1154_v35, %v2015_v1  ;;  %v1156_v46 = vadd.f32 %v1154_v35, %v2202_v53  ;;  %vm1233_vm8 = vcmp.eq.s32.totalorder %v3287_v45, 6  ;;  %v1136_v13 = vsel %vm1132_vm7, %v1130_v44, %v1122_v52  ;;  %v3312_v44 = vld [vmem:[#allocation28_spill] sm:$0xff]  ;;  %v3314_v52 = vld [vmem:[#allocation29_spill] sm:$0xff] }
 0x15c   :  { %v1168_v43 = vrot.slane %v2772_v39, %v1908_v18  ;;  %v1182_v60 = vrot.slane %v2772_v39, %v1914_v21  ;;  %v1196_v16 = vrot.slane %v2772_v39, %v1906_v17  ;;  %v1143_v9 = vadd.f32 %v2785_v26, %v1141_v15  ;;  %v3315_v35 = vld [vmem:[#allocation4_spill] sm:$0xff] }
 0x15d   :  { %v1144_v40 = vadd.f32 %v2790_v12, %v1142_v3  ;;  %v1157_v8 = vadd.f32 %v2785_v26, %v1155_v27  ;;  %v1158_v61 = vadd.f32 %v2790_v12, %v1156_v46 }
 0x15e   :  { %v1169_v5 = vadd.f32 %v1168_v43, %v3311_v28  ;;  %v1170_v11 = vadd.f32 %v1168_v43, %v3312_v44  ;;  %v1183_v36 = vadd.f32 %v1182_v60, %v3313_v59  ;;  %v1184_v24 = vadd.f32 %v1182_v60, %v3314_v52 }
 0x15f   :  { %vm1145_vm5 = vcmp.gt.f32.partialorder %v1143_v9, %v1135_v51  ;;  %vm1146_vm10 = vcmp.gt.f32.partialorder %v1144_v40, %v1136_v13  ;;  %v1197_v53 = vadd.f32 %v1196_v16, %v3315_v35  ;;  %v1198_v15 = vadd.f32 %v1196_v16, %v1998_v57 }
 0x160   :  { %v1147_v30 = vsel %vm1145_vm5, 6, %v1133_v34  ;;  %v1148_v3 = vsel %vm1146_vm10, 6, %v1134_v22  ;;  %v1149_v32 = vsel %vm1145_vm5, %v1143_v9, %v1135_v51  ;;  %v1150_v27 = vsel %vm1146_vm10, %v1144_v40, %v1136_v13 }
 0x161   :  { %vm1159_vm13 = vcmp.gt.f32.partialorder %v1157_v8, %v1149_v32  ;;  %vm1160_vm3 = vcmp.gt.f32.partialorder %v1158_v61, %v1150_v27  ;;  %v1171_v46 = vadd.f32 %v2785_v26, %v1169_v5  ;;  %v1172_v43 = vadd.f32 %v2790_v12, %v1170_v11 }
 0x162   :  { %v1161_v44 = vsel %vm1159_vm13, 7, %v1147_v30  ;;  %v1162_v10 = vsel %vm1160_vm3, 7, %v1148_v3  ;;  %v1163_v6 = vsel %vm1159_vm13, %v1157_v8, %v1149_v32  ;;  %v1164_v60 = vsel %vm1160_vm3, %v1158_v61, %v1150_v27 }
 0x163   :  { %vm1173_vm4 = vcmp.gt.f32.partialorder %v1171_v46, %v1163_v6  ;;  %vm1174_vm14 = vcmp.gt.f32.partialorder %v1172_v43, %v1164_v60  ;;  %v1185_v52 = vadd.f32 %v2785_v26, %v1183_v36  ;;  %v1186_v16 = vadd.f32 %v2790_v12, %v1184_v24  ;;  %v3320_v24 = vld [vmem:[#allocation6_spill] sm:$0xff] }
 0x164   :  { %v1175_v34 = vsel %vm1173_vm4, 8, %v1161_v44  ;;  %v1176_v22 = vsel %vm1174_vm14, 8, %v1162_v10  ;;  %v1177_v51 = vsel %vm1173_vm4, %v1171_v46, %v1163_v6  ;;  %v1178_v13 = vsel %vm1174_vm14, %v1172_v43, %v1164_v60 }
 0x165   :  { %vm1187_vm9 = vcmp.gt.f32.partialorder %v1185_v52, %v1177_v51  ;;  %vm1188_vm0 = vcmp.gt.f32.partialorder %v1186_v16, %v1178_v13  ;;  %v1199_v9 = vadd.f32 %v2785_v26, %v1197_v53  ;;  %v1200_v40 = vadd.f32 %v2790_v12, %v1198_v15 }
 0x166   :  { %v1191_v30 = vsel %vm1187_vm9, %v1185_v52, %v1177_v51  ;;  %v1192_v5 = vsel %vm1188_vm0, %v1186_v16, %v1178_v13  ;;  %v1234_v32 = vsel %vm1233_vm8, 1, %v3240_v0  ;;  %v3316_v8 = vrot.slane %v2743_v63, %v1908_v18 }
 0x167   :  { %vm1201_vm5 = vcmp.gt.f32.partialorder %v1199_v9, %v1191_v30  ;;  %vm1202_vm10 = vcmp.gt.f32.partialorder %v1200_v40, %v1192_v5  ;;  %v1210_v53 = vrot.slane %v2772_v39, %v1927_v25  ;;  %v1189_v6 = vsel %vm1187_vm9, 9, %v1175_v34 }
 0x168   :  { %vm2876_vm7 = vcmp.eq.s32.totalorder %v3316_v8, 1  ;;  %v1190_v10 = vsel %vm1188_vm0, 9, %v1176_v22  ;;  %v1226_v44 = vrot.slane %v2841_v42, %v1908_v18  ;;  %v1238_v63 = vrot.slane %v1234_v32, %v1908_v18 }
 0x169   :  { %v1211_v11 = vadd.f32 %v1210_v53, %v3255_v50  ;;  %v1212_v36 = vadd.f32 %v1210_v53, %v2288_v2  ;;  %v3319_v52 = vsel %vm2604_vm1, %v3310_v62, %v3309_v41  ;;  %v1205_v3 = vsel %vm1201_vm5, %v1199_v9, %v1191_v30 }
 0x16a   :  { %v2895_v15 = vsel %vm2726_vm12, %v3320_v24, %v3319_v52  ;;  %v1206_v27 = vsel %vm1202_vm10, %v1200_v40, %v1192_v5  ;;  %vm1407_vm8 = vcmp.gt.s32.totalorder %v2817_v4, 7  ;;  %v1203_v46 = vsel %vm1201_vm5, 10, %v1189_v6  ;;  %v1811_v40 = vld [vmem:[%s3146_s1 + $0x70] sm:$0xff] }
 0x16b   :  { %v1055_v42 = vsel %vm2876_vm7, %v2772_v39, %v2895_v15  ;;  %v1204_v43 = vsel %vm1202_vm10, 10, %v1190_v10  ;;  %v1213_v60 = vadd.f32 %v2785_v26, %v1211_v11  ;;  %v1214_v41 = vadd.f32 %v2790_v12, %v1212_v36 }
 0x16c   :  { %vm2904_vm13 = vcmp.eq.s32.totalorder %v1226_v44, 1  ;;  %vm1419_vm3 = vcmp.eq.s32.totalorder %v3287_v45, 7  ;;  %v2910_v4 = vsel %vm1407_vm8, 1, %v3240_v0  ;;  %vm2913_vm9 = vcmp.eq.s32.totalorder %v1238_v63, 1 }
 0x16d   :  { %vm1215_vm4 = vcmp.gt.f32.partialorder %v1213_v60, %v1205_v3  ;;  %vm1216_vm14 = vcmp.gt.f32.partialorder %v1214_v41, %v1206_v27  ;;  %v2923_v9 = vsel %vm1419_vm3, 1, %v3240_v0  ;;  %v1412_v63 = vrot.slane %v2910_v4, %v1908_v18 }
 0x16e   :  { %v1217_v16 = vsel %vm1215_vm4, 11, %v1203_v46  ;;  %v1218_v34 = vsel %vm1216_vm14, 11, %v1204_v43  ;;  %v1219_v22 = vsel %vm1215_vm4, %v1213_v60, %v1205_v3  ;;  %v2945_v11 = vsel %vm1216_vm14, %v1214_v41, %v1206_v27 }
 0x16f   :  { %v1228_v26 = vsel %vm2904_vm13, %v1217_v16, 0  ;;  %v1229_v12 = vsel %vm2904_vm13, %v1218_v34, 0  ;;  %v1248_v13 = vrot.slane %v1219_v22, %v1908_v18  ;;  %v1256_v30 = vrot.slane %v1219_v22, %v1914_v21 }
 0x170   :  { %1231 = vst.msk [vmem:[#allocation2 + $0x50] sm:$0xff] %vm299_vm15, %v1228_v26  ;;  %v1270_v5 = vrot.slane %v1219_v22, %v1906_v17  ;;  %v1284_v32 = vrot.slane %v1219_v22, %v1927_v25  ;;  %v1298_v8 = vrot.slane %v1219_v22, %v3256_v20  ;;  %v2936_v6 = vrot.slane %v1219_v22, %v3257_v7 }
 0x171   :  { %1232 = vst.msk [vmem:[#allocation2 + $0x58] sm:$0xf] %vm301_vm6, %v1229_v12  ;;  %v1249_v53 = vadd.f32 %v1248_v13, %v3258_v23  ;;  %v2939_v10 = vrot.slane %v1219_v22, %v3268_v56  ;;  %v2942_v44 = vrot.slane %v1219_v22, %v2000_v58  ;;  %v1257_v36 = vadd.f32 %v1256_v30, %v3260_v37 }
 0x172   :  { %v1271_v20 = vadd.f32 %v1270_v5, %v3281_v14  ;;  %v1054_v7 = vsel %vm2876_vm7, %v2770_v33, %v2755_v29  ;;  %v1285_v56 = vadd.f32 %v1284_v32, %v3283_v49  ;;  %v1299_v58 = vadd.f32 %v1298_v8, %v3285_v19 }
 0x173   :  { %v1251_v23 = vadd.f32 %v1811_v40, %v1249_v53  ;;  %v2959_v52 = vsel %vm2913_vm9, %v1219_v22, %v1054_v7  ;;  %v1259_v37 = vadd.f32 %v1811_v40, %v1257_v36  ;;  %v1313_v14 = vadd.f32 %v2936_v6, %v1978_v48  ;;  %v3325_v7 = vld [vmem:[#allocation20_spill] sm:$0xff] }
 0x174   :  { %v1424_v24 = vrot.slane %v2923_v9, %v1908_v18  ;;  %v1273_v3 = vadd.f32 %v1811_v40, %v1271_v20  ;;  %v1327_v29 = vadd.f32 %v2939_v10, %v1989_v54  ;;  %v1341_v49 = vadd.f32 %v2942_v44, %v2015_v1 }
 0x175   :  { %v2971_v19 = vrot.slane %v2945_v11, %v1908_v18  ;;  %vm1261_vm0 = vcmp.gt.f32.partialorder %v1259_v37, %v1251_v23  ;;  %v2975_v33 = vrot.slane %v2945_v11, %v1914_v21  ;;  %v2979_v48 = vrot.slane %v2945_v11, %v1906_v17  ;;  %v2993_v17 = vld [vmem:[%s3146_s1 + $0x78] sm:$0xf] }
 0x176   :  { %v2983_v27 = vrot.slane %v2945_v11, %v1927_v25  ;;  %v1263_v54 = vsel %vm1261_vm0, 1, %v3240_v0  ;;  %v1265_v1 = vsel %vm1261_vm0, %v1259_v37, %v1251_v23  ;;  %v1287_v46 = vadd.f32 %v1811_v40, %v1285_v56 }
 0x177   :  { %v1301_v43 = vadd.f32 %v1811_v40, %v1299_v58  ;;  %vm1275_vm5 = vcmp.gt.f32.partialorder %v1273_v3, %v1265_v1  ;;  %v1315_v60 = vadd.f32 %v1811_v40, %v1313_v14  ;;  %v1355_v41 = vadd.f32 %v2971_v19, %v3311_v28  ;;  %v3326_v58 = vld [vmem:[#allocation21_spill] sm:$0xff]  ;;  %v3327_v14 = vld [vmem:[#allocation22_spill] sm:$0xff] }
 0x178   :  { %v1369_v21 = vadd.f32 %v2975_v33, %v3313_v59  ;;  %v1277_v62 = vsel %vm1275_vm5, 2, %v1263_v54  ;;  %v1279_v4 = vsel %vm1275_vm5, %v1273_v3, %v1265_v1  ;;  %v1329_v16 = vadd.f32 %v1811_v40, %v1327_v29  ;;  %v3328_v54 = vld [vmem:[#allocation24_spill] sm:$0xff] }
 0x179   :  { %v1250_v34 = vadd.f32 %v1248_v13, %v3259_v55  ;;  %vm1289_vm10 = vcmp.gt.f32.partialorder %v1287_v46, %v1279_v4  ;;  %v1343_v22 = vadd.f32 %v1811_v40, %v1341_v49  ;;  %v1383_v26 = vadd.f32 %v2979_v48, %v3315_v35 }
 0x17a   :  { %v1397_v28 = vadd.f32 %v2983_v27, %v3255_v50  ;;  %v1291_v12 = vsel %vm1289_vm10, 3, %v1277_v62  ;;  %v1293_v59 = vsel %vm1289_vm10, %v1287_v46, %v1279_v4  ;;  %v1258_v53 = vadd.f32 %v1256_v30, %v3261_v31  ;;  %v3333_v4 = vld [vmem:[#allocation27_spill] sm:$0xff] }
 0x17b   :  { %v1252_v9 = vadd.f32 %v2993_v17, %v1250_v34  ;;  %vm1303_vm8 = vcmp.gt.f32.partialorder %v1301_v43, %v1293_v59  ;;  %v1357_v36 = vadd.f32 %v1811_v40, %v1355_v41  ;;  %v1371_v20 = vadd.f32 %v1811_v40, %v1369_v21  ;;  %v3334_v34 = vld [vmem:[#allocation26_spill] sm:$0xff] }
 0x17c   :  { %v1272_v23 = vadd.f32 %v1270_v5, %v3325_v7  ;;  %v1305_v55 = vsel %vm1303_vm8, 4, %v1291_v12  ;;  %v1307_v13 = vsel %vm1303_vm8, %v1301_v43, %v1293_v59  ;;  %v1260_v56 = vadd.f32 %v2993_v17, %v1258_v53  ;;  %v3335_v7 = vld [vmem:[#allocation28_spill] sm:$0xff] }
 0x17d   :  { %v1286_v35 = vadd.f32 %v1284_v32, %v3326_v58  ;;  %vm1317_vm13 = vcmp.gt.f32.partialorder %v1315_v60, %v1307_v13  ;;  %v1385_v37 = vadd.f32 %v1811_v40, %v1383_v26  ;;  %v1399_v50 = vadd.f32 %v1811_v40, %v1397_v28 }
 0x17e   :  { %v1300_v3 = vadd.f32 %v1298_v8, %v3327_v14  ;;  %v1319_v29 = vsel %vm1317_vm13, 5, %v1305_v55  ;;  %v1321_v49 = vsel %vm1317_vm13, %v1315_v60, %v1307_v13  ;;  %vm1262_vm3 = vcmp.gt.f32.partialorder %v1260_v56, %v1252_v9 }
 0x17f   :  { %v1274_v31 = vadd.f32 %v2993_v17, %v1272_v23  ;;  %vm1331_vm4 = vcmp.gt.f32.partialorder %v1329_v16, %v1321_v49  ;;  %v1264_v30 = vsel %vm1262_vm3, 1, %v3240_v0  ;;  %v1266_v5 = vsel %vm1262_vm3, %v1260_v56, %v1252_v9 }
 0x180   :  { %v1314_v1 = vadd.f32 %v2936_v6, %v3328_v54  ;;  %v1333_v46 = vsel %vm1331_vm4, 6, %v1319_v29  ;;  %v1335_v43 = vsel %vm1331_vm4, %v1329_v16, %v1321_v49  ;;  %vm3010_vm14 = vcmp.eq.s32.totalorder %v1412_v63, 1 }
 0x181   :  { %vm3014_vm0 = vcmp.eq.s32.totalorder %v1424_v24, 1  ;;  %vm1276_vm5 = vcmp.gt.f32.partialorder %v1274_v31, %v1266_v5  ;;  %v1288_v8 = vadd.f32 %v2993_v17, %v1286_v35  ;;  %vm1345_vm10 = vcmp.gt.f32.partialorder %v1343_v22, %v1335_v43  ;;  %v3336_v35 = vld [vmem:[#allocation29_spill] sm:$0xff] }
 0x182   :  { %v1278_v60 = vsel %vm1276_vm5, 2, %v1264_v30  ;;  %v1280_v41 = vsel %vm1276_vm5, %v1274_v31, %v1266_v5  ;;  %v1302_v21 = vadd.f32 %v2993_v17, %v1300_v3  ;;  %v1347_v62 = vsel %vm1345_vm10, 7, %v1333_v46  ;;  %v1431_v30 = vpop.permute.xlu1 %1430 }
 0x183   :  { %v1349_v6 = vsel %vm1345_vm10, %v1343_v22, %v1335_v43  ;;  %vm1290_vm8 = vcmp.gt.f32.partialorder %v1288_v8, %v1280_v41  ;;  %v1328_v63 = vadd.f32 %v2939_v10, %v3333_v4  ;;  %v1342_v26 = vadd.f32 %v2942_v44, %v3334_v34 }
 0x184   :  { %vm1359_vm13 = vcmp.gt.f32.partialorder %v1357_v36, %v1349_v6  ;;  %v1292_v16 = vsel %vm1290_vm8, 3, %v1278_v60  ;;  %v1294_v24 = vsel %vm1290_vm8, %v1288_v8, %v1280_v41  ;;  %v1316_v59 = vadd.f32 %v2993_v17, %v1314_v1 }
 0x185   :  { %v1361_v28 = vsel %vm1359_vm13, 8, %v1347_v62  ;;  %v1363_v12 = vsel %vm1359_vm13, %v1357_v36, %v1349_v6  ;;  %vm1304_vm3 = vcmp.gt.f32.partialorder %v1302_v21, %v1294_v24  ;;  %v1356_v22 = vadd.f32 %v2971_v19, %v3335_v7 }
 0x186   :  { %vm1373_vm4 = vcmp.gt.f32.partialorder %v1371_v20, %v1363_v12  ;;  %v1306_v9 = vsel %vm1304_vm3, 4, %v1292_v16  ;;  %v1308_v53 = vsel %vm1304_vm3, %v1302_v21, %v1294_v24  ;;  %v1330_v10 = vadd.f32 %v2993_v17, %v1328_v63 }
 0x187   :  { %v1375_v23 = vsel %vm1373_vm4, 9, %v1361_v28  ;;  %v1377_v55 = vsel %vm1373_vm4, %v1371_v20, %v1363_v12  ;;  %vm1318_vm5 = vcmp.gt.f32.partialorder %v1316_v59, %v1308_v53  ;;  %v1344_v44 = vadd.f32 %v2993_v17, %v1342_v26 }
 0x188   :  { %vm1387_vm10 = vcmp.gt.f32.partialorder %v1385_v37, %v1377_v55  ;;  %v1320_v13 = vsel %vm1318_vm5, 5, %v1306_v9  ;;  %v1322_v56 = vsel %vm1318_vm5, %v1316_v59, %v1308_v53  ;;  %v1370_v14 = vadd.f32 %v2975_v33, %v3336_v35 }
 0x189   :  { %v1389_v36 = vsel %vm1387_vm10, 10, %v1375_v23  ;;  %v1391_v58 = vsel %vm1387_vm10, %v1385_v37, %v1377_v55  ;;  %vm1332_vm8 = vcmp.gt.f32.partialorder %v1330_v10, %v1322_v56  ;;  %v1358_v19 = vadd.f32 %v2993_v17, %v1356_v22 }
 0x18a   :  { %vm1401_vm13 = vcmp.gt.f32.partialorder %v1399_v50, %v1391_v58  ;;  %v1334_v3 = vsel %vm1332_vm8, 6, %v1320_v13  ;;  %v1336_v29 = vsel %vm1332_vm8, %v1330_v10, %v1322_v56  ;;  %v1384_v31 = vadd.f32 %v2979_v48, %v1998_v57 }
 0x18b   :  { %v1403_v20 = vsel %vm1401_vm13, 11, %v1389_v36  ;;  %v1405_v49 = vsel %vm1401_vm13, %v1399_v50, %v1391_v58  ;;  %vm1346_vm3 = vcmp.gt.f32.partialorder %v1344_v44, %v1336_v29  ;;  %v1372_v50 = vadd.f32 %v2993_v17, %v1370_v14 }
 0x18c   :  { %v1414_v5 = vsel %vm3010_vm14, %v1403_v20, 0  ;;  %v1426_v37 = vsel %vm3014_vm0, %v1405_v49, %v2959_v52  ;;  %v1348_v33 = vsel %vm1346_vm3, 7, %v1334_v3  ;;  %v1350_v54 = vsel %vm1346_vm3, %v1344_v44, %v1336_v29  ;;  %v1436_v3 = vpop.permute.xlu1 %1435 }
 0x18d   :  { %1417 = vst.msk [vmem:[#allocation2 + $0x60] sm:$0xff] %vm299_vm15, %v1414_v5  ;;  %v1438_v1 = vadd.f32 %v1431_v30, %v1426_v37  ;;  %vm1360_vm4 = vcmp.gt.f32.partialorder %v1358_v19, %v1350_v54  ;;  %v1398_v46 = vadd.f32 %v2983_v27, %v2288_v2  ;;  %v1386_v43 = vadd.f32 %v2993_v17, %v1384_v31 }
 0x18e   :  { %v1362_v57 = vsel %vm1360_vm4, 8, %v1348_v33  ;;  %v1364_v48 = vsel %vm1360_vm4, %v1358_v19, %v1350_v54  ;;  %v1241_v58 = vsel %vm2913_vm9, %v2945_v11, %v1055_v42 }
 0x18f   :  { %vm1374_vm5 = vcmp.gt.f32.partialorder %v1372_v50, %v1364_v48  ;;  %v1441_v8 = vrot.slane %v1438_v1, 7  ;;  %v1400_v52 = vadd.f32 %v2993_v17, %v1398_v46 }
 0x190   :  { %v1376_v60 = vsel %vm1374_vm5, 9, %v1362_v57  ;;  %v1378_v41 = vsel %vm1374_vm5, %v1372_v50, %v1364_v48 }
 0x191   :  { %vm1388_vm10 = vcmp.gt.f32.partialorder %v1386_v43, %v1378_v41  ;;  %vm1443_vm8 = vcmp.gt.f32.partialorder %v1438_v1, %v1441_v8 }
 0x192   :  { %v1390_v21 = vsel %vm1388_vm10, 10, %v1376_v60  ;;  %v1392_v62 = vsel %vm1388_vm10, %v1386_v43, %v1378_v41  ;;  %v1444_v6 = vsel %vm1443_vm8, 1, %v3240_v0  ;;  %v1445_v4 = vsel %vm1443_vm8, %v1438_v1, %v1441_v8 }
 0x193   :  { %vm1402_vm15 = vcmp.gt.f32.partialorder %v1400_v52, %v1392_v62  ;;  %v1447_v63 = vrot.slane %v1445_v4, 7  ;;  %v1450_v2 = vrot.slane %v1444_v6, 7 }
 0x194   :  { %v1404_v27 = vsel %vm1402_vm15, 11, %v1390_v21  ;;  %v1406_v56 = vsel %vm1402_vm15, %v1400_v52, %v1392_v62  ;;  %v1518_v43 = vld [vmem:[#allocation2 + $0x60] sm:$0xff] }
 0x195   :  { %v1415_v16 = vsel %vm3010_vm14, %v1404_v27, 0  ;;  %vm1449_vm13 = vcmp.gt.f32.partialorder %v1438_v1, %v1447_v63  ;;  %v1427_v29 = vsel %vm3014_vm0, %v1406_v56, %v1241_v58  ;;  %vm1516_vm0 = vcmask 11267   ;;  %v1561_v56 = vld [vmem:[#allocation2 + $0x58] sm:$0xf] }
 0x196   :  { %1418 = vst.msk [vmem:[#allocation2 + $0x68] sm:$0xf] %vm301_vm6, %v1415_v16  ;;  %v1451_v24 = vsel %vm1449_vm13, 2, %v1450_v2  ;;  %v1452_v34 = vsel %vm1449_vm13, %v1438_v1, %v1447_v63  ;;  %v1439_v49 = vadd.f32 %v1436_v3, %v1427_v29 }
 0x197   :  { %v1454_v17 = vrot.slane %v1452_v34, 7  ;;  %v1457_v26 = vrot.slane %v1451_v24, 7 }
 0x199   :  { %vm1456_vm3 = vcmp.gt.f32.partialorder %v1438_v1, %v1454_v17 }
 0x19a   :  { %v1458_v28 = vsel %vm1456_vm3, 3, %v1457_v26  ;;  %v1459_v12 = vsel %vm1456_vm3, %v1438_v1, %v1454_v17 }
 0x19b   :  { %v1461_v59 = vrot.slane %v1459_v12, 7  ;;  %v1464_v9 = vrot.slane %v1458_v28, 7  ;;  %v1560_v28 = vld [vmem:[#allocation2 + $0x50] sm:$0xff] }
 0x19d   :  { %vm1463_vm4 = vcmp.gt.f32.partialorder %v1438_v1, %v1461_v59  ;;  %v1519_v62 = vld [vmem:[#allocation2 + $0x68] sm:$0xf] }
 0x19e   :  { %v1465_v53 = vsel %vm1463_vm4, 4, %v1464_v9  ;;  %v1466_v7 = vsel %vm1463_vm4, %v1438_v1, %v1461_v59 }
 0x19f   :  { %v1468_v22 = vrot.slane %v1466_v7, 7  ;;  %v1471_v23 = vrot.slane %v1465_v53, 7 }
 0x1a1   :  { %vm1470_vm5 = vcmp.gt.f32.partialorder %v1438_v1, %v1468_v22 }
 0x1a2   :  { %v1472_v32 = vsel %vm1470_vm5, 5, %v1471_v23  ;;  %v1473_v55 = vsel %vm1470_vm5, %v1438_v1, %v1468_v22 }
 0x1a3   :  { %v1475_v10 = vrot.slane %v1473_v55, 7  ;;  %v1478_v13 = vrot.slane %v1472_v32, 7 }
 0x1a5   :  { %vm1477_vm6 = vcmp.gt.f32.partialorder %v1438_v1, %v1475_v10 }
 0x1a6   :  { %v1479_v44 = vsel %vm1477_vm6, 6, %v1478_v13  ;;  %v1480_v36 = vsel %vm1477_vm6, %v1438_v1, %v1475_v10 }
 0x1a7   :  { %v1482_v35 = vrot.slane %v1480_v36, 7  ;;  %v1485_v14 = vrot.slane %v1479_v44, 7 }
 0x1a9   :  { %vm1484_vm14 = vcmp.gt.f32.partialorder %v1438_v1, %v1482_v35 }
 0x1aa   :  { %v1486_v19 = vsel %vm1484_vm14, 7, %v1485_v14  ;;  %v1487_v20 = vsel %vm1484_vm14, %v1438_v1, %v1482_v35 }
 0x1ab   :  { %v1489_v31 = vrot.slane %v1487_v20, 7  ;;  %v1492_v30 = vrot.slane %v1486_v19, 7 }
 0x1ad   :  { %vm1491_vm10 = vcmp.gt.f32.partialorder %v1439_v49, %v1489_v31 }
 0x1ae   :  { %v1493_v5 = vsel %vm1491_vm10, 8, %v1492_v30  ;;  %v1494_v37 = vsel %vm1491_vm10, %v1439_v49, %v1489_v31  ;;  %v1598_v30 = vld [vmem:[#allocation2 + $0x40] sm:$0xff] }
 0x1af   :  { %v1496_v39 = vrot.slane %v1494_v37, 7  ;;  %v1499_v15 = vrot.slane %v1493_v5, 7 }
 0x1b1   :  { %vm1498_vm8 = vcmp.gt.f32.partialorder %v1439_v49, %v1496_v39 }
 0x1b2   :  { %v1500_v33 = vsel %vm1498_vm8, 9, %v1499_v15  ;;  %v1501_v42 = vsel %vm1498_vm8, %v1439_v49, %v1496_v39 }
 0x1b3   :  { %v1503_v11 = vrot.slane %v1501_v42, 7  ;;  %v1506_v54 = vrot.slane %v1500_v33, 7 }
 0x1b5   :  { %vm1505_vm15 = vcmp.gt.f32.partialorder %v1439_v49, %v1503_v11 }
 0x1b6   :  { %v1507_v50 = vsel %vm1505_vm15, 10, %v1506_v54  ;;  %v1508_v40 = vsel %vm1505_vm15, %v1439_v49, %v1503_v11 }
 0x1b7   :  { %v1510_v46 = vrot.slane %v1508_v40, 7  ;;  %v1513_v57 = vrot.slane %v1507_v50, 7 }
 0x1b9   :  { %vm1512_vm13 = vcmp.gt.f32.partialorder %v1439_v49, %v1510_v46 }
 0x1ba   :  { %v1514_v1 = vsel %vm1512_vm13, 11, %v1513_v57  ;;  %v1599_v57 = vld [vmem:[#allocation2 + $0x48] sm:$0xf] }
 0x1bb   :  { %1813 = vst.msk [vmem:[%s3149_s4 + $0x4] sm:$0x8] %vm1516_vm0, %v1514_v1  ;;  %v3066_v48 = vrot.slane %v1514_v1, %v1927_v25  ;;  %vm1526_vm3 = vcmp.eq.s32.totalorder %v1514_v1, 1  ;;  %vm1530_vm4 = vcmp.eq.s32.totalorder %v1514_v1, 2  ;;  %vm1533_vm5 = vcmp.eq.s32.totalorder %v1514_v1, 3 }
 0x1bc   :  { %vm1535_vm6 = vcmp.eq.s32.totalorder %v1514_v1, 4  ;;  %vm1538_vm14 = vcmp.eq.s32.totalorder %v1514_v1, 5  ;;  %vm1541_vm10 = vcmp.eq.s32.totalorder %v1514_v1, 6  ;;  %vm1544_vm8 = vcmp.eq.s32.totalorder %v1514_v1, 7 }
 0x1bd   :  { %v1524_v8 = vsel %vm2913_vm9, %v3066_v48, %v1518_v43  ;;  %v1525_v25 = vsel %vm2913_vm9, %v3066_v48, %v1519_v62  ;;  %vm1547_vm15 = vcmp.eq.s32.totalorder %v1514_v1, 8  ;;  %vm1550_vm13 = vcmp.eq.s32.totalorder %v1514_v1, 9 }
 0x1be   :  { %v1527_v60 = vrot.slane %v1524_v8, 6  ;;  %v1528_v41 = vrot.slane %v1524_v8, 5  ;;  %v1531_v52 = vrot.slane %v1524_v8, 7  ;;  %v1536_v4 = vrot.slane %v1524_v8, 1 }
 0x1bf   :  { %v1539_v2 = vrot.slane %v1524_v8, 2  ;;  %v1542_v16 = vrot.slane %v1524_v8, 3  ;;  %v1545_v34 = vrot.slane %v1524_v8, 4  ;;  %v1548_v26 = vrot.slane %v1525_v25, 5 }
 0x1c0   :  { %v1529_v21 = vsel %vm1526_vm3, %v1527_v60, %v1528_v41  ;;  %v1551_v59 = vrot.slane %v1525_v25, 6  ;;  %v1554_v51 = vrot.slane %v1525_v25, 7  ;;  %v1562_v53 = vsel %vm2876_vm7, %v3066_v48, %v1560_v28 }
 0x1c1   :  { %v1532_v6 = vsel %vm1530_vm4, %v1531_v52, %v1529_v21  ;;  %vm1553_vm9 = vcmp.eq.s32.totalorder %v1514_v1, 10  ;;  %vm1556_vm3 = vcmp.eq.s32.totalorder %v1514_v1, 11  ;;  %v1565_v32 = vrot.slane %v1562_v53, 6 }
 0x1c2   :  { %v1534_v63 = vsel %vm1533_vm5, %v1524_v8, %v1532_v6  ;;  %v1566_v55 = vrot.slane %v1562_v53, 5  ;;  %v1569_v10 = vrot.slane %v1562_v53, 7  ;;  %v1574_v36 = vrot.slane %v1562_v53, 1 }
 0x1c3   :  { %v1537_v27 = vsel %vm1535_vm6, %v1536_v4, %v1534_v63  ;;  %v1563_v58 = vsel %vm2876_vm7, %v3066_v48, %v1561_v56  ;;  %v1577_v14 = vrot.slane %v1562_v53, 2  ;;  %v1580_v29 = vrot.slane %v1562_v53, 3  ;;  %v1636_v63 = vld [vmem:[#allocation2 + $0x30] sm:$0xff] }
 0x1c4   :  { %v1540_v24 = vsel %vm1538_vm14, %v1539_v2, %v1537_v27  ;;  %v1583_v20 = vrot.slane %v1562_v53, 4  ;;  %v1586_v31 = vrot.slane %v1563_v58, 5  ;;  %v1589_v37 = vrot.slane %v1563_v58, 6 }
 0x1c5   :  { %v1543_v17 = vsel %vm1541_vm10, %v1542_v16, %v1540_v24  ;;  %v1592_v61 = vrot.slane %v1563_v58, 7  ;;  %v1600_v15 = vsel %vm2726_vm12, %v3066_v48, %v1598_v30  ;;  %v1601_v8 = vsel %vm2726_vm12, %v3066_v48, %v1599_v57 }
 0x1c6   :  { %v1546_v12 = vsel %vm1544_vm8, %v1545_v34, %v1543_v17  ;;  %v1603_v54 = vrot.slane %v1600_v15, 6  ;;  %v1604_v50 = vrot.slane %v1600_v15, 5  ;;  %v1607_v40 = vrot.slane %v1600_v15, 7 }
 0x1c7   :  { %v1549_v9 = vsel %vm1547_vm15, %v1548_v26, %v1546_v12  ;;  %v1612_v43 = vrot.slane %v1600_v15, 1  ;;  %v1615_v41 = vrot.slane %v1600_v15, 2  ;;  %v1618_v21 = vrot.slane %v1600_v15, 3 }
 0x1c8   :  { %v1552_v7 = vsel %vm1550_vm13, %v1551_v59, %v1549_v9  ;;  %v1621_v6 = vrot.slane %v1600_v15, 4  ;;  %v1627_v27 = vrot.slane %v1601_v8, 6  ;;  %v1630_v38 = vrot.slane %v1601_v8, 7 }
 0x1c9   :  { %v1555_v22 = vsel %vm1553_vm9, %v1554_v51, %v1552_v7  ;;  %v1638_v24 = vsel %vm2604_vm1, %v3066_v48, %v1636_v63  ;;  %v1637_v51 = vld [vmem:[#allocation2 + $0x38] sm:$0xf] }
 0x1ca   :  { %v1557_v23 = vsel %vm1556_vm3, %v1525_v25, %v1555_v22  ;;  %v1624_v25 = vrot.slane %v1601_v8, 5  ;;  %v1641_v28 = vrot.slane %v1638_v24, 6  ;;  %v1642_v12 = vrot.slane %v1638_v24, 5 }
 0x1cb   :  { %1814 = vst.msk [vmem:[%s3149_s4 + $0x3] sm:$0x8] %vm1516_vm0, %v1557_v23  ;;  %vm1564_vm4 = vcmp.eq.s32.totalorder %v1557_v23, 1  ;;  %vm1568_vm5 = vcmp.eq.s32.totalorder %v1557_v23, 2  ;;  %vm1571_vm6 = vcmp.eq.s32.totalorder %v1557_v23, 3  ;;  %vm1573_vm14 = vcmp.eq.s32.totalorder %v1557_v23, 4 }
 0x1cc   :  { %v1567_v13 = vsel %vm1564_vm4, %v1565_v32, %v1566_v55  ;;  %vm1576_vm10 = vcmp.eq.s32.totalorder %v1557_v23, 5  ;;  %vm1579_vm8 = vcmp.eq.s32.totalorder %v1557_v23, 6  ;;  %vm1582_vm15 = vcmp.eq.s32.totalorder %v1557_v23, 7 }
 0x1cd   :  { %v1570_v44 = vsel %vm1568_vm5, %v1569_v10, %v1567_v13  ;;  %vm1585_vm13 = vcmp.eq.s32.totalorder %v1557_v23, 8  ;;  %vm1588_vm9 = vcmp.eq.s32.totalorder %v1557_v23, 9  ;;  %vm1591_vm7 = vcmp.eq.s32.totalorder %v1557_v23, 10 }
 0x1ce   :  { %v1572_v35 = vsel %vm1571_vm6, %v1562_v53, %v1570_v44  ;;  %vm1594_vm3 = vcmp.eq.s32.totalorder %v1557_v23, 11  ;;  %v1645_v59 = vrot.slane %v1638_v24, 7  ;;  %v1650_v7 = vrot.slane %v1638_v24, 1 }
 0x1cf   :  { %v1575_v3 = vsel %vm1573_vm14, %v1574_v36, %v1572_v35  ;;  %v1639_v22 = vsel %vm2604_vm1, %v3066_v48, %v1637_v51  ;;  %v1653_v32 = vrot.slane %v1638_v24, 2  ;;  %v1656_v10 = vrot.slane %v1638_v24, 3 }
 0x1d0   :  { %v1578_v19 = vsel %vm1576_vm10, %v1577_v14, %v1575_v3  ;;  %v1659_v56 = vrot.slane %v1638_v24, 4  ;;  %v1662_v36 = vrot.slane %v1639_v22, 5  ;;  %v1665_v14 = vrot.slane %v1639_v22, 6 }
 0x1d1   :  { %v1581_v49 = vsel %vm1579_vm8, %v1580_v29, %v1578_v19  ;;  %v1668_v47 = vrot.slane %v1639_v22, 7  ;;  %v1751_v29 = vld [vmem:[#allocation2 + $0x8] sm:$0xf] }
 0x1d2   :  { %v1584_v5 = vsel %vm1582_vm15, %v1583_v20, %v1581_v49 }
 0x1d3   :  { %v1587_v39 = vsel %vm1585_vm13, %v1586_v31, %v1584_v5 }
 0x1d4   :  { %v1590_v33 = vsel %vm1588_vm9, %v1589_v37, %v1587_v39 }
 0x1d5   :  { %v1593_v42 = vsel %vm1591_vm7, %v1592_v61, %v1590_v33  ;;  %v1675_v61 = vld [vmem:[#allocation2 + $0x28] sm:$0xf] }
 0x1d6   :  { %v1595_v11 = vsel %vm1594_vm3, %v1563_v58, %v1593_v42  ;;  %v1674_v58 = vld [vmem:[#allocation2 + $0x20] sm:$0xff]  ;;  %v1677_v42 = vsel %vm2467_vm11, %v3066_v48, %v1675_v61 }
 0x1d7   :  { %1815 = vst.msk [vmem:[%s3149_s4 + $0x2] sm:$0x8] %vm1516_vm0, %v1595_v11  ;;  %vm1602_vm4 = vcmp.eq.s32.totalorder %v1595_v11, 1  ;;  %vm1606_vm5 = vcmp.eq.s32.totalorder %v1595_v11, 2  ;;  %vm1609_vm6 = vcmp.eq.s32.totalorder %v1595_v11, 3  ;;  %vm1611_vm14 = vcmp.eq.s32.totalorder %v1595_v11, 4 }
 0x1d8   :  { %v1605_v46 = vsel %vm1602_vm4, %v1603_v54, %v1604_v50  ;;  %vm1614_vm10 = vcmp.eq.s32.totalorder %v1595_v11, 5  ;;  %vm1617_vm8 = vcmp.eq.s32.totalorder %v1595_v11, 6  ;;  %vm1620_vm15 = vcmp.eq.s32.totalorder %v1595_v11, 7 }
 0x1d9   :  { %v1608_v1 = vsel %vm1606_vm5, %v1607_v40, %v1605_v46  ;;  %vm1623_vm13 = vcmp.eq.s32.totalorder %v1595_v11, 8  ;;  %vm1626_vm9 = vcmp.eq.s32.totalorder %v1595_v11, 9  ;;  %vm1629_vm12 = vcmp.eq.s32.totalorder %v1595_v11, 10 }
 0x1da   :  { %v1610_v60 = vsel %vm1609_vm6, %v1600_v15, %v1608_v1  ;;  %vm1632_vm7 = vcmp.eq.s32.totalorder %v1595_v11, 11  ;;  %v1676_v19 = vsel %vm2467_vm11, %v3066_v48, %v1674_v58 }
 0x1db   :  { %v1613_v52 = vsel %vm1611_vm14, %v1612_v43, %v1610_v60  ;;  %v1679_v30 = vrot.slane %v1676_v19, 6  ;;  %v1680_v5 = vrot.slane %v1676_v19, 5  ;;  %v1683_v37 = vrot.slane %v1676_v19, 7 }
 0x1dc   :  { %v1616_v62 = vsel %vm1614_vm10, %v1615_v41, %v1613_v52  ;;  %v1688_v33 = vrot.slane %v1676_v19, 1  ;;  %v1691_v54 = vrot.slane %v1676_v19, 2  ;;  %v1694_v40 = vrot.slane %v1676_v19, 3 }
 0x1dd   :  { %v1619_v4 = vsel %vm1617_vm8, %v1618_v21, %v1616_v62  ;;  %v1697_v57 = vrot.slane %v1676_v19, 4  ;;  %v1700_v43 = vrot.slane %v1677_v42, 5  ;;  %v1703_v41 = vrot.slane %v1677_v42, 6 }
 0x1de   :  { %v1622_v2 = vsel %vm1620_vm15, %v1621_v6, %v1619_v4  ;;  %v1706_v21 = vrot.slane %v1677_v42, 7 }
 0x1df   :  { %v1625_v16 = vsel %vm1623_vm13, %v1624_v25, %v1622_v2 }
 0x1e0   :  { %v1628_v34 = vsel %vm1626_vm9, %v1627_v27, %v1625_v16 }
 0x1e1   :  { %v1631_v17 = vsel %vm1629_vm12, %v1630_v38, %v1628_v34  ;;  %v1713_v34 = vld [vmem:[#allocation2 + $0x18] sm:$0xf] }
 0x1e2   :  { %v1633_v26 = vsel %vm1632_vm7, %v1601_v8, %v1631_v17  ;;  %v1712_v8 = vld [vmem:[#allocation2 + $0x10] sm:$0xff] }
 0x1e3   :  { %1816 = vst.msk [vmem:[%s3149_s4 + $0x1] sm:$0x8] %vm1516_vm0, %v1633_v26  ;;  %vm1640_vm3 = vcmp.eq.s32.totalorder %v1633_v26, 1  ;;  %vm1644_vm4 = vcmp.eq.s32.totalorder %v1633_v26, 2  ;;  %vm1647_vm5 = vcmp.eq.s32.totalorder %v1633_v26, 3  ;;  %vm1649_vm6 = vcmp.eq.s32.totalorder %v1633_v26, 4 }
 0x1e4   :  { %v1643_v9 = vsel %vm1640_vm3, %v1641_v28, %v1642_v12  ;;  %vm1652_vm14 = vcmp.eq.s32.totalorder %v1633_v26, 5  ;;  %vm1655_vm10 = vcmp.eq.s32.totalorder %v1633_v26, 6  ;;  %vm1658_vm8 = vcmp.eq.s32.totalorder %v1633_v26, 7 }
 0x1e5   :  { %v1646_v53 = vsel %vm1644_vm4, %v1645_v59, %v1643_v9  ;;  %vm1661_vm15 = vcmp.eq.s32.totalorder %v1633_v26, 8  ;;  %vm1664_vm13 = vcmp.eq.s32.totalorder %v1633_v26, 9  ;;  %vm1667_vm1 = vcmp.eq.s32.totalorder %v1633_v26, 10 }
 0x1e6   :  { %v1648_v23 = vsel %vm1647_vm5, %v1638_v24, %v1646_v53  ;;  %vm1670_vm9 = vcmp.eq.s32.totalorder %v1633_v26, 11  ;;  %v1714_v6 = vsel %vm2174_vm2, %v3066_v48, %v1712_v8  ;;  %v1715_v26 = vsel %vm2174_vm2, %v3066_v48, %v1713_v34 }
 0x1e7   :  { %v1651_v55 = vsel %vm1649_vm6, %v1650_v7, %v1648_v23  ;;  %v1717_v27 = vrot.slane %v1714_v6, 6  ;;  %v1718_v16 = vrot.slane %v1714_v6, 5  ;;  %v1729_v12 = vrot.slane %v1714_v6, 2  ;;  %v1750_v23 = vld [vmem:[#allocation2] sm:$0xff] }
 0x1e8   :  { %v1654_v13 = vsel %vm1652_vm14, %v1653_v32, %v1651_v55  ;;  %v1732_v9 = vrot.slane %v1714_v6, 3  ;;  %v1735_v53 = vrot.slane %v1714_v6, 4  ;;  %v1741_v55 = vrot.slane %v1715_v26, 6 }
 0x1e9   :  { %v1657_v44 = vsel %vm1655_vm10, %v1656_v10, %v1654_v13  ;;  %vm1752_vm10 = vcmp.eq.s32.totalorder %v3287_v45, 0  ;;  %v1721_v45 = vrot.slane %v1714_v6, 7  ;;  %v1744_v13 = vrot.slane %v1715_v26, 7 }
 0x1ea   :  { %v1660_v35 = vsel %vm1658_vm8, %v1659_v56, %v1657_v44  ;;  %v1753_v25 = vsel %vm1752_vm10, 1, %v3240_v0  ;;  %v1726_v0 = vrot.slane %v1714_v6, 1 }
 0x1eb   :  { %v1663_v3 = vsel %vm1661_vm15, %v1662_v36, %v1660_v35  ;;  %v1757_v24 = vrot.slane %v1753_v25, %v1908_v18 }
 0x1ec   :  { %v1666_v20 = vsel %vm1664_vm13, %v1665_v14, %v1663_v3 }
 0x1ed   :  { %v1669_v49 = vsel %vm1667_vm1, %v1668_v47, %v1666_v20 }
 0x1ee   :  { %v1671_v31 = vsel %vm1670_vm9, %v1639_v22, %v1669_v49  ;;  %v1738_v22 = vrot.slane %v1715_v26, 5 }
 0x1ef   :  { %1817 = vst.msk [vmem:[%s3149_s4] sm:$0x8] %vm1516_vm0, %v1671_v31  ;;  %vm1678_vm12 = vcmp.eq.s32.totalorder %v1671_v31, 1  ;;  %vm1682_vm7 = vcmp.eq.s32.totalorder %v1671_v31, 2  ;;  %vm1685_vm3 = vcmp.eq.s32.totalorder %v1671_v31, 3  ;;  %vm1687_vm4 = vcmp.eq.s32.totalorder %v1671_v31, 4 }
 0x1f0   :  { %v1681_v39 = vsel %vm1678_vm12, %v1679_v30, %v1680_v5  ;;  %vm1690_vm5 = vcmp.eq.s32.totalorder %v1671_v31, 5  ;;  %vm1693_vm6 = vcmp.eq.s32.totalorder %v1671_v31, 6  ;;  %vm1696_vm14 = vcmp.eq.s32.totalorder %v1671_v31, 7 }
 0x1f1   :  { %v1684_v15 = vsel %vm1682_vm7, %v1683_v37, %v1681_v39  ;;  %vm1699_vm8 = vcmp.eq.s32.totalorder %v1671_v31, 8  ;;  %vm1702_vm11 = vcmp.eq.s32.totalorder %v1671_v31, 9  ;;  %vm1705_vm15 = vcmp.eq.s32.totalorder %v1671_v31, 10 }
 0x1f2   :  { %v1686_v11 = vsel %vm1685_vm3, %v1676_v19, %v1684_v15  ;;  %vm1708_vm13 = vcmp.eq.s32.totalorder %v1671_v31, 11 }
 0x1f3   :  { %v1689_v50 = vsel %vm1687_vm4, %v1688_v33, %v1686_v11 }
 0x1f4   :  { %v1692_v46 = vsel %vm1690_vm5, %v1691_v54, %v1689_v50  ;;  %vm3127_vm5 = vcmp.eq.s32.totalorder %v1757_v24, 1 }
 0x1f5   :  { %v1695_v1 = vsel %vm1693_vm6, %v1694_v40, %v1692_v46  ;;  %v1759_v56 = vsel %vm3127_vm5, %v3066_v48, %v1750_v23  ;;  %v1760_v49 = vsel %vm3127_vm5, %v3066_v48, %v1751_v29 }
 0x1f6   :  { %v1698_v60 = vsel %vm1696_vm14, %v1697_v57, %v1695_v1  ;;  %v1762_v35 = vrot.slane %v1759_v56, 6  ;;  %v1763_v14 = vrot.slane %v1759_v56, 5  ;;  %v1766_v3 = vrot.slane %v1759_v56, 7 }
 0x1f7   :  { %v1701_v52 = vsel %vm1699_vm8, %v1700_v43, %v1698_v60  ;;  %v1771_v20 = vrot.slane %v1759_v56, 1  ;;  %v1774_v30 = vrot.slane %v1759_v56, 2  ;;  %v1777_v37 = vrot.slane %v1759_v56, 3 }
 0x1f8   :  { %v1704_v4 = vsel %vm1702_vm11, %v1703_v41, %v1701_v52  ;;  %v1780_v61 = vrot.slane %v1759_v56, 4  ;;  %v1783_v33 = vrot.slane %v1760_v49, 5  ;;  %v1786_v11 = vrot.slane %v1760_v49, 6 }
 0x1f9   :  { %v1707_v63 = vsel %vm1705_vm15, %v1706_v21, %v1704_v4  ;;  %v1789_v50 = vrot.slane %v1760_v49, 7 }
 0x1fa   :  { %v1709_v2 = vsel %vm1708_vm13, %v1677_v42, %v1707_v63 }
 0x1fb   :  { %1818 = vst.msk [vmem:[%s3149_s4 - $0x1] sm:$0x8] %vm1516_vm0, %v1709_v2  ;;  %vm1716_vm1 = vcmp.eq.s32.totalorder %v1709_v2, 1  ;;  %vm1720_vm9 = vcmp.eq.s32.totalorder %v1709_v2, 2  ;;  %vm1723_vm12 = vcmp.eq.s32.totalorder %v1709_v2, 3  ;;  %vm1725_vm7 = vcmp.eq.s32.totalorder %v1709_v2, 4 }
 0x1fc   :  { %v1719_v38 = vsel %vm1716_vm1, %v1717_v27, %v1718_v16  ;;  %vm1728_vm3 = vcmp.eq.s32.totalorder %v1709_v2, 5  ;;  %vm1731_vm4 = vcmp.eq.s32.totalorder %v1709_v2, 6  ;;  %vm1734_vm6 = vcmp.eq.s32.totalorder %v1709_v2, 7 }
 0x1fd   :  { %v1722_v17 = vsel %vm1720_vm9, %v1721_v45, %v1719_v38  ;;  %vm1737_vm14 = vcmp.eq.s32.totalorder %v1709_v2, 8  ;;  %vm1740_vm2 = vcmp.eq.s32.totalorder %v1709_v2, 9  ;;  %vm1743_vm10 = vcmp.eq.s32.totalorder %v1709_v2, 10 }
 0x1fe   :  { %v1724_v28 = vsel %vm1723_vm12, %v1714_v6, %v1722_v17  ;;  %vm1746_vm8 = vcmp.eq.s32.totalorder %v1709_v2, 11 }
 0x1ff   :  { %v1727_v59 = vsel %vm1725_vm7, %v1726_v0, %v1724_v28 }
 0x200   :  { %v1730_v51 = vsel %vm1728_vm3, %v1729_v12, %v1727_v59 }
 0x201   :  { %v1733_v18 = vsel %vm1731_vm4, %v1732_v9, %v1730_v51 }
 0x202   :  { %v1736_v32 = vsel %vm1734_vm6, %v1735_v53, %v1733_v18 }
 0x203   :  { %v1739_v10 = vsel %vm1737_vm14, %v1738_v22, %v1736_v32 }
 0x204   :  { %v1742_v44 = vsel %vm1740_vm2, %v1741_v55, %v1739_v10 }
 0x205   :  { %v1745_v36 = vsel %vm1743_vm10, %v1744_v13, %v1742_v44 }
 0x206   :  { %v1747_v58 = vsel %vm1746_vm8, %v1715_v26, %v1745_v36 }
 0x207   :  { %1819 = vst.msk [vmem:[%s3149_s4 - $0x2] sm:$0x8] %vm1516_vm0, %v1747_v58  ;;  %vm1761_vm11 = vcmp.eq.s32.totalorder %v1747_v58, 1  ;;  %vm1765_vm15 = vcmp.eq.s32.totalorder %v1747_v58, 2  ;;  %vm1768_vm13 = vcmp.eq.s32.totalorder %v1747_v58, 3  ;;  %vm1770_vm1 = vcmp.eq.s32.totalorder %v1747_v58, 4 }
 0x208   :  { %v1764_v47 = vsel %vm1761_vm11, %v1762_v35, %v1763_v14  ;;  %vm1773_vm9 = vcmp.eq.s32.totalorder %v1747_v58, 5  ;;  %vm1776_vm12 = vcmp.eq.s32.totalorder %v1747_v58, 6  ;;  %vm1779_vm7 = vcmp.eq.s32.totalorder %v1747_v58, 7 }
 0x209   :  { %v1767_v19 = vsel %vm1765_vm15, %v1766_v3, %v1764_v47  ;;  %vm1782_vm3 = vcmp.eq.s32.totalorder %v1747_v58, 8  ;;  %vm1785_vm4 = vcmp.eq.s32.totalorder %v1747_v58, 9  ;;  %vm1788_vm5 = vcmp.eq.s32.totalorder %v1747_v58, 10 }
 0x20a   :  { %v1769_v31 = vsel %vm1768_vm13, %v1759_v56, %v1767_v19  ;;  %vm1791_vm6 = vcmp.eq.s32.totalorder %v1747_v58, 11 }
 0x20b   :  { %v1772_v5 = vsel %vm1770_vm1, %v1771_v20, %v1769_v31 }
 0x20c   :  { %v1775_v39 = vsel %vm1773_vm9, %v1774_v30, %v1772_v5 }
 0x20d   :  { %v1778_v15 = vsel %vm1776_vm12, %v1777_v37, %v1775_v39 }
 0x20e   :  { %v1781_v42 = vsel %vm1779_vm7, %v1780_v61, %v1778_v15 }
 0x20f   :  { %v1784_v54 = vsel %vm1782_vm3, %v1783_v33, %v1781_v42 }
 0x210   :  { %v1787_v40 = vsel %vm1785_vm4, %v1786_v11, %v1784_v54 }
 0x211   :  { %v1790_v48 = vsel %vm1788_vm5, %v1789_v50, %v1787_v40 }
 0x212   :  { %v1792_v46 = vsel %vm1791_vm6, %v1760_v49, %v1790_v48 }
 0x213   :  { %1793 = vst.msk [vmem:[%s3149_s4 - $0x3] sm:$0x8] %vm1516_vm0, %v1792_v46 }

</bundles_post_ra>
